<compile_context>
chip_gen: v5e
topology: v5e:2x2
jax: 0.10.0
libtpu: 0.0.40
codegen_flags: <defaults>
</compile_context>

<pallas_src>
import functools
import math

import jax
import jax.numpy as jnp
from jax.experimental import pallas as pl
from jax.experimental.pallas import tpu as pltpu


# ----------------------------------------------------------------------------
# Generation-aware limits
# ----------------------------------------------------------------------------
def _tpu_vmem_capacity():
    try:
        return int(getattr(pltpu.get_tpu_info(), "vmem_capacity_bytes",
                           128 * 1024 * 1024))
    except Exception:
        return 128 * 1024 * 1024


_VMEM_CAP = _tpu_vmem_capacity()
# v7x has 64 MiB of VMEM per TensorCore; v5e/v6e have 128 MiB.
_VMEM_LIMIT = (40 * 1024 * 1024 if _VMEM_CAP <= 64 * 1024 * 1024
               else 100 * 1024 * 1024)
_ROW_TILE_TARGET = 512 if _VMEM_CAP <= 64 * 1024 * 1024 else 1024


def _batch_tile(batch, cap):
    """Batch rows per grid step.  Tile must be a multiple of 8 (block-tiling
    constraint) or equal to the full batch; fall back to the whole batch."""
    if batch <= cap:
        return batch
    for t in range(cap, 7, -8):          # multiples of 8, largest first
        if batch % t == 0:
            return t
    return batch


def _row(v):
    return v.reshape(1, -1)


def _layernorm(x, g, b, eps=1e-5):
    mu = jnp.mean(x, axis=-1, keepdims=True)
    var = jnp.mean(jnp.square(x - mu), axis=-1, keepdims=True)
    return (x - mu) * jax.lax.rsqrt(var + eps) * g + b


def _mmw(x, w_ref):
    """MXU matmul: activation cast to bf16, weight ref already pre-cast to bf16,
    f32 accumulation."""
    return jnp.dot(x.astype(jnp.bfloat16), w_ref[...],
                   preferred_element_type=jnp.float32)


def _rep2(shape):
    """Full-array 2-D block replicated across the grid."""
    return pl.BlockSpec(shape, lambda i: (0, 0))


# ----------------------------------------------------------------------------
# Kernel 1: input projections (+LN) fused with the outer Q|K|V projection
# ----------------------------------------------------------------------------
def _embed_qkv_kernel(cate_ref, cont_ref,
                      wc_ref, bc_ref, gc_ref, cc_ref,
                      wf_ref, bf_ref, gf_ref, cf_ref,
                      wqkv_ref, bqkv_ref,
                      embed_ref, qkv_ref):
    h_cate = _layernorm(_mmw(cate_ref[...], wc_ref) + bc_ref[...],
                        gc_ref[...], cc_ref[...])
    h_cont = _layernorm(_mmw(cont_ref[...], wf_ref) + bf_ref[...],
                        gf_ref[...], cf_ref[...])
    embed = jnp.concatenate([h_cate, h_cont], axis=-1)
    embed_ref[...] = embed
    qkv_ref[...] = _mmw(embed, wqkv_ref) + bqkv_ref[...]


def embed_and_qkv(cate, cont, p):
    M, C1 = cate.shape
    C2 = cont.shape[1]
    D2 = p["comb_w"].shape[1]
    D = 2 * D2
    bf16 = jnp.bfloat16

    tm = M if M <= _ROW_TILE_TARGET else _ROW_TILE_TARGET
    Mp = ((M + tm - 1) // tm) * tm
    if Mp != M:                                  # padded tail keeps pipelining
        cate = jnp.pad(cate, ((0, Mp - M), (0, 0)))
        cont = jnp.pad(cont, ((0, Mp - M), (0, 0)))

    kernel = pl.pallas_call(
        _embed_qkv_kernel,
        out_shape=(jax.ShapeDtypeStruct((Mp, D), jnp.float32),
                   jax.ShapeDtypeStruct((Mp, 3 * D), jnp.float32)),
        grid=(Mp // tm,),
        in_specs=[
            pl.BlockSpec((tm, C1), lambda i: (i, 0)),
            pl.BlockSpec((tm, C2), lambda i: (i, 0)),
            _rep2((C1, D2)), _rep2((1, D2)), _rep2((1, D2)), _rep2((1, D2)),
            _rep2((C2, D2)), _rep2((1, D2)), _rep2((1, D2)), _rep2((1, D2)),
            _rep2((D, 3 * D)), _rep2((1, 3 * D)),
        ],
        out_specs=(pl.BlockSpec((tm, D), lambda i: (i, 0)),
                   pl.BlockSpec((tm, 3 * D), lambda i: (i, 0))),
        compiler_params=pltpu.CompilerParams(
            dimension_semantics=("parallel",), vmem_limit_bytes=_VMEM_LIMIT),
    )
    embed, qkv = kernel(cate, cont,
                        p["comb_w"].astype(bf16), _row(p["comb_b"]),
                        _row(p["comb_ln_g"]), _row(p["comb_ln_b"]),
                        p["cont_w"].astype(bf16), _row(p["cont_b"]),
                        _row(p["cont_ln_g"]), _row(p["cont_ln_b"]),
                        p["w_qkv"].astype(bf16), _row(p["b_qkv"]))
    if Mp != M:
        embed, qkv = embed[:M], qkv[:M]
    return embed, qkv


# ----------------------------------------------------------------------------
# Kernel 2: fused MultiheadAttention (query length 1) + residual/LN1/FFN/LN2
# ----------------------------------------------------------------------------
def _attn_ffn_kernel(q_ref, k_ref, v_ref, e_ref, m_ref, hs_ref, he_ref,
                     wq_ref, bq_ref, wk_ref, bk_ref, wv_ref, bv_ref,
                     wo_ref, bo_ref,
                     g1_ref, c1_ref, w1_ref, b1_ref, w2_ref, b2_ref,
                     g2_ref, c2_ref,
                     o_ref, xa_sc):
    bt, D = q_ref.shape
    S = k_ref.shape[0] // bt
    n_heads = hs_ref.shape[1]
    dh = D // n_heads
    scale = 1.0 / math.sqrt(dh)

    # inner MultiheadAttention in-projections, batched over the whole tile
    qi = (_mmw(q_ref[...], wq_ref) + bq_ref[...]) * scale     # (bt, D)
    ki = _mmw(k_ref[...], wk_ref) + bk_ref[...]               # (bt*S, D)
    vi = _mmw(v_ref[...], wv_ref) + bv_ref[...]               # (bt*S, D)
    mask = m_ref[...]                                         # (bt*S, 1) additive
    hs = hs_ref[...]                                          # (D, H) head-sum
    he = he_ref[...]                                          # (H, D) head-expand
    bo = bo_ref[...]

    # per batch row: single-query attention; all heads handled lane-wide via the
    # constant head-sum / head-expand matrices (no per-head slicing or concats).
    for b in range(bt):
        lo = b * S
        kb = ki[lo:lo + S, :]                                 # (S, D)
        vb = vi[lo:lo + S, :]                                 # (S, D)
        prod = kb * qi[b:b + 1, :]                            # (S, D)
        s = jnp.dot(prod, hs, preferred_element_type=jnp.float32)   # (S, H)
        s = s + mask[lo:lo + S, :]
        s = s - jnp.max(s, axis=0, keepdims=True)
        p = jnp.exp(s)
        # approx reciprocal (EUP): not bit-exact vs torch softmax, error ~1e-3
        p = p * pl.reciprocal(jnp.sum(p, axis=0, keepdims=True), approx=True)
        p_full = jnp.dot(p, he, preferred_element_type=jnp.float32)  # (S, D)
        ctx = jnp.sum(p_full * vb, axis=0, keepdims=True)     # (1, D)
        attn_b = _mmw(ctx, wo_ref) + bo                       # (1, D) out-proj
        # residual (embed + attn) assembled in VMEM, broadcast over the sequence
        xa_sc[lo:lo + S, :] = e_ref[lo:lo + S, :] + attn_b

    # LN1 -> FFN(relu) -> residual -> LN2, batched over all bt*S rows
    e = e_ref[...]
    x = _layernorm(xa_sc[...], g1_ref[...], c1_ref[...])
    h = jnp.maximum(_mmw(x, w1_ref) + b1_ref[...], 0.0)
    f = _mmw(h, w2_ref) + b2_ref[...]
    o_ref[...] = _layernorm(e + f, g2_ref[...], c2_ref[...])


def attention_ffn_block(q_sel, k, v, embed, add_mask, p, n_heads):
    B, S, D = embed.shape
    bt = _batch_tile(B, 64)
    nb = B // bt
    bf16 = jnp.bfloat16
    dh = D // n_heads

    # constant head bookkeeping matrices (0/1), keep scores in f32
    head_sum = (jnp.arange(D)[:, None] // dh
                == jnp.arange(n_heads)[None, :]).astype(jnp.float32)   # (D, H)
    head_expand = head_sum.T                                           # (H, D)

    q2 = q_sel.reshape(B, D)
    k2 = k.reshape(B * S, D)
    v2 = v.reshape(B * S, D)
    e2 = embed.reshape(B * S, D)
    m2 = add_mask.reshape(B * S, 1)

    kernel = pl.pallas_call(
        _attn_ffn_kernel,
        out_shape=jax.ShapeDtypeStruct((B * S, D), jnp.float32),
        grid=(nb,),
        in_specs=[
            pl.BlockSpec((bt, D), lambda i: (i, 0)),
            pl.BlockSpec((bt * S, D), lambda i: (i, 0)),
            pl.BlockSpec((bt * S, D), lambda i: (i, 0)),
            pl.BlockSpec((bt * S, D), lambda i: (i, 0)),
            pl.BlockSpec((bt * S, 1), lambda i: (i, 0)),
            _rep2((D, n_heads)), _rep2((n_heads, D)),
            _rep2((D, D)), _rep2((1, D)),
            _rep2((D, D)), _rep2((1, D)),
            _rep2((D, D)), _rep2((1, D)),
            _rep2((D, D)), _rep2((1, D)),
            _rep2((1, D)), _rep2((1, D)),
            _rep2((D, D)), _rep2((1, D)),
            _rep2((D, D)), _rep2((1, D)),
            _rep2((1, D)), _rep2((1, D)),
        ],
        out_specs=pl.BlockSpec((bt * S, D), lambda i: (i, 0)),
        scratch_shapes=[pltpu.VMEM((bt * S, D), jnp.float32)],
        compiler_params=pltpu.CompilerParams(
            dimension_semantics=("parallel",), vmem_limit_bytes=_VMEM_LIMIT),
    )
    out = kernel(q2, k2, v2, e2, m2, head_sum, head_expand,
                 p["attn_wq"].astype(bf16), _row(p["attn_bq"]),
                 p["attn_wk"].astype(bf16), _row(p["attn_bk"]),
                 p["attn_wv"].astype(bf16), _row(p["attn_bv"]),
                 p["attn_wo"].astype(bf16), _row(p["attn_bo"]),
                 _row(p["ln1_g"]), _row(p["ln1_b"]),
                 p["ffn_w1"].astype(bf16), _row(p["ffn_b1"]),
                 p["ffn_w2"].astype(bf16), _row(p["ffn_b2"]),
                 _row(p["ln2_g"]), _row(p["ln2_b"]))
    return out.reshape(B, S, D)


# ----------------------------------------------------------------------------
# Kernel 3: LSTM stack (all layers) + final fc + sigmoid
# ----------------------------------------------------------------------------
def _lstm_fc_kernel(x_ref, wih_ref, whh_ref, b_ref, fcw_ref, fcb_ref,
                    o_ref, h_sc, c_sc, y_sc, xg_sc):
    bt, H = h_sc.shape
    S = x_ref.shape[0] // bt
    n_layers = wih_ref.shape[0]
    bf16 = jnp.bfloat16

    for layer in range(n_layers):
        wih = wih_ref[layer]                     # (D, 4H) bf16, resident
        whh = whh_ref[layer]                     # (H, 4H) bf16, resident
        b = b_ref[layer]                         # (1, 4H) f32

        x_in = x_ref[...] if layer == 0 else y_sc[...]       # (S*bt, D)
        # hoisted input-to-hidden projection for the WHOLE sequence: one large
        # bf16 MXU matmul off the recurrence critical path (f32 accumulation)
        xg_sc[...] = jnp.dot(x_in.astype(bf16), wih,
                             preferred_element_type=jnp.float32) + b

        h_sc[...] = jnp.zeros_like(h_sc)
        c_sc[...] = jnp.zeros_like(c_sc)

        # recurrence: only the small h @ W_hh matmul per timestep.  Statically
        # unrolled (S is a compile-time constant) for LLO scheduler visibility.
        # Gate column layout is (i | f | o | g): sigmoids act on one contiguous
        # 3H slab, tanh on the last H slab.
        for t in range(S):
            lo = t * bt
            gates = xg_sc[lo:lo + bt, :] + jnp.dot(
                h_sc[...].astype(bf16), whh,
                preferred_element_type=jnp.float32)           # (bt, 4H) f32
            sig = jax.nn.sigmoid(gates[:, :3 * H])
            i_g = sig[:, 0 * H:1 * H]
            f_g = sig[:, 1 * H:2 * H]
            o_g = sig[:, 2 * H:3 * H]
            g_g = jnp.tanh(gates[:, 3 * H:4 * H])
            c_new = f_g * c_sc[...] + i_g * g_g
            h_new = o_g * jnp.tanh(c_new)
            c_sc[...] = c_new
            h_sc[...] = h_new
            y_sc[lo:lo + bt, :] = h_new

    # fused final fc (H -> 1) + sigmoid; the (bt, S) output block is assembled
    # column-by-column in VMEM and DMA'd out as one slab.
    logits = (jnp.sum(y_sc[...] * fcw_ref[...], axis=-1, keepdims=True)
              + fcb_ref[...])                                 # (S*bt, 1)
    preds = jax.nn.sigmoid(logits)
    for t in range(S):
        o_ref[:, t:t + 1] = preds[t * bt:(t + 1) * bt, :]


def lstm_stack_fc(x_bsd, p):
    """x_bsd: (B, S, D) batch-major.  Returns preds (B, S)."""
    B, S, D = x_bsd.shape
    L = len(p["lstm_layers"])
    H = p["lstm_layers"][0]["w_hh"].shape[0]
    bf16 = jnp.bfloat16
    bt = _batch_tile(B, 8)                 # small tiles -> megacore split on v7x
    nb = B // bt

    # per-tile time-major rows: row (i, t, j) -> global batch i*bt + j, time t
    x_rows = (x_bsd.reshape(nb, bt, S, D)
              .transpose(0, 2, 1, 3)
              .reshape(nb * S * bt, D))

    w_ih = jnp.stack([lp["w_ih"] for lp in p["lstm_layers"]]).astype(bf16)
    w_hh = jnp.stack([lp["w_hh"] for lp in p["lstm_layers"]]).astype(bf16)
    b = jnp.stack([lp["b"] for lp in p["lstm_layers"]]).reshape(L, 1, 4 * H)
    fc_w = p["fc_w"].reshape(1, -1)        # (1, H)
    fc_b = p["fc_b"].reshape(1, 1)

    kernel = pl.pallas_call(
        _lstm_fc_kernel,
        out_shape=jax.ShapeDtypeStruct((B, S), jnp.float32),
        grid=(nb,),
        in_specs=[
            pl.BlockSpec((S * bt, D), lambda i: (i, 0)),
            pl.BlockSpec((L, D, 4 * H), lambda i: (0, 0, 0)),
            pl.BlockSpec((L, H, 4 * H), lambda i: (0, 0, 0)),
            pl.BlockSpec((L, 1, 4 * H), lambda i: (0, 0, 0)),
            pl.BlockSpec((1, H), lambda i: (0, 0)),
            pl.BlockSpec((1, 1), lambda i: (0, 0)),
        ],
        out_specs=pl.BlockSpec((bt, S), lambda i: (i, 0)),
        scratch_shapes=[
            pltpu.VMEM((bt, H), jnp.float32),            # h
            pltpu.VMEM((bt, H), jnp.float32),            # c
            pltpu.VMEM((S * bt, H), jnp.float32),        # inter-layer activations
            pltpu.VMEM((S * bt, 4 * H), jnp.float32),    # hoisted x @ W_ih gates
        ],
        compiler_params=pltpu.CompilerParams(
            dimension_semantics=("parallel",), vmem_limit_bytes=_VMEM_LIMIT),
    )
    return kernel(x_rows, w_ih, w_hh, b, fc_w, fc_b)


# ----------------------------------------------------------------------------
# Full LastQuery forward
# ----------------------------------------------------------------------------
def last_query_forward(params, cate_inputs, cont_features, *, n_heads):
    test, question, tag, _unused, mask, interaction, big_features, index = cate_inputs
    B, S = interaction.shape
    D = params["ffn_w1"].shape[0]

    # --- embeddings (gathers are plain-JAX glue) ---
    e_int = jnp.take(params["emb_interaction"], interaction, axis=0)
    e_test = jnp.take(params["emb_test"], test, axis=0)
    e_q = jnp.take(params["emb_question"], question, axis=0)
    e_tag = jnp.take(params["emb_tag"], tag, axis=0)
    e_big = jnp.take(params["emb_big"], big_features, axis=0)
    # reference order: [interaction, test, question, big, tag]
    cate_cat = jnp.concatenate([e_int, e_test, e_q, e_big, e_tag], axis=2)

    M = B * S
    embed_flat, qkv = embed_and_qkv(cate_cat.reshape(M, -1),
                                    cont_features.reshape(M, -1), params)
    embed = embed_flat.reshape(B, S, D)

    q_full = qkv[:, :D].reshape(B, S, D)
    k_ext = qkv[:, D:2 * D].reshape(B, S, D)
    v_ext = qkv[:, 2 * D:].reshape(B, S, D)

    # "last query" gather: torch.gather(q, 1, index...) with per-batch index
    idx = index[:, 0].astype(jnp.int32)
    q_sel = q_full[jnp.arange(B), idx][:, None, :]                    # (B, 1, D)

    # additive attention mask: large-negative where input mask == 0, else 0
    # (fully-masked rows degenerate to uniform attention instead of torch NaN)
    add_mask = jnp.where(mask == 0, -1e30, 0.0).astype(jnp.float32)[:, :, None]

    out = attention_ffn_block(q_sel, k_ext, v_ext, embed, add_mask,
                              params, n_heads)                        # (B, S, D)

    # --- LSTM stack + final fc + sigmoid (single fused kernel) ---
    return lstm_stack_fc(out, params)                                 # (B, S)


# ----------------------------------------------------------------------------
# Deterministic synthetic parameters (not a checkpoint)
# ----------------------------------------------------------------------------
def init_params(key, *, hidden_dim, n_layers, n_test, n_questions,
                n_tag, n_big, n_cont, n_cate=5):
    keys = iter(jax.random.split(key, 64))

    def nk():
        return next(keys)

    def lin(in_d, out_d, scale=0.08):
        return (scale * jax.random.normal(nk(), (in_d, out_d), jnp.float32),
                0.01 * jax.random.normal(nk(), (out_d,), jnp.float32))

    def ln(d_):
        return jnp.ones((d_,), jnp.float32), jnp.zeros((d_,), jnp.float32)

    d = hidden_dim
    e = hidden_dim // 3
    p = {}
    p["emb_interaction"] = 0.1 * jax.random.normal(nk(), (3, e), jnp.float32)
    p["emb_test"] = 0.1 * jax.random.normal(nk(), (n_test + 1, e), jnp.float32)
    p["emb_question"] = 0.1 * jax.random.normal(nk(), (n_questions + 1, e), jnp.float32)
    p["emb_tag"] = 0.1 * jax.random.normal(nk(), (n_tag + 1, e), jnp.float32)
    p["emb_big"] = 0.1 * jax.random.normal(nk(), (n_big + 1, e), jnp.float32)
    # TODO(synk): embedding_position / get_pos exist in the reference module but are
    # never used in its forward(), so they are intentionally omitted here.

    p["comb_w"], p["comb_b"] = lin(e * n_cate, d // 2)
    p["comb_ln_g"], p["comb_ln_b"] = ln(d // 2)
    p["cont_w"], p["cont_b"] = lin(n_cont, d // 2)
    p["cont_ln_g"], p["cont_ln_b"] = ln(d // 2)

    # outer query / key / value Linear layers, fused into one (D, 3D) weight
    wq, bq = lin(d, d)
    wk, bk = lin(d, d)
    wv, bv = lin(d, d)
    p["w_qkv"] = jnp.concatenate([wq, wk, wv], axis=1)
    p["b_qkv"] = jnp.concatenate([bq, bk, bv], axis=0)

    # nn.MultiheadAttention internal in-proj / out-proj
    p["attn_wq"], p["attn_bq"] = lin(d, d)
    p["attn_wk"], p["attn_bk"] = lin(d, d)
    p["attn_wv"], p["attn_bv"] = lin(d, d)
    p["attn_wo"], p["attn_bo"] = lin(d, d)

    p["ffn_w1"], p["ffn_b1"] = lin(d, d)
    p["ffn_w2"], p["ffn_b2"] = lin(d, d)
    p["ln1_g"], p["ln1_b"] = ln(d)
    p["ln2_g"], p["ln2_b"] = ln(d)

    # LSTM weights with gate-column layout (i | f | o | g) so the sigmoid gates
    # form one contiguous 3H slab in the kernel.  Weights are synthetic random,
    # so only internal consistency matters; a checkpoint loader would need to
    # permute PyTorch's (i, f, g, o) columns accordingly.
    lstm_layers = []
    for _ in range(n_layers):
        w_ih, b_ih = lin(d, 4 * d)
        w_hh, b_hh = lin(d, 4 * d)
        lstm_layers.append(dict(w_ih=w_ih, w_hh=w_hh, b=b_ih + b_hh))
    p["lstm_layers"] = lstm_layers

    p["fc_w"], p["fc_b"] = lin(d, 1)
    return p


# ----------------------------------------------------------------------------
# Driver
# ----------------------------------------------------------------------------
if __name__ == "__main__":
    B, S = 2, 8
    HIDDEN = 32          # args.hidden_dim
    N_HEADS = 4          # args.n_heads
    N_LAYERS = 2         # args.n_layers (LSTM depth)
    N_TEST, N_QUESTIONS, N_TAG, N_BIG = 10, 20, 10, 10
    N_CONT = 3           # args.n_cont
    N_CATE = 5           # args.n_cate (5 categorical embeddings are concatenated)

    root = jax.random.PRNGKey(0)
    pkey, dkey = jax.random.split(root)
    params = init_params(pkey, hidden_dim=HIDDEN, n_layers=N_LAYERS,
                         n_test=N_TEST, n_questions=N_QUESTIONS, n_tag=N_TAG,
                         n_big=N_BIG, n_cont=N_CONT, n_cate=N_CATE)

    k1, k2, k3, k4, k5, k6 = jax.random.split(dkey, 6)
    test = jax.random.randint(k1, (B, S), 0, N_TEST + 1)
    question = jax.random.randint(k2, (B, S), 0, N_QUESTIONS + 1)
    tag = jax.random.randint(k3, (B, S), 0, N_TAG + 1)
    interaction = jax.random.randint(k4, (B, S), 0, 3)
    big_features = jax.random.randint(k5, (B, S), 0, N_BIG + 1)
    cont_features = jax.random.normal(k6, (B, S, N_CONT), jnp.float32)

    # padding mask: first two positions of batch 0 are padding (0); rest valid (1).
    mask = jnp.ones((B, S), jnp.int32).at[0, :2].set(0)
    # per-batch "last query" index, shape (B, 1) like the torch reference
    index = jnp.full((B, 1), S - 1, jnp.int32)
    unused = jnp.zeros((B, S), jnp.int32)

    cate_inputs = (test, question, tag, unused, mask, interaction, big_features, index)

    fwd = jax.jit(functools.partial(last_query_forward, n_heads=N_HEADS))
    preds = fwd(params, cate_inputs, cont_features)
    jax.block_until_ready(preds)

    assert preds.shape == (B, S), preds.shape
    assert bool(jnp.all(jnp.isfinite(preds)))
    assert bool(jnp.all((preds >= 0.0) & (preds <= 1.0)))
    print("KERNEL_OK")
</pallas_src>

<mosaic_0001>
module attributes {stable_mosaic.version = 11 : i64} {
  func.func @_lstm_fc_kernel(%arg0: i32, %arg1: memref<16x32xf32, #tpu.memory_space<vmem>>, %arg2: memref<2x32x128xbf16, #tpu.memory_space<vmem>>, %arg3: memref<2x32x128xbf16, #tpu.memory_space<vmem>>, %arg4: memref<2x1x128xf32, #tpu.memory_space<vmem>>, %arg5: memref<1x32xf32, #tpu.memory_space<vmem>>, %arg6: memref<1x1xf32, #tpu.memory_space<vmem>>, %arg7: memref<2x8xf32, #tpu.memory_space<vmem>>, %arg8: memref<2x32xf32, #tpu.memory_space<vmem>>, %arg9: memref<2x32xf32, #tpu.memory_space<vmem>>, %arg10: memref<16x32xf32, #tpu.memory_space<vmem>>, %arg11: memref<16x128xf32, #tpu.memory_space<vmem>>) attributes {dimension_semantics = [#tpu.dimension_semantics<parallel>], iteration_bounds = array<i64: 1>, scalar_prefetch = 0 : i64, scratch_operands = 4 : i64, tpu.core_type = #tpu.core_type<tc>, window_params = [{transform_indices = @transform_0, window_bounds = array<i64: 16, 32>}, {pipeline_mode = #tpu.pipeline_mode<synchronous>, transform_indices = @transform_1, window_bounds = array<i64: 2, 32, 128>}, {pipeline_mode = #tpu.pipeline_mode<synchronous>, transform_indices = @transform_2, window_bounds = array<i64: 2, 32, 128>}, {pipeline_mode = #tpu.pipeline_mode<synchronous>, transform_indices = @transform_3, window_bounds = array<i64: 2, 1, 128>}, {pipeline_mode = #tpu.pipeline_mode<synchronous>, transform_indices = @transform_4, window_bounds = array<i64: 1, 32>}, {pipeline_mode = #tpu.pipeline_mode<synchronous>, transform_indices = @transform_5, window_bounds = array<i64: 1, 1>}, {transform_indices = @transform_6, window_bounds = array<i64: 2, 8>}]} {
    %c0 = arith.constant 0 : index
    %c0_0 = arith.constant 0 : index
    %c0_1 = arith.constant 0 : index
    %0 = vector.load %arg2[%c0, %c0_0, %c0_1] : memref<2x32x128xbf16, #tpu.memory_space<vmem>>, vector<1x32x128xbf16>
    %1 = vector.shape_cast %0 : vector<1x32x128xbf16> to vector<32x128xbf16>
    %c0_2 = arith.constant 0 : index
    %c0_3 = arith.constant 0 : index
    %c0_4 = arith.constant 0 : index
    %2 = vector.load %arg3[%c0_2, %c0_3, %c0_4] : memref<2x32x128xbf16, #tpu.memory_space<vmem>>, vector<1x32x128xbf16>
    %3 = vector.shape_cast %2 : vector<1x32x128xbf16> to vector<32x128xbf16>
    %c0_5 = arith.constant 0 : index
    %c0_6 = arith.constant 0 : index
    %c0_7 = arith.constant 0 : index
    %4 = vector.load %arg4[%c0_5, %c0_6, %c0_7] : memref<2x1x128xf32, #tpu.memory_space<vmem>>, vector<1x1x128xf32>
    %5 = vector.shape_cast %4 : vector<1x1x128xf32> to vector<1x128xf32>
    %c0_8 = arith.constant 0 : index
    %c0_9 = arith.constant 0 : index
    %6 = vector.load %arg1[%c0_8, %c0_9] : memref<16x32xf32, #tpu.memory_space<vmem>>, vector<16x32xf32>
    %7 = arith.truncf %6 : vector<16x32xf32> to vector<16x32xbf16>
    %cst = arith.constant dense<0.000000e+00> : vector<16x128xf32>
    %8 = tpu.matmul %7, %1, %cst {dimension_numbers = #tpu.dot_dimension_numbers<[1], [0], [0], [1], [0, 0, 1, 1], [], []>} : vector<16x32xbf16>, vector<32x128xbf16>, vector<16x128xf32> -> vector<16x128xf32>
    %9 = vector.broadcast %5 : vector<1x128xf32> to vector<16x128xf32>
    %10 = arith.addf %8, %9 : vector<16x128xf32>
    %c0_10 = arith.constant 0 : index
    %c0_11 = arith.constant 0 : index
    %11 = vector.load %arg11[%c0_10, %c0_11] : memref<16x128xf32, #tpu.memory_space<vmem>>, vector<16x128xf32>
    tpu.vector_store %arg11[%c0_10, %c0_11], %10 {strides = array<i32>} : memref<16x128xf32, #tpu.memory_space<vmem>>, vector<16x128xf32>,
    %cst_12 = arith.constant 0.000000e+00 : f32
    %12 = vector.broadcast %cst_12 : f32 to vector<2x32xf32>
    %c0_13 = arith.constant 0 : index
    %c0_14 = arith.constant 0 : index
    %13 = vector.load %arg8[%c0_13, %c0_14] : memref<2x32xf32, #tpu.memory_space<vmem>>, vector<2x32xf32>
    tpu.vector_store %arg8[%c0_13, %c0_14], %12 {strides = array<i32>} : memref<2x32xf32, #tpu.memory_space<vmem>>, vector<2x32xf32>,
    %cst_15 = arith.constant 0.000000e+00 : f32
    %14 = vector.broadcast %cst_15 : f32 to vector<2x32xf32>
    %c0_16 = arith.constant 0 : index
    %c0_17 = arith.constant 0 : index
    %15 = vector.load %arg9[%c0_16, %c0_17] : memref<2x32xf32, #tpu.memory_space<vmem>>, vector<2x32xf32>
    tpu.vector_store %arg9[%c0_16, %c0_17], %14 {strides = array<i32>} : memref<2x32xf32, #tpu.memory_space<vmem>>, vector<2x32xf32>,
    %c0_18 = arith.constant 0 : index
    %c0_19 = arith.constant 0 : index
    %16 = vector.load %arg11[%c0_18, %c0_19] : memref<16x128xf32, #tpu.memory_space<vmem>>, vector<2x128xf32>
    %c0_20 = arith.constant 0 : index
    %c0_21 = arith.constant 0 : index
    %17 = vector.load %arg8[%c0_20, %c0_21] : memref<2x32xf32, #tpu.memory_space<vmem>>, vector<2x32xf32>
    %18 = arith.truncf %17 : vector<2x32xf32> to vector<2x32xbf16>
    %cst_22 = arith.constant dense<0.000000e+00> : vector<2x128xf32>
    %19 = tpu.matmul %18, %3, %cst_22 {dimension_numbers = #tpu.dot_dimension_numbers<[1], [0], [0], [1], [0, 0, 1, 1], [], []>} : vector<2x32xbf16>, vector<32x128xbf16>, vector<2x128xf32> -> vector<2x128xf32>
    %20 = arith.addf %16, %19 : vector<2x128xf32>
    %21 = vector.extract_strided_slice %20 {offsets = [0, 0], sizes = [2, 96], strides = [1, 1]} : vector<2x128xf32> to vector<2x96xf32>
    %22 = arith.negf %21 : vector<2x96xf32>
    %23 = math.exp %22 : vector<2x96xf32>
    %cst_23 = arith.constant 1.000000e+00 : f32
    %24 = vector.broadcast %cst_23 : f32 to vector<2x96xf32>
    %25 = arith.addf %24, %23 : vector<2x96xf32>
    %26 = arith.divf %24, %25 : vector<2x96xf32>
    %27 = vector.extract_strided_slice %26 {offsets = [0, 0], sizes = [2, 32], strides = [1, 1]} : vector<2x96xf32> to vector<2x32xf32>
    %28 = vector.extract_strided_slice %26 {offsets = [0, 32], sizes = [2, 32], strides = [1, 1]} : vector<2x96xf32> to vector<2x32xf32>
    %29 = vector.extract_strided_slice %26 {offsets = [0, 64], sizes = [2, 32], strides = [1, 1]} : vector<2x96xf32> to vector<2x32xf32>
    %30 = vector.extract_strided_slice %20 {offsets = [0, 96], sizes = [2, 32], strides = [1, 1]} : vector<2x128xf32> to vector<2x32xf32>
    %31 = math.tanh %30 : vector<2x32xf32>
    %c0_24 = arith.constant 0 : index
    %c0_25 = arith.constant 0 : index
    %32 = vector.load %arg9[%c0_24, %c0_25] : memref<2x32xf32, #tpu.memory_space<vmem>>, vector<2x32xf32>
    %33 = arith.mulf %28, %32 : vector<2x32xf32>
    %34 = arith.mulf %27, %31 : vector<2x32xf32>
    %35 = arith.addf %33, %34 : vector<2x32xf32>
    %36 = math.tanh %35 : vector<2x32xf32>
    %37 = arith.mulf %29, %36 : vector<2x32xf32>
    %c0_26 = arith.constant 0 : index
    %c0_27 = arith.constant 0 : index
    %38 = vector.load %arg9[%c0_26, %c0_27] : memref<2x32xf32, #tpu.memory_space<vmem>>, vector<2x32xf32>
    tpu.vector_store %arg9[%c0_26, %c0_27], %35 {strides = array<i32>} : memref<2x32xf32, #tpu.memory_space<vmem>>, vector<2x32xf32>,
    %c0_28 = arith.constant 0 : index
    %c0_29 = arith.constant 0 : index
    %39 = vector.load %arg8[%c0_28, %c0_29] : memref<2x32xf32, #tpu.memory_space<vmem>>, vector<2x32xf32>
    tpu.vector_store %arg8[%c0_28, %c0_29], %37 {strides = array<i32>} : memref<2x32xf32, #tpu.memory_space<vmem>>, vector<2x32xf32>,
    %c0_30 = arith.constant 0 : index
    %c0_31 = arith.constant 0 : index
    %40 = vector.load %arg10[%c0_30, %c0_31] : memref<16x32xf32, #tpu.memory_space<vmem>>, vector<2x32xf32>
    tpu.vector_store %arg10[%c0_30, %c0_31], %37 {strides = array<i32>} : memref<16x32xf32, #tpu.memory_space<vmem>>, vector<2x32xf32>,
    %c2 = arith.constant 2 : index
    %c0_32 = arith.constant 0 : index
    %41 = vector.load %arg11[%c2, %c0_32] : memref<16x128xf32, #tpu.memory_space<vmem>>, vector<2x128xf32>
    %c0_33 = arith.constant 0 : index
    %c0_34 = arith.constant 0 : index
    %42 = vector.load %arg8[%c0_33, %c0_34] : memref<2x32xf32, #tpu.memory_space<vmem>>, vector<2x32xf32>
    %43 = arith.truncf %42 : vector<2x32xf32> to vector<2x32xbf16>
    %cst_35 = arith.constant dense<0.000000e+00> : vector<2x128xf32>
    %44 = tpu.matmul %43, %3, %cst_35 {dimension_numbers = #tpu.dot_dimension_numbers<[1], [0], [0], [1], [0, 0, 1, 1], [], []>} : vector<2x32xbf16>, vector<32x128xbf16>, vector<2x128xf32> -> vector<2x128xf32>
    %45 = arith.addf %41, %44 : vector<2x128xf32>
    %46 = vector.extract_strided_slice %45 {offsets = [0, 0], sizes = [2, 96], strides = [1, 1]} : vector<2x128xf32> to vector<2x96xf32>
    %47 = arith.negf %46 : vector<2x96xf32>
    %48 = math.exp %47 : vector<2x96xf32>
    %cst_36 = arith.constant 1.000000e+00 : f32
    %49 = vector.broadcast %cst_36 : f32 to vector<2x96xf32>
    %50 = arith.addf %49, %48 : vector<2x96xf32>
    %51 = arith.divf %49, %50 : vector<2x96xf32>
    %52 = vector.extract_strided_slice %51 {offsets = [0, 0], sizes = [2, 32], strides = [1, 1]} : vector<2x96xf32> to vector<2x32xf32>
    %53 = vector.extract_strided_slice %51 {offsets = [0, 32], sizes = [2, 32], strides = [1, 1]} : vector<2x96xf32> to vector<2x32xf32>
    %54 = vector.extract_strided_slice %51 {offsets = [0, 64], sizes = [2, 32], strides = [1, 1]} : vector<2x96xf32> to vector<2x32xf32>
    %55 = vector.extract_strided_slice %45 {offsets = [0, 96], sizes = [2, 32], strides = [1, 1]} : vector<2x128xf32> to vector<2x32xf32>
    %56 = math.tanh %55 : vector<2x32xf32>
    %c0_37 = arith.constant 0 : index
    %c0_38 = arith.constant 0 : index
    %57 = vector.load %arg9[%c0_37, %c0_38] : memref<2x32xf32, #tpu.memory_space<vmem>>, vector<2x32xf32>
    %58 = arith.mulf %53, %57 : vector<2x32xf32>
    %59 = arith.mulf %52, %56 : vector<2x32xf32>
    %60 = arith.addf %58, %59 : vector<2x32xf32>
    %61 = math.tanh %60 : vector<2x32xf32>
    %62 = arith.mulf %54, %61 : vector<2x32xf32>
    %c0_39 = arith.constant 0 : index
    %c0_40 = arith.constant 0 : index
    %63 = vector.load %arg9[%c0_39, %c0_40] : memref<2x32xf32, #tpu.memory_space<vmem>>, vector<2x32xf32>
    tpu.vector_store %arg9[%c0_39, %c0_40], %60 {strides = array<i32>} : memref<2x32xf32, #tpu.memory_space<vmem>>, vector<2x32xf32>,
    %c0_41 = arith.constant 0 : index
    %c0_42 = arith.constant 0 : index
    %64 = vector.load %arg8[%c0_41, %c0_42] : memref<2x32xf32, #tpu.memory_space<vmem>>, vector<2x32xf32>
    tpu.vector_store %arg8[%c0_41, %c0_42], %62 {strides = array<i32>} : memref<2x32xf32, #tpu.memory_space<vmem>>, vector<2x32xf32>,
    %c2_43 = arith.constant 2 : index
    %c0_44 = arith.constant 0 : index
    %65 = vector.load %arg10[%c2_43, %c0_44] : memref<16x32xf32, #tpu.memory_space<vmem>>, vector<2x32xf32>
    tpu.vector_store %arg10[%c2_43, %c0_44], %62 {strides = array<i32>} : memref<16x32xf32, #tpu.memory_space<vmem>>, vector<2x32xf32>,
    %c4 = arith.constant 4 : index
    %c0_45 = arith.constant 0 : index
    %66 = vector.load %arg11[%c4, %c0_45] : memref<16x128xf32, #tpu.memory_space<vmem>>, vector<2x128xf32>
    %c0_46 = arith.constant 0 : index
    %c0_47 = arith.constant 0 : index
    %67 = vector.load %arg8[%c0_46, %c0_47] : memref<2x32xf32, #tpu.memory_space<vmem>>, vector<2x32xf32>
    %68 = arith.truncf %67 : vector<2x32xf32> to vector<2x32xbf16>
    %cst_48 = arith.constant dense<0.000000e+00> : vector<2x128xf32>
    %69 = tpu.matmul %68, %3, %cst_48 {dimension_numbers = #tpu.dot_dimension_numbers<[1], [0], [0], [1], [0, 0, 1, 1], [], []>} : vector<2x32xbf16>, vector<32x128xbf16>, vector<2x128xf32> -> vector<2x128xf32>
    %70 = arith.addf %66, %69 : vector<2x128xf32>
    %71 = vector.extract_strided_slice %70 {offsets = [0, 0], sizes = [2, 96], strides = [1, 1]} : vector<2x128xf32> to vector<2x96xf32>
    %72 = arith.negf %71 : vector<2x96xf32>
    %73 = math.exp %72 : vector<2x96xf32>
    %cst_49 = arith.constant 1.000000e+00 : f32
    %74 = vector.broadcast %cst_49 : f32 to vector<2x96xf32>
    %75 = arith.addf %74, %73 : vector<2x96xf32>
    %76 = arith.divf %74, %75 : vector<2x96xf32>
    %77 = vector.extract_strided_slice %76 {offsets = [0, 0], sizes = [2, 32], strides = [1, 1]} : vector<2x96xf32> to vector<2x32xf32>
    %78 = vector.extract_strided_slice %76 {offsets = [0, 32], sizes = [2, 32], strides = [1, 1]} : vector<2x96xf32> to vector<2x32xf32>
    %79 = vector.extract_strided_slice %76 {offsets = [0, 64], sizes = [2, 32], strides = [1, 1]} : vector<2x96xf32> to vector<2x32xf32>
    %80 = vector.extract_strided_slice %70 {offsets = [0, 96], sizes = [2, 32], strides = [1, 1]} : vector<2x128xf32> to vector<2x32xf32>
    %81 = math.tanh %80 : vector<2x32xf32>
    %c0_50 = arith.constant 0 : index
    %c0_51 = arith.constant 0 : index
    %82 = vector.load %arg9[%c0_50, %c0_51] : memref<2x32xf32, #tpu.memory_space<vmem>>, vector<2x32xf32>
    %83 = arith.mulf %78, %82 : vector<2x32xf32>
    %84 = arith.mulf %77, %81 : vector<2x32xf32>
    %85 = arith.addf %83, %84 : vector<2x32xf32>
    %86 = math.tanh %85 : vector<2x32xf32>
    %87 = arith.mulf %79, %86 : vector<2x32xf32>
    %c0_52 = arith.constant 0 : index
    %c0_53 = arith.constant 0 : index
    %88 = vector.load %arg9[%c0_52, %c0_53] : memref<2x32xf32, #tpu.memory_space<vmem>>, vector<2x32xf32>
    tpu.vector_store %arg9[%c0_52, %c0_53], %85 {strides = array<i32>} : memref<2x32xf32, #tpu.memory_space<vmem>>, vector<2x32xf32>,
    %c0_54 = arith.constant 0 : index
    %c0_55 = arith.constant 0 : index
    %89 = vector.load %arg8[%c0_54, %c0_55] : memref<2x32xf32, #tpu.memory_space<vmem>>, vector<2x32xf32>
    tpu.vector_store %arg8[%c0_54, %c0_55], %87 {strides = array<i32>} : memref<2x32xf32, #tpu.memory_space<vmem>>, vector<2x32xf32>,
    %c4_56 = arith.constant 4 : index
    %c0_57 = arith.constant 0 : index
    %90 = vector.load %arg10[%c4_56, %c0_57] : memref<16x32xf32, #tpu.memory_space<vmem>>, vector<2x32xf32>
    tpu.vector_store %arg10[%c4_56, %c0_57], %87 {strides = array<i32>} : memref<16x32xf32, #tpu.memory_space<vmem>>, vector<2x32xf32>,
    %c6 = arith.constant 6 : index
    %c0_58 = arith.constant 0 : index
    %91 = vector.load %arg11[%c6, %c0_58] : memref<16x128xf32, #tpu.memory_space<vmem>>, vector<2x128xf32>
    %c0_59 = arith.constant 0 : index
    %c0_60 = arith.constant 0 : index
    %92 = vector.load %arg8[%c0_59, %c0_60] : memref<2x32xf32, #tpu.memory_space<vmem>>, vector<2x32xf32>
    %93 = arith.truncf %92 : vector<2x32xf32> to vector<2x32xbf16>
    %cst_61 = arith.constant dense<0.000000e+00> : vector<2x128xf32>
    %94 = tpu.matmul %93, %3, %cst_61 {dimension_numbers = #tpu.dot_dimension_numbers<[1], [0], [0], [1], [0, 0, 1, 1], [], []>} : vector<2x32xbf16>, vector<32x128xbf16>, vector<2x128xf32> -> vector<2x128xf32>
    %95 = arith.addf %91, %94 : vector<2x128xf32>
    %96 = vector.extract_strided_slice %95 {offsets = [0, 0], sizes = [2, 96], strides = [1, 1]} : vector<2x128xf32> to vector<2x96xf32>
    %97 = arith.negf %96 : vector<2x96xf32>
    %98 = math.exp %97 : vector<2x96xf32>
    %cst_62 = arith.constant 1.000000e+00 : f32
    %99 = vector.broadcast %cst_62 : f32 to vector<2x96xf32>
    %100 = arith.addf %99, %98 : vector<2x96xf32>
    %101 = arith.divf %99, %100 : vector<2x96xf32>
    %102 = vector.extract_strided_slice %101 {offsets = [0, 0], sizes = [2, 32], strides = [1, 1]} : vector<2x96xf32> to vector<2x32xf32>
    %103 = vector.extract_strided_slice %101 {offsets = [0, 32], sizes = [2, 32], strides = [1, 1]} : vector<2x96xf32> to vector<2x32xf32>
    %104 = vector.extract_strided_slice %101 {offsets = [0, 64], sizes = [2, 32], strides = [1, 1]} : vector<2x96xf32> to vector<2x32xf32>
    %105 = vector.extract_strided_slice %95 {offsets = [0, 96], sizes = [2, 32], strides = [1, 1]} : vector<2x128xf32> to vector<2x32xf32>
    %106 = math.tanh %105 : vector<2x32xf32>
    %c0_63 = arith.constant 0 : index
    %c0_64 = arith.constant 0 : index
    %107 = vector.load %arg9[%c0_63, %c0_64] : memref<2x32xf32, #tpu.memory_space<vmem>>, vector<2x32xf32>
    %108 = arith.mulf %103, %107 : vector<2x32xf32>
    %109 = arith.mulf %102, %106 : vector<2x32xf32>
    %110 = arith.addf %108, %109 : vector<2x32xf32>
    %111 = math.tanh %110 : vector<2x32xf32>
    %112 = arith.mulf %104, %111 : vector<2x32xf32>
    %c0_65 = arith.constant 0 : index
    %c0_66 = arith.constant 0 : index
    %113 = vector.load %arg9[%c0_65, %c0_66] : memref<2x32xf32, #tpu.memory_space<vmem>>, vector<2x32xf32>
    tpu.vector_store %arg9[%c0_65, %c0_66], %110 {strides = array<i32>} : memref<2x32xf32, #tpu.memory_space<vmem>>, vector<2x32xf32>,
    %c0_67 = arith.constant 0 : index
    %c0_68 = arith.constant 0 : index
    %114 = vector.load %arg8[%c0_67, %c0_68] : memref<2x32xf32, #tpu.memory_space<vmem>>, vector<2x32xf32>
    tpu.vector_store %arg8[%c0_67, %c0_68], %112 {strides = array<i32>} : memref<2x32xf32, #tpu.memory_space<vmem>>, vector<2x32xf32>,
    %c6_69 = arith.constant 6 : index
    %c0_70 = arith.constant 0 : index
    %115 = vector.load %arg10[%c6_69, %c0_70] : memref<16x32xf32, #tpu.memory_space<vmem>>, vector<2x32xf32>
    tpu.vector_store %arg10[%c6_69, %c0_70], %112 {strides = array<i32>} : memref<16x32xf32, #tpu.memory_space<vmem>>, vector<2x32xf32>,
    %c8 = arith.constant 8 : index
    %c0_71 = arith.constant 0 : index
    %116 = vector.load %arg11[%c8, %c0_71] : memref<16x128xf32, #tpu.memory_space<vmem>>, vector<2x128xf32>
    %c0_72 = arith.constant 0 : index
    %c0_73 = arith.constant 0 : index
    %117 = vector.load %arg8[%c0_72, %c0_73] : memref<2x32xf32, #tpu.memory_space<vmem>>, vector<2x32xf32>
    %118 = arith.truncf %117 : vector<2x32xf32> to vector<2x32xbf16>
    %cst_74 = arith.constant dense<0.000000e+00> : vector<2x128xf32>
    %119 = tpu.matmul %118, %3, %cst_74 {dimension_numbers = #tpu.dot_dimension_numbers<[1], [0], [0], [1], [0, 0, 1, 1], [], []>} : vector<2x32xbf16>, vector<32x128xbf16>, vector<2x128xf32> -> vector<2x128xf32>
    %120 = arith.addf %116, %119 : vector<2x128xf32>
    %121 = vector.extract_strided_slice %120 {offsets = [0, 0], sizes = [2, 96], strides = [1, 1]} : vector<2x128xf32> to vector<2x96xf32>
    %122 = arith.negf %121 : vector<2x96xf32>
    %123 = math.exp %122 : vector<2x96xf32>
    %cst_75 = arith.constant 1.000000e+00 : f32
    %124 = vector.broadcast %cst_75 : f32 to vector<2x96xf32>
    %125 = arith.addf %124, %123 : vector<2x96xf32>
    %126 = arith.divf %124, %125 : vector<2x96xf32>
    %127 = vector.extract_strided_slice %126 {offsets = [0, 0], sizes = [2, 32], strides = [1, 1]} : vector<2x96xf32> to vector<2x32xf32>
    %128 = vector.extract_strided_slice %126 {offsets = [0, 32], sizes = [2, 32], strides = [1, 1]} : vector<2x96xf32> to vector<2x32xf32>
    %129 = vector.extract_strided_slice %126 {offsets = [0, 64], sizes = [2, 32], strides = [1, 1]} : vector<2x96xf32> to vector<2x32xf32>
    %130 = vector.extract_strided_slice %120 {offsets = [0, 96], sizes = [2, 32], strides = [1, 1]} : vector<2x128xf32> to vector<2x32xf32>
    %131 = math.tanh %130 : vector<2x32xf32>
    %c0_76 = arith.constant 0 : index
    %c0_77 = arith.constant 0 : index
    %132 = vector.load %arg9[%c0_76, %c0_77] : memref<2x32xf32, #tpu.memory_space<vmem>>, vector<2x32xf32>
    %133 = arith.mulf %128, %132 : vector<2x32xf32>
    %134 = arith.mulf %127, %131 : vector<2x32xf32>
    %135 = arith.addf %133, %134 : vector<2x32xf32>
    %136 = math.tanh %135 : vector<2x32xf32>
    %137 = arith.mulf %129, %136 : vector<2x32xf32>
    %c0_78 = arith.constant 0 : index
    %c0_79 = arith.constant 0 : index
    %138 = vector.load %arg9[%c0_78, %c0_79] : memref<2x32xf32, #tpu.memory_space<vmem>>, vector<2x32xf32>
    tpu.vector_store %arg9[%c0_78, %c0_79], %135 {strides = array<i32>} : memref<2x32xf32, #tpu.memory_space<vmem>>, vector<2x32xf32>,
    %c0_80 = arith.constant 0 : index
    %c0_81 = arith.constant 0 : index
    %139 = vector.load %arg8[%c0_80, %c0_81] : memref<2x32xf32, #tpu.memory_space<vmem>>, vector<2x32xf32>
    tpu.vector_store %arg8[%c0_80, %c0_81], %137 {strides = array<i32>} : memref<2x32xf32, #tpu.memory_space<vmem>>, vector<2x32xf32>,
    %c8_82 = arith.constant 8 : index
    %c0_83 = arith.constant 0 : index
    %140 = vector.load %arg10[%c8_82, %c0_83] : memref<16x32xf32, #tpu.memory_space<vmem>>, vector<2x32xf32>
    tpu.vector_store %arg10[%c8_82, %c0_83], %137 {strides = array<i32>} : memref<16x32xf32, #tpu.memory_space<vmem>>, vector<2x32xf32>,
    %c10 = arith.constant 10 : index
    %c0_84 = arith.constant 0 : index
    %141 = vector.load %arg11[%c10, %c0_84] : memref<16x128xf32, #tpu.memory_space<vmem>>, vector<2x128xf32>
    %c0_85 = arith.constant 0 : index
    %c0_86 = arith.constant 0 : index
    %142 = vector.load %arg8[%c0_85, %c0_86] : memref<2x32xf32, #tpu.memory_space<vmem>>, vector<2x32xf32>
    %143 = arith.truncf %142 : vector<2x32xf32> to vector<2x32xbf16>
    %cst_87 = arith.constant dense<0.000000e+00> : vector<2x128xf32>
    %144 = tpu.matmul %143, %3, %cst_87 {dimension_numbers = #tpu.dot_dimension_numbers<[1], [0], [0], [1], [0, 0, 1, 1], [], []>} : vector<2x32xbf16>, vector<32x128xbf16>, vector<2x128xf32> -> vector<2x128xf32>
    %145 = arith.addf %141, %144 : vector<2x128xf32>
    %146 = vector.extract_strided_slice %145 {offsets = [0, 0], sizes = [2, 96], strides = [1, 1]} : vector<2x128xf32> to vector<2x96xf32>
    %147 = arith.negf %146 : vector<2x96xf32>
    %148 = math.exp %147 : vector<2x96xf32>
    %cst_88 = arith.constant 1.000000e+00 : f32
    %149 = vector.broadcast %cst_88 : f32 to vector<2x96xf32>
    %150 = arith.addf %149, %148 : vector<2x96xf32>
    %151 = arith.divf %149, %150 : vector<2x96xf32>
    %152 = vector.extract_strided_slice %151 {offsets = [0, 0], sizes = [2, 32], strides = [1, 1]} : vector<2x96xf32> to vector<2x32xf32>
    %153 = vector.extract_strided_slice %151 {offsets = [0, 32], sizes = [2, 32], strides = [1, 1]} : vector<2x96xf32> to vector<2x32xf32>
    %154 = vector.extract_strided_slice %151 {offsets = [0, 64], sizes = [2, 32], strides = [1, 1]} : vector<2x96xf32> to vector<2x32xf32>
    %155 = vector.extract_strided_slice %145 {offsets = [0, 96], sizes = [2, 32], strides = [1, 1]} : vector<2x128xf32> to vector<2x32xf32>
    %156 = math.tanh %155 : vector<2x32xf32>
    %c0_89 = arith.constant 0 : index
    %c0_90 = arith.constant 0 : index
    %157 = vector.load %arg9[%c0_89, %c0_90] : memref<2x32xf32, #tpu.memory_space<vmem>>, vector<2x32xf32>
    %158 = arith.mulf %153, %157 : vector<2x32xf32>
    %159 = arith.mulf %152, %156 : vector<2x32xf32>
    %160 = arith.addf %158, %159 : vector<2x32xf32>
    %161 = math.tanh %160 : vector<2x32xf32>
    %162 = arith.mulf %154, %161 : vector<2x32xf32>
    %c0_91 = arith.constant 0 : index
    %c0_92 = arith.constant 0 : index
    %163 = vector.load %arg9[%c0_91, %c0_92] : memref<2x32xf32, #tpu.memory_space<vmem>>, vector<2x32xf32>
    tpu.vector_store %arg9[%c0_91, %c0_92], %160 {strides = array<i32>} : memref<2x32xf32, #tpu.memory_space<vmem>>, vector<2x32xf32>,
    %c0_93 = arith.constant 0 : index
    %c0_94 = arith.constant 0 : index
    %164 = vector.load %arg8[%c0_93, %c0_94] : memref<2x32xf32, #tpu.memory_space<vmem>>, vector<2x32xf32>
    tpu.vector_store %arg8[%c0_93, %c0_94], %162 {strides = array<i32>} : memref<2x32xf32, #tpu.memory_space<vmem>>, vector<2x32xf32>,
    %c10_95 = arith.constant 10 : index
    %c0_96 = arith.constant 0 : index
    %165 = vector.load %arg10[%c10_95, %c0_96] : memref<16x32xf32, #tpu.memory_space<vmem>>, vector<2x32xf32>
    tpu.vector_store %arg10[%c10_95, %c0_96], %162 {strides = array<i32>} : memref<16x32xf32, #tpu.memory_space<vmem>>, vector<2x32xf32>,
    %c12 = arith.constant 12 : index
    %c0_97 = arith.constant 0 : index
    %166 = vector.load %arg11[%c12, %c0_97] : memref<16x128xf32, #tpu.memory_space<vmem>>, vector<2x128xf32>
    %c0_98 = arith.constant 0 : index
    %c0_99 = arith.constant 0 : index
    %167 = vector.load %arg8[%c0_98, %c0_99] : memref<2x32xf32, #tpu.memory_space<vmem>>, vector<2x32xf32>
    %168 = arith.truncf %167 : vector<2x32xf32> to vector<2x32xbf16>
    %cst_100 = arith.constant dense<0.000000e+00> : vector<2x128xf32>
    %169 = tpu.matmul %168, %3, %cst_100 {dimension_numbers = #tpu.dot_dimension_numbers<[1], [0], [0], [1], [0, 0, 1, 1], [], []>} : vector<2x32xbf16>, vector<32x128xbf16>, vector<2x128xf32> -> vector<2x128xf32>
    %170 = arith.addf %166, %169 : vector<2x128xf32>
    %171 = vector.extract_strided_slice %170 {offsets = [0, 0], sizes = [2, 96], strides = [1, 1]} : vector<2x128xf32> to vector<2x96xf32>
    %172 = arith.negf %171 : vector<2x96xf32>
    %173 = math.exp %172 : vector<2x96xf32>
    %cst_101 = arith.constant 1.000000e+00 : f32
    %174 = vector.broadcast %cst_101 : f32 to vector<2x96xf32>
    %175 = arith.addf %174, %173 : vector<2x96xf32>
    %176 = arith.divf %174, %175 : vector<2x96xf32>
    %177 = vector.extract_strided_slice %176 {offsets = [0, 0], sizes = [2, 32], strides = [1, 1]} : vector<2x96xf32> to vector<2x32xf32>
    %178 = vector.extract_strided_slice %176 {offsets = [0, 32], sizes = [2, 32], strides = [1, 1]} : vector<2x96xf32> to vector<2x32xf32>
    %179 = vector.extract_strided_slice %176 {offsets = [0, 64], sizes = [2, 32], strides = [1, 1]} : vector<2x96xf32> to vector<2x32xf32>
    %180 = vector.extract_strided_slice %170 {offsets = [0, 96], sizes = [2, 32], strides = [1, 1]} : vector<2x128xf32> to vector<2x32xf32>
    %181 = math.tanh %180 : vector<2x32xf32>
    %c0_102 = arith.constant 0 : index
    %c0_103 = arith.constant 0 : index
    %182 = vector.load %arg9[%c0_102, %c0_103] : memref<2x32xf32, #tpu.memory_space<vmem>>, vector<2x32xf32>
    %183 = arith.mulf %178, %182 : vector<2x32xf32>
    %184 = arith.mulf %177, %181 : vector<2x32xf32>
    %185 = arith.addf %183, %184 : vector<2x32xf32>
    %186 = math.tanh %185 : vector<2x32xf32>
    %187 = arith.mulf %179, %186 : vector<2x32xf32>
    %c0_104 = arith.constant 0 : index
    %c0_105 = arith.constant 0 : index
    %188 = vector.load %arg9[%c0_104, %c0_105] : memref<2x32xf32, #tpu.memory_space<vmem>>, vector<2x32xf32>
    tpu.vector_store %arg9[%c0_104, %c0_105], %185 {strides = array<i32>} : memref<2x32xf32, #tpu.memory_space<vmem>>, vector<2x32xf32>,
    %c0_106 = arith.constant 0 : index
    %c0_107 = arith.constant 0 : index
    %189 = vector.load %arg8[%c0_106, %c0_107] : memref<2x32xf32, #tpu.memory_space<vmem>>, vector<2x32xf32>
    tpu.vector_store %arg8[%c0_106, %c0_107], %187 {strides = array<i32>} : memref<2x32xf32, #tpu.memory_space<vmem>>, vector<2x32xf32>,
    %c12_108 = arith.constant 12 : index
    %c0_109 = arith.constant 0 : index
    %190 = vector.load %arg10[%c12_108, %c0_109] : memref<16x32xf32, #tpu.memory_space<vmem>>, vector<2x32xf32>
    tpu.vector_store %arg10[%c12_108, %c0_109], %187 {strides = array<i32>} : memref<16x32xf32, #tpu.memory_space<vmem>>, vector<2x32xf32>,
    %c14 = arith.constant 14 : index
    %c0_110 = arith.constant 0 : index
    %191 = vector.load %arg11[%c14, %c0_110] : memref<16x128xf32, #tpu.memory_space<vmem>>, vector<2x128xf32>
    %c0_111 = arith.constant 0 : index
    %c0_112 = arith.constant 0 : index
    %192 = vector.load %arg8[%c0_111, %c0_112] : memref<2x32xf32, #tpu.memory_space<vmem>>, vector<2x32xf32>
    %193 = arith.truncf %192 : vector<2x32xf32> to vector<2x32xbf16>
    %cst_113 = arith.constant dense<0.000000e+00> : vector<2x128xf32>
    %194 = tpu.matmul %193, %3, %cst_113 {dimension_numbers = #tpu.dot_dimension_numbers<[1], [0], [0], [1], [0, 0, 1, 1], [], []>} : vector<2x32xbf16>, vector<32x128xbf16>, vector<2x128xf32> -> vector<2x128xf32>
    %195 = arith.addf %191, %194 : vector<2x128xf32>
    %196 = vector.extract_strided_slice %195 {offsets = [0, 0], sizes = [2, 96], strides = [1, 1]} : vector<2x128xf32> to vector<2x96xf32>
    %197 = arith.negf %196 : vector<2x96xf32>
    %198 = math.exp %197 : vector<2x96xf32>
    %cst_114 = arith.constant 1.000000e+00 : f32
    %199 = vector.broadcast %cst_114 : f32 to vector<2x96xf32>
    %200 = arith.addf %199, %198 : vector<2x96xf32>
    %201 = arith.divf %199, %200 : vector<2x96xf32>
    %202 = vector.extract_strided_slice %201 {offsets = [0, 0], sizes = [2, 32], strides = [1, 1]} : vector<2x96xf32> to vector<2x32xf32>
    %203 = vector.extract_strided_slice %201 {offsets = [0, 32], sizes = [2, 32], strides = [1, 1]} : vector<2x96xf32> to vector<2x32xf32>
    %204 = vector.extract_strided_slice %201 {offsets = [0, 64], sizes = [2, 32], strides = [1, 1]} : vector<2x96xf32> to vector<2x32xf32>
    %205 = vector.extract_strided_slice %195 {offsets = [0, 96], sizes = [2, 32], strides = [1, 1]} : vector<2x128xf32> to vector<2x32xf32>
    %206 = math.tanh %205 : vector<2x32xf32>
    %c0_115 = arith.constant 0 : index
    %c0_116 = arith.constant 0 : index
    %207 = vector.load %arg9[%c0_115, %c0_116] : memref<2x32xf32, #tpu.memory_space<vmem>>, vector<2x32xf32>
    %208 = arith.mulf %203, %207 : vector<2x32xf32>
    %209 = arith.mulf %202, %206 : vector<2x32xf32>
    %210 = arith.addf %208, %209 : vector<2x32xf32>
    %211 = math.tanh %210 : vector<2x32xf32>
    %212 = arith.mulf %204, %211 : vector<2x32xf32>
    %c0_117 = arith.constant 0 : index
    %c0_118 = arith.constant 0 : index
    %213 = vector.load %arg9[%c0_117, %c0_118] : memref<2x32xf32, #tpu.memory_space<vmem>>, vector<2x32xf32>
    tpu.vector_store %arg9[%c0_117, %c0_118], %210 {strides = array<i32>} : memref<2x32xf32, #tpu.memory_space<vmem>>, vector<2x32xf32>,
    %c0_119 = arith.constant 0 : index
    %c0_120 = arith.constant 0 : index
    %214 = vector.load %arg8[%c0_119, %c0_120] : memref<2x32xf32, #tpu.memory_space<vmem>>, vector<2x32xf32>
    tpu.vector_store %arg8[%c0_119, %c0_120], %212 {strides = array<i32>} : memref<2x32xf32, #tpu.memory_space<vmem>>, vector<2x32xf32>,
    %c14_121 = arith.constant 14 : index
    %c0_122 = arith.constant 0 : index
    %215 = vector.load %arg10[%c14_121, %c0_122] : memref<16x32xf32, #tpu.memory_space<vmem>>, vector<2x32xf32>
    tpu.vector_store %arg10[%c14_121, %c0_122], %212 {strides = array<i32>} : memref<16x32xf32, #tpu.memory_space<vmem>>, vector<2x32xf32>,
    %c1 = arith.constant 1 : index
    %c0_123 = arith.constant 0 : index
    %c0_124 = arith.constant 0 : index
    %216 = vector.load %arg2[%c1, %c0_123, %c0_124] : memref<2x32x128xbf16, #tpu.memory_space<vmem>>, vector<1x32x128xbf16>
    %217 = vector.shape_cast %216 : vector<1x32x128xbf16> to vector<32x128xbf16>
    %c1_125 = arith.constant 1 : index
    %c0_126 = arith.constant 0 : index
    %c0_127 = arith.constant 0 : index
    %218 = vector.load %arg3[%c1_125, %c0_126, %c0_127] : memref<2x32x128xbf16, #tpu.memory_space<vmem>>, vector<1x32x128xbf16>
    %219 = vector.shape_cast %218 : vector<1x32x128xbf16> to vector<32x128xbf16>
    %c1_128 = arith.constant 1 : index
    %c0_129 = arith.constant 0 : index
    %c0_130 = arith.constant 0 : index
    %220 = vector.load %arg4[%c1_128, %c0_129, %c0_130] : memref<2x1x128xf32, #tpu.memory_space<vmem>>, vector<1x1x128xf32>
    %221 = vector.shape_cast %220 : vector<1x1x128xf32> to vector<1x128xf32>
    %c0_131 = arith.constant 0 : index
    %c0_132 = arith.constant 0 : index
    %222 = vector.load %arg10[%c0_131, %c0_132] : memref<16x32xf32, #tpu.memory_space<vmem>>, vector<16x32xf32>
    %223 = arith.truncf %222 : vector<16x32xf32> to vector<16x32xbf16>
    %cst_133 = arith.constant dense<0.000000e+00> : vector<16x128xf32>
    %224 = tpu.matmul %223, %217, %cst_133 {dimension_numbers = #tpu.dot_dimension_numbers<[1], [0], [0], [1], [0, 0, 1, 1], [], []>} : vector<16x32xbf16>, vector<32x128xbf16>, vector<16x128xf32> -> vector<16x128xf32>
    %225 = vector.broadcast %221 : vector<1x128xf32> to vector<16x128xf32>
    %226 = arith.addf %224, %225 : vector<16x128xf32>
    %c0_134 = arith.constant 0 : index
    %c0_135 = arith.constant 0 : index
    %227 = vector.load %arg11[%c0_134, %c0_135] : memref<16x128xf32, #tpu.memory_space<vmem>>, vector<16x128xf32>
    tpu.vector_store %arg11[%c0_134, %c0_135], %226 {strides = array<i32>} : memref<16x128xf32, #tpu.memory_space<vmem>>, vector<16x128xf32>,
    %cst_136 = arith.constant 0.000000e+00 : f32
    %228 = vector.broadcast %cst_136 : f32 to vector<2x32xf32>
    %c0_137 = arith.constant 0 : index
    %c0_138 = arith.constant 0 : index
    %229 = vector.load %arg8[%c0_137, %c0_138] : memref<2x32xf32, #tpu.memory_space<vmem>>, vector<2x32xf32>
    tpu.vector_store %arg8[%c0_137, %c0_138], %228 {strides = array<i32>} : memref<2x32xf32, #tpu.memory_space<vmem>>, vector<2x32xf32>,
    %cst_139 = arith.constant 0.000000e+00 : f32
    %230 = vector.broadcast %cst_139 : f32 to vector<2x32xf32>
    %c0_140 = arith.constant 0 : index
    %c0_141 = arith.constant 0 : index
    %231 = vector.load %arg9[%c0_140, %c0_141] : memref<2x32xf32, #tpu.memory_space<vmem>>, vector<2x32xf32>
    tpu.vector_store %arg9[%c0_140, %c0_141], %230 {strides = array<i32>} : memref<2x32xf32, #tpu.memory_space<vmem>>, vector<2x32xf32>,
    %c0_142 = arith.constant 0 : index
    %c0_143 = arith.constant 0 : index
    %232 = vector.load %arg11[%c0_142, %c0_143] : memref<16x128xf32, #tpu.memory_space<vmem>>, vector<2x128xf32>
    %c0_144 = arith.constant 0 : index
    %c0_145 = arith.constant 0 : index
    %233 = vector.load %arg8[%c0_144, %c0_145] : memref<2x32xf32, #tpu.memory_space<vmem>>, vector<2x32xf32>
    %234 = arith.truncf %233 : vector<2x32xf32> to vector<2x32xbf16>
    %cst_146 = arith.constant dense<0.000000e+00> : vector<2x128xf32>
    %235 = tpu.matmul %234, %219, %cst_146 {dimension_numbers = #tpu.dot_dimension_numbers<[1], [0], [0], [1], [0, 0, 1, 1], [], []>} : vector<2x32xbf16>, vector<32x128xbf16>, vector<2x128xf32> -> vector<2x128xf32>
    %236 = arith.addf %232, %235 : vector<2x128xf32>
    %237 = vector.extract_strided_slice %236 {offsets = [0, 0], sizes = [2, 96], strides = [1, 1]} : vector<2x128xf32> to vector<2x96xf32>
    %238 = arith.negf %237 : vector<2x96xf32>
    %239 = math.exp %238 : vector<2x96xf32>
    %cst_147 = arith.constant 1.000000e+00 : f32
    %240 = vector.broadcast %cst_147 : f32 to vector<2x96xf32>
    %241 = arith.addf %240, %239 : vector<2x96xf32>
    %242 = arith.divf %240, %241 : vector<2x96xf32>
    %243 = vector.extract_strided_slice %242 {offsets = [0, 0], sizes = [2, 32], strides = [1, 1]} : vector<2x96xf32> to vector<2x32xf32>
    %244 = vector.extract_strided_slice %242 {offsets = [0, 32], sizes = [2, 32], strides = [1, 1]} : vector<2x96xf32> to vector<2x32xf32>
    %245 = vector.extract_strided_slice %242 {offsets = [0, 64], sizes = [2, 32], strides = [1, 1]} : vector<2x96xf32> to vector<2x32xf32>
    %246 = vector.extract_strided_slice %236 {offsets = [0, 96], sizes = [2, 32], strides = [1, 1]} : vector<2x128xf32> to vector<2x32xf32>
    %247 = math.tanh %246 : vector<2x32xf32>
    %c0_148 = arith.constant 0 : index
    %c0_149 = arith.constant 0 : index
    %248 = vector.load %arg9[%c0_148, %c0_149] : memref<2x32xf32, #tpu.memory_space<vmem>>, vector<2x32xf32>
    %249 = arith.mulf %244, %248 : vector<2x32xf32>
    %250 = arith.mulf %243, %247 : vector<2x32xf32>
    %251 = arith.addf %249, %250 : vector<2x32xf32>
    %252 = math.tanh %251 : vector<2x32xf32>
    %253 = arith.mulf %245, %252 : vector<2x32xf32>
    %c0_150 = arith.constant 0 : index
    %c0_151 = arith.constant 0 : index
    %254 = vector.load %arg9[%c0_150, %c0_151] : memref<2x32xf32, #tpu.memory_space<vmem>>, vector<2x32xf32>
    tpu.vector_store %arg9[%c0_150, %c0_151], %251 {strides = array<i32>} : memref<2x32xf32, #tpu.memory_space<vmem>>, vector<2x32xf32>,
    %c0_152 = arith.constant 0 : index
    %c0_153 = arith.constant 0 : index
    %255 = vector.load %arg8[%c0_152, %c0_153] : memref<2x32xf32, #tpu.memory_space<vmem>>, vector<2x32xf32>
    tpu.vector_store %arg8[%c0_152, %c0_153], %253 {strides = array<i32>} : memref<2x32xf32, #tpu.memory_space<vmem>>, vector<2x32xf32>,
    %c0_154 = arith.constant 0 : index
    %c0_155 = arith.constant 0 : index
    %256 = vector.load %arg10[%c0_154, %c0_155] : memref<16x32xf32, #tpu.memory_space<vmem>>, vector<2x32xf32>
    tpu.vector_store %arg10[%c0_154, %c0_155], %253 {strides = array<i32>} : memref<16x32xf32, #tpu.memory_space<vmem>>, vector<2x32xf32>,
    %c2_156 = arith.constant 2 : index
    %c0_157 = arith.constant 0 : index
    %257 = vector.load %arg11[%c2_156, %c0_157] : memref<16x128xf32, #tpu.memory_space<vmem>>, vector<2x128xf32>
    %c0_158 = arith.constant 0 : index
    %c0_159 = arith.constant 0 : index
    %258 = vector.load %arg8[%c0_158, %c0_159] : memref<2x32xf32, #tpu.memory_space<vmem>>, vector<2x32xf32>
    %259 = arith.truncf %258 : vector<2x32xf32> to vector<2x32xbf16>
    %cst_160 = arith.constant dense<0.000000e+00> : vector<2x128xf32>
    %260 = tpu.matmul %259, %219, %cst_160 {dimension_numbers = #tpu.dot_dimension_numbers<[1], [0], [0], [1], [0, 0, 1, 1], [], []>} : vector<2x32xbf16>, vector<32x128xbf16>, vector<2x128xf32> -> vector<2x128xf32>
    %261 = arith.addf %257, %260 : vector<2x128xf32>
    %262 = vector.extract_strided_slice %261 {offsets = [0, 0], sizes = [2, 96], strides = [1, 1]} : vector<2x128xf32> to vector<2x96xf32>
    %263 = arith.negf %262 : vector<2x96xf32>
    %264 = math.exp %263 : vector<2x96xf32>
    %cst_161 = arith.constant 1.000000e+00 : f32
    %265 = vector.broadcast %cst_161 : f32 to vector<2x96xf32>
    %266 = arith.addf %265, %264 : vector<2x96xf32>
    %267 = arith.divf %265, %266 : vector<2x96xf32>
    %268 = vector.extract_strided_slice %267 {offsets = [0, 0], sizes = [2, 32], strides = [1, 1]} : vector<2x96xf32> to vector<2x32xf32>
    %269 = vector.extract_strided_slice %267 {offsets = [0, 32], sizes = [2, 32], strides = [1, 1]} : vector<2x96xf32> to vector<2x32xf32>
    %270 = vector.extract_strided_slice %267 {offsets = [0, 64], sizes = [2, 32], strides = [1, 1]} : vector<2x96xf32> to vector<2x32xf32>
    %271 = vector.extract_strided_slice %261 {offsets = [0, 96], sizes = [2, 32], strides = [1, 1]} : vector<2x128xf32> to vector<2x32xf32>
    %272 = math.tanh %271 : vector<2x32xf32>
    %c0_162 = arith.constant 0 : index
    %c0_163 = arith.constant 0 : index
    %273 = vector.load %arg9[%c0_162, %c0_163] : memref<2x32xf32, #tpu.memory_space<vmem>>, vector<2x32xf32>
    %274 = arith.mulf %269, %273 : vector<2x32xf32>
    %275 = arith.mulf %268, %272 : vector<2x32xf32>
    %276 = arith.addf %274, %275 : vector<2x32xf32>
    %277 = math.tanh %276 : vector<2x32xf32>
    %278 = arith.mulf %270, %277 : vector<2x32xf32>
    %c0_164 = arith.constant 0 : index
    %c0_165 = arith.constant 0 : index
    %279 = vector.load %arg9[%c0_164, %c0_165] : memref<2x32xf32, #tpu.memory_space<vmem>>, vector<2x32xf32>
    tpu.vector_store %arg9[%c0_164, %c0_165], %276 {strides = array<i32>} : memref<2x32xf32, #tpu.memory_space<vmem>>, vector<2x32xf32>,
    %c0_166 = arith.constant 0 : index
    %c0_167 = arith.constant 0 : index
    %280 = vector.load %arg8[%c0_166, %c0_167] : memref<2x32xf32, #tpu.memory_space<vmem>>, vector<2x32xf32>
    tpu.vector_store %arg8[%c0_166, %c0_167], %278 {strides = array<i32>} : memref<2x32xf32, #tpu.memory_space<vmem>>, vector<2x32xf32>,
    %c2_168 = arith.constant 2 : index
    %c0_169 = arith.constant 0 : index
    %281 = vector.load %arg10[%c2_168, %c0_169] : memref<16x32xf32, #tpu.memory_space<vmem>>, vector<2x32xf32>
    tpu.vector_store %arg10[%c2_168, %c0_169], %278 {strides = array<i32>} : memref<16x32xf32, #tpu.memory_space<vmem>>, vector<2x32xf32>,
    %c4_170 = arith.constant 4 : index
    %c0_171 = arith.constant 0 : index
    %282 = vector.load %arg11[%c4_170, %c0_171] : memref<16x128xf32, #tpu.memory_space<vmem>>, vector<2x128xf32>
    %c0_172 = arith.constant 0 : index
    %c0_173 = arith.constant 0 : index
    %283 = vector.load %arg8[%c0_172, %c0_173] : memref<2x32xf32, #tpu.memory_space<vmem>>, vector<2x32xf32>
    %284 = arith.truncf %283 : vector<2x32xf32> to vector<2x32xbf16>
    %cst_174 = arith.constant dense<0.000000e+00> : vector<2x128xf32>
    %285 = tpu.matmul %284, %219, %cst_174 {dimension_numbers = #tpu.dot_dimension_numbers<[1], [0], [0], [1], [0, 0, 1, 1], [], []>} : vector<2x32xbf16>, vector<32x128xbf16>, vector<2x128xf32> -> vector<2x128xf32>
    %286 = arith.addf %282, %285 : vector<2x128xf32>
    %287 = vector.extract_strided_slice %286 {offsets = [0, 0], sizes = [2, 96], strides = [1, 1]} : vector<2x128xf32> to vector<2x96xf32>
    %288 = arith.negf %287 : vector<2x96xf32>
    %289 = math.exp %288 : vector<2x96xf32>
    %cst_175 = arith.constant 1.000000e+00 : f32
    %290 = vector.broadcast %cst_175 : f32 to vector<2x96xf32>
    %291 = arith.addf %290, %289 : vector<2x96xf32>
    %292 = arith.divf %290, %291 : vector<2x96xf32>
    %293 = vector.extract_strided_slice %292 {offsets = [0, 0], sizes = [2, 32], strides = [1, 1]} : vector<2x96xf32> to vector<2x32xf32>
    %294 = vector.extract_strided_slice %292 {offsets = [0, 32], sizes = [2, 32], strides = [1, 1]} : vector<2x96xf32> to vector<2x32xf32>
    %295 = vector.extract_strided_slice %292 {offsets = [0, 64], sizes = [2, 32], strides = [1, 1]} : vector<2x96xf32> to vector<2x32xf32>
    %296 = vector.extract_strided_slice %286 {offsets = [0, 96], sizes = [2, 32], strides = [1, 1]} : vector<2x128xf32> to vector<2x32xf32>
    %297 = math.tanh %296 : vector<2x32xf32>
    %c0_176 = arith.constant 0 : index
    %c0_177 = arith.constant 0 : index
    %298 = vector.load %arg9[%c0_176, %c0_177] : memref<2x32xf32, #tpu.memory_space<vmem>>, vector<2x32xf32>
    %299 = arith.mulf %294, %298 : vector<2x32xf32>
    %300 = arith.mulf %293, %297 : vector<2x32xf32>
    %301 = arith.addf %299, %300 : vector<2x32xf32>
    %302 = math.tanh %301 : vector<2x32xf32>
    %303 = arith.mulf %295, %302 : vector<2x32xf32>
    %c0_178 = arith.constant 0 : index
    %c0_179 = arith.constant 0 : index
    %304 = vector.load %arg9[%c0_178, %c0_179] : memref<2x32xf32, #tpu.memory_space<vmem>>, vector<2x32xf32>
    tpu.vector_store %arg9[%c0_178, %c0_179], %301 {strides = array<i32>} : memref<2x32xf32, #tpu.memory_space<vmem>>, vector<2x32xf32>,
    %c0_180 = arith.constant 0 : index
    %c0_181 = arith.constant 0 : index
    %305 = vector.load %arg8[%c0_180, %c0_181] : memref<2x32xf32, #tpu.memory_space<vmem>>, vector<2x32xf32>
    tpu.vector_store %arg8[%c0_180, %c0_181], %303 {strides = array<i32>} : memref<2x32xf32, #tpu.memory_space<vmem>>, vector<2x32xf32>,
    %c4_182 = arith.constant 4 : index
    %c0_183 = arith.constant 0 : index
    %306 = vector.load %arg10[%c4_182, %c0_183] : memref<16x32xf32, #tpu.memory_space<vmem>>, vector<2x32xf32>
    tpu.vector_store %arg10[%c4_182, %c0_183], %303 {strides = array<i32>} : memref<16x32xf32, #tpu.memory_space<vmem>>, vector<2x32xf32>,
    %c6_184 = arith.constant 6 : index
    %c0_185 = arith.constant 0 : index
    %307 = vector.load %arg11[%c6_184, %c0_185] : memref<16x128xf32, #tpu.memory_space<vmem>>, vector<2x128xf32>
    %c0_186 = arith.constant 0 : index
    %c0_187 = arith.constant 0 : index
    %308 = vector.load %arg8[%c0_186, %c0_187] : memref<2x32xf32, #tpu.memory_space<vmem>>, vector<2x32xf32>
    %309 = arith.truncf %308 : vector<2x32xf32> to vector<2x32xbf16>
    %cst_188 = arith.constant dense<0.000000e+00> : vector<2x128xf32>
    %310 = tpu.matmul %309, %219, %cst_188 {dimension_numbers = #tpu.dot_dimension_numbers<[1], [0], [0], [1], [0, 0, 1, 1], [], []>} : vector<2x32xbf16>, vector<32x128xbf16>, vector<2x128xf32> -> vector<2x128xf32>
    %311 = arith.addf %307, %310 : vector<2x128xf32>
    %312 = vector.extract_strided_slice %311 {offsets = [0, 0], sizes = [2, 96], strides = [1, 1]} : vector<2x128xf32> to vector<2x96xf32>
    %313 = arith.negf %312 : vector<2x96xf32>
    %314 = math.exp %313 : vector<2x96xf32>
    %cst_189 = arith.constant 1.000000e+00 : f32
    %315 = vector.broadcast %cst_189 : f32 to vector<2x96xf32>
    %316 = arith.addf %315, %314 : vector<2x96xf32>
    %317 = arith.divf %315, %316 : vector<2x96xf32>
    %318 = vector.extract_strided_slice %317 {offsets = [0, 0], sizes = [2, 32], strides = [1, 1]} : vector<2x96xf32> to vector<2x32xf32>
    %319 = vector.extract_strided_slice %317 {offsets = [0, 32], sizes = [2, 32], strides = [1, 1]} : vector<2x96xf32> to vector<2x32xf32>
    %320 = vector.extract_strided_slice %317 {offsets = [0, 64], sizes = [2, 32], strides = [1, 1]} : vector<2x96xf32> to vector<2x32xf32>
    %321 = vector.extract_strided_slice %311 {offsets = [0, 96], sizes = [2, 32], strides = [1, 1]} : vector<2x128xf32> to vector<2x32xf32>
    %322 = math.tanh %321 : vector<2x32xf32>
    %c0_190 = arith.constant 0 : index
    %c0_191 = arith.constant 0 : index
    %323 = vector.load %arg9[%c0_190, %c0_191] : memref<2x32xf32, #tpu.memory_space<vmem>>, vector<2x32xf32>
    %324 = arith.mulf %319, %323 : vector<2x32xf32>
    %325 = arith.mulf %318, %322 : vector<2x32xf32>
    %326 = arith.addf %324, %325 : vector<2x32xf32>
    %327 = math.tanh %326 : vector<2x32xf32>
    %328 = arith.mulf %320, %327 : vector<2x32xf32>
    %c0_192 = arith.constant 0 : index
    %c0_193 = arith.constant 0 : index
    %329 = vector.load %arg9[%c0_192, %c0_193] : memref<2x32xf32, #tpu.memory_space<vmem>>, vector<2x32xf32>
    tpu.vector_store %arg9[%c0_192, %c0_193], %326 {strides = array<i32>} : memref<2x32xf32, #tpu.memory_space<vmem>>, vector<2x32xf32>,
    %c0_194 = arith.constant 0 : index
    %c0_195 = arith.constant 0 : index
    %330 = vector.load %arg8[%c0_194, %c0_195] : memref<2x32xf32, #tpu.memory_space<vmem>>, vector<2x32xf32>
    tpu.vector_store %arg8[%c0_194, %c0_195], %328 {strides = array<i32>} : memref<2x32xf32, #tpu.memory_space<vmem>>, vector<2x32xf32>,
    %c6_196 = arith.constant 6 : index
    %c0_197 = arith.constant 0 : index
    %331 = vector.load %arg10[%c6_196, %c0_197] : memref<16x32xf32, #tpu.memory_space<vmem>>, vector<2x32xf32>
    tpu.vector_store %arg10[%c6_196, %c0_197], %328 {strides = array<i32>} : memref<16x32xf32, #tpu.memory_space<vmem>>, vector<2x32xf32>,
    %c8_198 = arith.constant 8 : index
    %c0_199 = arith.constant 0 : index
    %332 = vector.load %arg11[%c8_198, %c0_199] : memref<16x128xf32, #tpu.memory_space<vmem>>, vector<2x128xf32>
    %c0_200 = arith.constant 0 : index
    %c0_201 = arith.constant 0 : index
    %333 = vector.load %arg8[%c0_200, %c0_201] : memref<2x32xf32, #tpu.memory_space<vmem>>, vector<2x32xf32>
    %334 = arith.truncf %333 : vector<2x32xf32> to vector<2x32xbf16>
    %cst_202 = arith.constant dense<0.000000e+00> : vector<2x128xf32>
    %335 = tpu.matmul %334, %219, %cst_202 {dimension_numbers = #tpu.dot_dimension_numbers<[1], [0], [0], [1], [0, 0, 1, 1], [], []>} : vector<2x32xbf16>, vector<32x128xbf16>, vector<2x128xf32> -> vector<2x128xf32>
    %336 = arith.addf %332, %335 : vector<2x128xf32>
    %337 = vector.extract_strided_slice %336 {offsets = [0, 0], sizes = [2, 96], strides = [1, 1]} : vector<2x128xf32> to vector<2x96xf32>
    %338 = arith.negf %337 : vector<2x96xf32>
    %339 = math.exp %338 : vector<2x96xf32>
    %cst_203 = arith.constant 1.000000e+00 : f32
    %340 = vector.broadcast %cst_203 : f32 to vector<2x96xf32>
    %341 = arith.addf %340, %339 : vector<2x96xf32>
    %342 = arith.divf %340, %341 : vector<2x96xf32>
    %343 = vector.extract_strided_slice %342 {offsets = [0, 0], sizes = [2, 32], strides = [1, 1]} : vector<2x96xf32> to vector<2x32xf32>
    %344 = vector.extract_strided_slice %342 {offsets = [0, 32], sizes = [2, 32], strides = [1, 1]} : vector<2x96xf32> to vector<2x32xf32>
    %345 = vector.extract_strided_slice %342 {offsets = [0, 64], sizes = [2, 32], strides = [1, 1]} : vector<2x96xf32> to vector<2x32xf32>
    %346 = vector.extract_strided_slice %336 {offsets = [0, 96], sizes = [2, 32], strides = [1, 1]} : vector<2x128xf32> to vector<2x32xf32>
    %347 = math.tanh %346 : vector<2x32xf32>
    %c0_204 = arith.constant 0 : index
    %c0_205 = arith.constant 0 : index
    %348 = vector.load %arg9[%c0_204, %c0_205] : memref<2x32xf32, #tpu.memory_space<vmem>>, vector<2x32xf32>
    %349 = arith.mulf %344, %348 : vector<2x32xf32>
    %350 = arith.mulf %343, %347 : vector<2x32xf32>
    %351 = arith.addf %349, %350 : vector<2x32xf32>
    %352 = math.tanh %351 : vector<2x32xf32>
    %353 = arith.mulf %345, %352 : vector<2x32xf32>
    %c0_206 = arith.constant 0 : index
    %c0_207 = arith.constant 0 : index
    %354 = vector.load %arg9[%c0_206, %c0_207] : memref<2x32xf32, #tpu.memory_space<vmem>>, vector<2x32xf32>
    tpu.vector_store %arg9[%c0_206, %c0_207], %351 {strides = array<i32>} : memref<2x32xf32, #tpu.memory_space<vmem>>, vector<2x32xf32>,
    %c0_208 = arith.constant 0 : index
    %c0_209 = arith.constant 0 : index
    %355 = vector.load %arg8[%c0_208, %c0_209] : memref<2x32xf32, #tpu.memory_space<vmem>>, vector<2x32xf32>
    tpu.vector_store %arg8[%c0_208, %c0_209], %353 {strides = array<i32>} : memref<2x32xf32, #tpu.memory_space<vmem>>, vector<2x32xf32>,
    %c8_210 = arith.constant 8 : index
    %c0_211 = arith.constant 0 : index
    %356 = vector.load %arg10[%c8_210, %c0_211] : memref<16x32xf32, #tpu.memory_space<vmem>>, vector<2x32xf32>
    tpu.vector_store %arg10[%c8_210, %c0_211], %353 {strides = array<i32>} : memref<16x32xf32, #tpu.memory_space<vmem>>, vector<2x32xf32>,
    %c10_212 = arith.constant 10 : index
    %c0_213 = arith.constant 0 : index
    %357 = vector.load %arg11[%c10_212, %c0_213] : memref<16x128xf32, #tpu.memory_space<vmem>>, vector<2x128xf32>
    %c0_214 = arith.constant 0 : index
    %c0_215 = arith.constant 0 : index
    %358 = vector.load %arg8[%c0_214, %c0_215] : memref<2x32xf32, #tpu.memory_space<vmem>>, vector<2x32xf32>
    %359 = arith.truncf %358 : vector<2x32xf32> to vector<2x32xbf16>
    %cst_216 = arith.constant dense<0.000000e+00> : vector<2x128xf32>
    %360 = tpu.matmul %359, %219, %cst_216 {dimension_numbers = #tpu.dot_dimension_numbers<[1], [0], [0], [1], [0, 0, 1, 1], [], []>} : vector<2x32xbf16>, vector<32x128xbf16>, vector<2x128xf32> -> vector<2x128xf32>
    %361 = arith.addf %357, %360 : vector<2x128xf32>
    %362 = vector.extract_strided_slice %361 {offsets = [0, 0], sizes = [2, 96], strides = [1, 1]} : vector<2x128xf32> to vector<2x96xf32>
    %363 = arith.negf %362 : vector<2x96xf32>
    %364 = math.exp %363 : vector<2x96xf32>
    %cst_217 = arith.constant 1.000000e+00 : f32
    %365 = vector.broadcast %cst_217 : f32 to vector<2x96xf32>
    %366 = arith.addf %365, %364 : vector<2x96xf32>
    %367 = arith.divf %365, %366 : vector<2x96xf32>
    %368 = vector.extract_strided_slice %367 {offsets = [0, 0], sizes = [2, 32], strides = [1, 1]} : vector<2x96xf32> to vector<2x32xf32>
    %369 = vector.extract_strided_slice %367 {offsets = [0, 32], sizes = [2, 32], strides = [1, 1]} : vector<2x96xf32> to vector<2x32xf32>
    %370 = vector.extract_strided_slice %367 {offsets = [0, 64], sizes = [2, 32], strides = [1, 1]} : vector<2x96xf32> to vector<2x32xf32>
    %371 = vector.extract_strided_slice %361 {offsets = [0, 96], sizes = [2, 32], strides = [1, 1]} : vector<2x128xf32> to vector<2x32xf32>
    %372 = math.tanh %371 : vector<2x32xf32>
    %c0_218 = arith.constant 0 : index
    %c0_219 = arith.constant 0 : index
    %373 = vector.load %arg9[%c0_218, %c0_219] : memref<2x32xf32, #tpu.memory_space<vmem>>, vector<2x32xf32>
    %374 = arith.mulf %369, %373 : vector<2x32xf32>
    %375 = arith.mulf %368, %372 : vector<2x32xf32>
    %376 = arith.addf %374, %375 : vector<2x32xf32>
    %377 = math.tanh %376 : vector<2x32xf32>
    %378 = arith.mulf %370, %377 : vector<2x32xf32>
    %c0_220 = arith.constant 0 : index
    %c0_221 = arith.constant 0 : index
    %379 = vector.load %arg9[%c0_220, %c0_221] : memref<2x32xf32, #tpu.memory_space<vmem>>, vector<2x32xf32>
    tpu.vector_store %arg9[%c0_220, %c0_221], %376 {strides = array<i32>} : memref<2x32xf32, #tpu.memory_space<vmem>>, vector<2x32xf32>,
    %c0_222 = arith.constant 0 : index
    %c0_223 = arith.constant 0 : index
    %380 = vector.load %arg8[%c0_222, %c0_223] : memref<2x32xf32, #tpu.memory_space<vmem>>, vector<2x32xf32>
    tpu.vector_store %arg8[%c0_222, %c0_223], %378 {strides = array<i32>} : memref<2x32xf32, #tpu.memory_space<vmem>>, vector<2x32xf32>,
    %c10_224 = arith.constant 10 : index
    %c0_225 = arith.constant 0 : index
    %381 = vector.load %arg10[%c10_224, %c0_225] : memref<16x32xf32, #tpu.memory_space<vmem>>, vector<2x32xf32>
    tpu.vector_store %arg10[%c10_224, %c0_225], %378 {strides = array<i32>} : memref<16x32xf32, #tpu.memory_space<vmem>>, vector<2x32xf32>,
    %c12_226 = arith.constant 12 : index
    %c0_227 = arith.constant 0 : index
    %382 = vector.load %arg11[%c12_226, %c0_227] : memref<16x128xf32, #tpu.memory_space<vmem>>, vector<2x128xf32>
    %c0_228 = arith.constant 0 : index
    %c0_229 = arith.constant 0 : index
    %383 = vector.load %arg8[%c0_228, %c0_229] : memref<2x32xf32, #tpu.memory_space<vmem>>, vector<2x32xf32>
    %384 = arith.truncf %383 : vector<2x32xf32> to vector<2x32xbf16>
    %cst_230 = arith.constant dense<0.000000e+00> : vector<2x128xf32>
    %385 = tpu.matmul %384, %219, %cst_230 {dimension_numbers = #tpu.dot_dimension_numbers<[1], [0], [0], [1], [0, 0, 1, 1], [], []>} : vector<2x32xbf16>, vector<32x128xbf16>, vector<2x128xf32> -> vector<2x128xf32>
    %386 = arith.addf %382, %385 : vector<2x128xf32>
    %387 = vector.extract_strided_slice %386 {offsets = [0, 0], sizes = [2, 96], strides = [1, 1]} : vector<2x128xf32> to vector<2x96xf32>
    %388 = arith.negf %387 : vector<2x96xf32>
    %389 = math.exp %388 : vector<2x96xf32>
    %cst_231 = arith.constant 1.000000e+00 : f32
    %390 = vector.broadcast %cst_231 : f32 to vector<2x96xf32>
    %391 = arith.addf %390, %389 : vector<2x96xf32>
    %392 = arith.divf %390, %391 : vector<2x96xf32>
    %393 = vector.extract_strided_slice %392 {offsets = [0, 0], sizes = [2, 32], strides = [1, 1]} : vector<2x96xf32> to vector<2x32xf32>
    %394 = vector.extract_strided_slice %392 {offsets = [0, 32], sizes = [2, 32], strides = [1, 1]} : vector<2x96xf32> to vector<2x32xf32>
    %395 = vector.extract_strided_slice %392 {offsets = [0, 64], sizes = [2, 32], strides = [1, 1]} : vector<2x96xf32> to vector<2x32xf32>
    %396 = vector.extract_strided_slice %386 {offsets = [0, 96], sizes = [2, 32], strides = [1, 1]} : vector<2x128xf32> to vector<2x32xf32>
    %397 = math.tanh %396 : vector<2x32xf32>
    %c0_232 = arith.constant 0 : index
    %c0_233 = arith.constant 0 : index
    %398 = vector.load %arg9[%c0_232, %c0_233] : memref<2x32xf32, #tpu.memory_space<vmem>>, vector<2x32xf32>
    %399 = arith.mulf %394, %398 : vector<2x32xf32>
    %400 = arith.mulf %393, %397 : vector<2x32xf32>
    %401 = arith.addf %399, %400 : vector<2x32xf32>
    %402 = math.tanh %401 : vector<2x32xf32>
    %403 = arith.mulf %395, %402 : vector<2x32xf32>
    %c0_234 = arith.constant 0 : index
    %c0_235 = arith.constant 0 : index
    %404 = vector.load %arg9[%c0_234, %c0_235] : memref<2x32xf32, #tpu.memory_space<vmem>>, vector<2x32xf32>
    tpu.vector_store %arg9[%c0_234, %c0_235], %401 {strides = array<i32>} : memref<2x32xf32, #tpu.memory_space<vmem>>, vector<2x32xf32>,
    %c0_236 = arith.constant 0 : index
    %c0_237 = arith.constant 0 : index
    %405 = vector.load %arg8[%c0_236, %c0_237] : memref<2x32xf32, #tpu.memory_space<vmem>>, vector<2x32xf32>
    tpu.vector_store %arg8[%c0_236, %c0_237], %403 {strides = array<i32>} : memref<2x32xf32, #tpu.memory_space<vmem>>, vector<2x32xf32>,
    %c12_238 = arith.constant 12 : index
    %c0_239 = arith.constant 0 : index
    %406 = vector.load %arg10[%c12_238, %c0_239] : memref<16x32xf32, #tpu.memory_space<vmem>>, vector<2x32xf32>
    tpu.vector_store %arg10[%c12_238, %c0_239], %403 {strides = array<i32>} : memref<16x32xf32, #tpu.memory_space<vmem>>, vector<2x32xf32>,
    %c14_240 = arith.constant 14 : index
    %c0_241 = arith.constant 0 : index
    %407 = vector.load %arg11[%c14_240, %c0_241] : memref<16x128xf32, #tpu.memory_space<vmem>>, vector<2x128xf32>
    %c0_242 = arith.constant 0 : index
    %c0_243 = arith.constant 0 : index
    %408 = vector.load %arg8[%c0_242, %c0_243] : memref<2x32xf32, #tpu.memory_space<vmem>>, vector<2x32xf32>
    %409 = arith.truncf %408 : vector<2x32xf32> to vector<2x32xbf16>
    %cst_244 = arith.constant dense<0.000000e+00> : vector<2x128xf32>
    %410 = tpu.matmul %409, %219, %cst_244 {dimension_numbers = #tpu.dot_dimension_numbers<[1], [0], [0], [1], [0, 0, 1, 1], [], []>} : vector<2x32xbf16>, vector<32x128xbf16>, vector<2x128xf32> -> vector<2x128xf32>
    %411 = arith.addf %407, %410 : vector<2x128xf32>
    %412 = vector.extract_strided_slice %411 {offsets = [0, 0], sizes = [2, 96], strides = [1, 1]} : vector<2x128xf32> to vector<2x96xf32>
    %413 = arith.negf %412 : vector<2x96xf32>
    %414 = math.exp %413 : vector<2x96xf32>
    %cst_245 = arith.constant 1.000000e+00 : f32
    %415 = vector.broadcast %cst_245 : f32 to vector<2x96xf32>
    %416 = arith.addf %415, %414 : vector<2x96xf32>
    %417 = arith.divf %415, %416 : vector<2x96xf32>
    %418 = vector.extract_strided_slice %417 {offsets = [0, 0], sizes = [2, 32], strides = [1, 1]} : vector<2x96xf32> to vector<2x32xf32>
    %419 = vector.extract_strided_slice %417 {offsets = [0, 32], sizes = [2, 32], strides = [1, 1]} : vector<2x96xf32> to vector<2x32xf32>
    %420 = vector.extract_strided_slice %417 {offsets = [0, 64], sizes = [2, 32], strides = [1, 1]} : vector<2x96xf32> to vector<2x32xf32>
    %421 = vector.extract_strided_slice %411 {offsets = [0, 96], sizes = [2, 32], strides = [1, 1]} : vector<2x128xf32> to vector<2x32xf32>
    %422 = math.tanh %421 : vector<2x32xf32>
    %c0_246 = arith.constant 0 : index
    %c0_247 = arith.constant 0 : index
    %423 = vector.load %arg9[%c0_246, %c0_247] : memref<2x32xf32, #tpu.memory_space<vmem>>, vector<2x32xf32>
    %424 = arith.mulf %419, %423 : vector<2x32xf32>
    %425 = arith.mulf %418, %422 : vector<2x32xf32>
    %426 = arith.addf %424, %425 : vector<2x32xf32>
    %427 = math.tanh %426 : vector<2x32xf32>
    %428 = arith.mulf %420, %427 : vector<2x32xf32>
    %c0_248 = arith.constant 0 : index
    %c0_249 = arith.constant 0 : index
    %429 = vector.load %arg9[%c0_248, %c0_249] : memref<2x32xf32, #tpu.memory_space<vmem>>, vector<2x32xf32>
    tpu.vector_store %arg9[%c0_248, %c0_249], %426 {strides = array<i32>} : memref<2x32xf32, #tpu.memory_space<vmem>>, vector<2x32xf32>,
    %c0_250 = arith.constant 0 : index
    %c0_251 = arith.constant 0 : index
    %430 = vector.load %arg8[%c0_250, %c0_251] : memref<2x32xf32, #tpu.memory_space<vmem>>, vector<2x32xf32>
    tpu.vector_store %arg8[%c0_250, %c0_251], %428 {strides = array<i32>} : memref<2x32xf32, #tpu.memory_space<vmem>>, vector<2x32xf32>,
    %c14_252 = arith.constant 14 : index
    %c0_253 = arith.constant 0 : index
    %431 = vector.load %arg10[%c14_252, %c0_253] : memref<16x32xf32, #tpu.memory_space<vmem>>, vector<2x32xf32>
    tpu.vector_store %arg10[%c14_252, %c0_253], %428 {strides = array<i32>} : memref<16x32xf32, #tpu.memory_space<vmem>>, vector<2x32xf32>,
    %c0_254 = arith.constant 0 : index
    %c0_255 = arith.constant 0 : index
    %432 = vector.load %arg10[%c0_254, %c0_255] : memref<16x32xf32, #tpu.memory_space<vmem>>, vector<16x32xf32>
    %c0_256 = arith.constant 0 : index
    %c0_257 = arith.constant 0 : index
    %433 = vector.load %arg5[%c0_256, %c0_257] : memref<1x32xf32, #tpu.memory_space<vmem>>, vector<1x32xf32>
    %434 = vector.broadcast %433 : vector<1x32xf32> to vector<16x32xf32>
    %435 = arith.mulf %432, %434 : vector<16x32xf32>
    %cst_258 = arith.constant dense<0.000000e+00> : vector<16xf32>
    %436 = vector.multi_reduction <add>, %435, %cst_258 [1] : vector<16x32xf32> to vector<16xf32>
    %437 = vector.shape_cast %436 : vector<16xf32> to vector<16x1xf32>
    %c0_259 = arith.constant 0 : index
    %c0_260 = arith.constant 0 : index
    %438 = vector.load %arg6[%c0_259, %c0_260] : memref<1x1xf32, #tpu.memory_space<vmem>>, vector<1x1xf32>
    %439 = vector.broadcast %438 : vector<1x1xf32> to vector<16x1xf32>
    %440 = arith.addf %437, %439 : vector<16x1xf32>
    %441 = arith.negf %440 : vector<16x1xf32>
    %442 = math.exp %441 : vector<16x1xf32>
    %cst_261 = arith.constant 1.000000e+00 : f32
    %443 = vector.broadcast %cst_261 : f32 to vector<16x1xf32>
    %444 = arith.addf %443, %442 : vector<16x1xf32>
    %445 = arith.divf %443, %444 : vector<16x1xf32>
    %446 = vector.extract_strided_slice %445 {offsets = [0, 0], sizes = [2, 1], strides = [1, 1]} : vector<16x1xf32> to vector<2x1xf32>
    %c0_262 = arith.constant 0 : index
    %c0_263 = arith.constant 0 : index
    %447 = vector.load %arg7[%c0_262, %c0_263] : memref<2x8xf32, #tpu.memory_space<vmem>>, vector<2x1xf32>
    tpu.vector_store %arg7[%c0_262, %c0_263], %446 {strides = array<i32>} : memref<2x8xf32, #tpu.memory_space<vmem>>, vector<2x1xf32>,
    %448 = vector.extract_strided_slice %445 {offsets = [2, 0], sizes = [2, 1], strides = [1, 1]} : vector<16x1xf32> to vector<2x1xf32>
    %c0_264 = arith.constant 0 : index
    %c1_265 = arith.constant 1 : index
    %449 = vector.load %arg7[%c0_264, %c1_265] : memref<2x8xf32, #tpu.memory_space<vmem>>, vector<2x1xf32>
    tpu.vector_store %arg7[%c0_264, %c1_265], %448 {strides = array<i32>} : memref<2x8xf32, #tpu.memory_space<vmem>>, vector<2x1xf32>,
    %450 = vector.extract_strided_slice %445 {offsets = [4, 0], sizes = [2, 1], strides = [1, 1]} : vector<16x1xf32> to vector<2x1xf32>
    %c0_266 = arith.constant 0 : index
    %c2_267 = arith.constant 2 : index
    %451 = vector.load %arg7[%c0_266, %c2_267] : memref<2x8xf32, #tpu.memory_space<vmem>>, vector<2x1xf32>
    tpu.vector_store %arg7[%c0_266, %c2_267], %450 {strides = array<i32>} : memref<2x8xf32, #tpu.memory_space<vmem>>, vector<2x1xf32>,
    %452 = vector.extract_strided_slice %445 {offsets = [6, 0], sizes = [2, 1], strides = [1, 1]} : vector<16x1xf32> to vector<2x1xf32>
    %c0_268 = arith.constant 0 : index
    %c3 = arith.constant 3 : index
    %453 = vector.load %arg7[%c0_268, %c3] : memref<2x8xf32, #tpu.memory_space<vmem>>, vector<2x1xf32>
    tpu.vector_store %arg7[%c0_268, %c3], %452 {strides = array<i32>} : memref<2x8xf32, #tpu.memory_space<vmem>>, vector<2x1xf32>,
    %454 = vector.extract_strided_slice %445 {offsets = [8, 0], sizes = [2, 1], strides = [1, 1]} : vector<16x1xf32> to vector<2x1xf32>
    %c0_269 = arith.constant 0 : index
    %c4_270 = arith.constant 4 : index
    %455 = vector.load %arg7[%c0_269, %c4_270] : memref<2x8xf32, #tpu.memory_space<vmem>>, vector<2x1xf32>
    tpu.vector_store %arg7[%c0_269, %c4_270], %454 {strides = array<i32>} : memref<2x8xf32, #tpu.memory_space<vmem>>, vector<2x1xf32>,
    %456 = vector.extract_strided_slice %445 {offsets = [10, 0], sizes = [2, 1], strides = [1, 1]} : vector<16x1xf32> to vector<2x1xf32>
    %c0_271 = arith.constant 0 : index
    %c5 = arith.constant 5 : index
    %457 = vector.load %arg7[%c0_271, %c5] : memref<2x8xf32, #tpu.memory_space<vmem>>, vector<2x1xf32>
    tpu.vector_store %arg7[%c0_271, %c5], %456 {strides = array<i32>} : memref<2x8xf32, #tpu.memory_space<vmem>>, vector<2x1xf32>,
    %458 = vector.extract_strided_slice %445 {offsets = [12, 0], sizes = [2, 1], strides = [1, 1]} : vector<16x1xf32> to vector<2x1xf32>
    %c0_272 = arith.constant 0 : index
    %c6_273 = arith.constant 6 : index
    %459 = vector.load %arg7[%c0_272, %c6_273] : memref<2x8xf32, #tpu.memory_space<vmem>>, vector<2x1xf32>
    tpu.vector_store %arg7[%c0_272, %c6_273], %458 {strides = array<i32>} : memref<2x8xf32, #tpu.memory_space<vmem>>, vector<2x1xf32>,
    %460 = vector.extract_strided_slice %445 {offsets = [14, 0], sizes = [2, 1], strides = [1, 1]} : vector<16x1xf32> to vector<2x1xf32>
    %c0_274 = arith.constant 0 : index
    %c7 = arith.constant 7 : index
    %461 = vector.load %arg7[%c0_274, %c7] : memref<2x8xf32, #tpu.memory_space<vmem>>, vector<2x1xf32>
    tpu.vector_store %arg7[%c0_274, %c7], %460 {strides = array<i32>} : memref<2x8xf32, #tpu.memory_space<vmem>>, vector<2x1xf32>,
    return
  }
  func.func @transform_0(%arg0: i32) -> (i32, i32) {
    %c0_i32 = arith.constant 0 : i32
    %c0_i32_0 = arith.constant 0 : i32
    return %arg0, %c0_i32 : i32, i32
  }
  func.func @transform_1(%arg0: i32) -> (i32, i32, i32) {
    %c0_i32 = arith.constant 0 : i32
    %c0_i32_0 = arith.constant 0 : i32
    %c0_i32_1 = arith.constant 0 : i32
    %c0_i32_2 = arith.constant 0 : i32
    return %c0_i32, %c0_i32_0, %c0_i32_1 : i32, i32, i32
  }
  func.func @transform_2(%arg0: i32) -> (i32, i32, i32) {
    %c0_i32 = arith.constant 0 : i32
    %c0_i32_0 = arith.constant 0 : i32
    %c0_i32_1 = arith.constant 0 : i32
    %c0_i32_2 = arith.constant 0 : i32
    return %c0_i32, %c0_i32_0, %c0_i32_1 : i32, i32, i32
  }
  func.func @transform_3(%arg0: i32) -> (i32, i32, i32) {
    %c0_i32 = arith.constant 0 : i32
    %c0_i32_0 = arith.constant 0 : i32
    %c0_i32_1 = arith.constant 0 : i32
    %c0_i32_2 = arith.constant 0 : i32
    return %c0_i32, %c0_i32_0, %c0_i32_1 : i32, i32, i32
  }
  func.func @transform_4(%arg0: i32) -> (i32, i32) {
    %c0_i32 = arith.constant 0 : i32
    %c0_i32_0 = arith.constant 0 : i32
    %c0_i32_1 = arith.constant 0 : i32
    return %c0_i32, %c0_i32_0 : i32, i32
  }
  func.func @transform_5(%arg0: i32) -> (i32, i32) {
    %c0_i32 = arith.constant 0 : i32
    %c0_i32_0 = arith.constant 0 : i32
    %c0_i32_1 = arith.constant 0 : i32
    return %c0_i32, %c0_i32_0 : i32, i32
  }
  func.func @transform_6(%arg0: i32) -> (i32, i32) {
    %c0_i32 = arith.constant 0 : i32
    %c0_i32_0 = arith.constant 0 : i32
    return %arg0, %c0_i32 : i32, i32
  }
}

module attributes {stable_mosaic.version = 11 : i64} {
  func.func @_embed_qkv_kernel(%arg0: i32, %arg1: memref<16x50xf32, #tpu.memory_space<vmem>>, %arg2: memref<16x3xf32, #tpu.memory_space<vmem>>, %arg3: memref<50x16xbf16, #tpu.memory_space<vmem>>, %arg4: memref<1x16xf32, #tpu.memory_space<vmem>>, %arg5: memref<1x16xf32, #tpu.memory_space<vmem>>, %arg6: memref<1x16xf32, #tpu.memory_space<vmem>>, %arg7: memref<3x16xbf16, #tpu.memory_space<vmem>>, %arg8: memref<1x16xf32, #tpu.memory_space<vmem>>, %arg9: memref<1x16xf32, #tpu.memory_space<vmem>>, %arg10: memref<1x16xf32, #tpu.memory_space<vmem>>, %arg11: memref<32x96xbf16, #tpu.memory_space<vmem>>, %arg12: memref<1x96xf32, #tpu.memory_space<vmem>>, %arg13: memref<16x32xf32, #tpu.memory_space<vmem>>, %arg14: memref<16x96xf32, #tpu.memory_space<vmem>>) attributes {dimension_semantics = [#tpu.dimension_semantics<parallel>], iteration_bounds = array<i64: 1>, scalar_prefetch = 0 : i64, scratch_operands = 0 : i64, tpu.core_type = #tpu.core_type<tc>, window_params = [{transform_indices = @transform_0, window_bounds = array<i64: 16, 50>}, {transform_indices = @transform_1, window_bounds = array<i64: 16, 3>}, {pipeline_mode = #tpu.pipeline_mode<synchronous>, transform_indices = @transform_2, window_bounds = array<i64: 50, 16>}, {pipeline_mode = #tpu.pipeline_mode<synchronous>, transform_indices = @transform_3, window_bounds = array<i64: 1, 16>}, {pipeline_mode = #tpu.pipeline_mode<synchronous>, transform_indices = @transform_4, window_bounds = array<i64: 1, 16>}, {pipeline_mode = #tpu.pipeline_mode<synchronous>, transform_indices = @transform_5, window_bounds = array<i64: 1, 16>}, {pipeline_mode = #tpu.pipeline_mode<synchronous>, transform_indices = @transform_6, window_bounds = array<i64: 3, 16>}, {pipeline_mode = #tpu.pipeline_mode<synchronous>, transform_indices = @transform_7, window_bounds = array<i64: 1, 16>}, {pipeline_mode = #tpu.pipeline_mode<synchronous>, transform_indices = @transform_8, window_bounds = array<i64: 1, 16>}, {pipeline_mode = #tpu.pipeline_mode<synchronous>, transform_indices = @transform_9, window_bounds = array<i64: 1, 16>}, {pipeline_mode = #tpu.pipeline_mode<synchronous>, transform_indices = @transform_10, window_bounds = array<i64: 32, 96>}, {pipeline_mode = #tpu.pipeline_mode<synchronous>, transform_indices = @transform_11, window_bounds = array<i64: 1, 96>}, {transform_indices = @transform_12, window_bounds = array<i64: 16, 32>}, {transform_indices = @transform_13, window_bounds = array<i64: 16, 96>}]} {
    %c0 = arith.constant 0 : index
    %c0_0 = arith.constant 0 : index
    %0 = vector.load %arg1[%c0, %c0_0] : memref<16x50xf32, #tpu.memory_space<vmem>>, vector<16x50xf32>
    %1 = arith.truncf %0 : vector<16x50xf32> to vector<16x50xbf16>
    %c0_1 = arith.constant 0 : index
    %c0_2 = arith.constant 0 : index
    %2 = vector.load %arg3[%c0_1, %c0_2] : memref<50x16xbf16, #tpu.memory_space<vmem>>, vector<50x16xbf16>
    %cst = arith.constant dense<0.000000e+00> : vector<16x16xf32>
    %3 = tpu.matmul %1, %2, %cst {dimension_numbers = #tpu.dot_dimension_numbers<[1], [0], [0], [1], [0, 0, 1, 1], [], []>} : vector<16x50xbf16>, vector<50x16xbf16>, vector<16x16xf32> -> vector<16x16xf32>
    %c0_3 = arith.constant 0 : index
    %c0_4 = arith.constant 0 : index
    %4 = vector.load %arg4[%c0_3, %c0_4] : memref<1x16xf32, #tpu.memory_space<vmem>>, vector<1x16xf32>
    %5 = vector.broadcast %4 : vector<1x16xf32> to vector<16x16xf32>
    %6 = arith.addf %3, %5 : vector<16x16xf32>
    %c0_5 = arith.constant 0 : index
    %c0_6 = arith.constant 0 : index
    %7 = vector.load %arg5[%c0_5, %c0_6] : memref<1x16xf32, #tpu.memory_space<vmem>>, vector<1x16xf32>
    %c0_7 = arith.constant 0 : index
    %c0_8 = arith.constant 0 : index
    %8 = vector.load %arg6[%c0_7, %c0_8] : memref<1x16xf32, #tpu.memory_space<vmem>>, vector<1x16xf32>
    %cst_9 = arith.constant dense<0.000000e+00> : vector<16xf32>
    %9 = vector.multi_reduction <add>, %6, %cst_9 [1] : vector<16x16xf32> to vector<16xf32>
    %10 = vector.shape_cast %9 : vector<16xf32> to vector<16x1xf32>
    %cst_10 = arith.constant 1.600000e+01 : f32
    %11 = vector.broadcast %cst_10 : f32 to vector<16x1xf32>
    %12 = arith.divf %10, %11 : vector<16x1xf32>
    %13 = vector.broadcast %12 : vector<16x1xf32> to vector<16x16xf32>
    %14 = arith.subf %6, %13 : vector<16x16xf32>
    %15 = arith.mulf %14, %14 : vector<16x16xf32>
    %cst_11 = arith.constant dense<0.000000e+00> : vector<16xf32>
    %16 = vector.multi_reduction <add>, %15, %cst_11 [1] : vector<16x16xf32> to vector<16xf32>
    %17 = vector.shape_cast %16 : vector<16xf32> to vector<16x1xf32>
    %cst_12 = arith.constant 1.600000e+01 : f32
    %18 = vector.broadcast %cst_12 : f32 to vector<16x1xf32>
    %19 = arith.divf %17, %18 : vector<16x1xf32>
    %20 = vector.broadcast %12 : vector<16x1xf32> to vector<16x16xf32>
    %21 = arith.subf %6, %20 : vector<16x16xf32>
    %cst_13 = arith.constant 9.99999974E-6 : f32
    %22 = vector.broadcast %cst_13 : f32 to vector<16x1xf32>
    %23 = arith.addf %19, %22 : vector<16x1xf32>
    %24 = math.rsqrt %23 : vector<16x1xf32>
    %25 = vector.broadcast %24 : vector<16x1xf32> to vector<16x16xf32>
    %26 = arith.mulf %21, %25 : vector<16x16xf32>
    %27 = vector.broadcast %7 : vector<1x16xf32> to vector<16x16xf32>
    %28 = arith.mulf %26, %27 : vector<16x16xf32>
    %29 = vector.broadcast %8 : vector<1x16xf32> to vector<16x16xf32>
    %30 = arith.addf %28, %29 : vector<16x16xf32>
    %c0_14 = arith.constant 0 : index
    %c0_15 = arith.constant 0 : index
    %31 = vector.load %arg2[%c0_14, %c0_15] : memref<16x3xf32, #tpu.memory_space<vmem>>, vector<16x3xf32>
    %32 = arith.truncf %31 : vector<16x3xf32> to vector<16x3xbf16>
    %c0_16 = arith.constant 0 : index
    %c0_17 = arith.constant 0 : index
    %33 = vector.load %arg7[%c0_16, %c0_17] : memref<3x16xbf16, #tpu.memory_space<vmem>>, vector<3x16xbf16>
    %cst_18 = arith.constant dense<0.000000e+00> : vector<16x16xf32>
    %34 = tpu.matmul %32, %33, %cst_18 {dimension_numbers = #tpu.dot_dimension_numbers<[1], [0], [0], [1], [0, 0, 1, 1], [], []>} : vector<16x3xbf16>, vector<3x16xbf16>, vector<16x16xf32> -> vector<16x16xf32>
    %c0_19 = arith.constant 0 : index
    %c0_20 = arith.constant 0 : index
    %35 = vector.load %arg8[%c0_19, %c0_20] : memref<1x16xf32, #tpu.memory_space<vmem>>, vector<1x16xf32>
    %36 = vector.broadcast %35 : vector<1x16xf32> to vector<16x16xf32>
    %37 = arith.addf %34, %36 : vector<16x16xf32>
    %c0_21 = arith.constant 0 : index
    %c0_22 = arith.constant 0 : index
    %38 = vector.load %arg9[%c0_21, %c0_22] : memref<1x16xf32, #tpu.memory_space<vmem>>, vector<1x16xf32>
    %c0_23 = arith.constant 0 : index
    %c0_24 = arith.constant 0 : index
    %39 = vector.load %arg10[%c0_23, %c0_24] : memref<1x16xf32, #tpu.memory_space<vmem>>, vector<1x16xf32>
    %cst_25 = arith.constant dense<0.000000e+00> : vector<16xf32>
    %40 = vector.multi_reduction <add>, %37, %cst_25 [1] : vector<16x16xf32> to vector<16xf32>
    %41 = vector.shape_cast %40 : vector<16xf32> to vector<16x1xf32>
    %cst_26 = arith.constant 1.600000e+01 : f32
    %42 = vector.broadcast %cst_26 : f32 to vector<16x1xf32>
    %43 = arith.divf %41, %42 : vector<16x1xf32>
    %44 = vector.broadcast %43 : vector<16x1xf32> to vector<16x16xf32>
    %45 = arith.subf %37, %44 : vector<16x16xf32>
    %46 = arith.mulf %45, %45 : vector<16x16xf32>
    %cst_27 = arith.constant dense<0.000000e+00> : vector<16xf32>
    %47 = vector.multi_reduction <add>, %46, %cst_27 [1] : vector<16x16xf32> to vector<16xf32>
    %48 = vector.shape_cast %47 : vector<16xf32> to vector<16x1xf32>
    %cst_28 = arith.constant 1.600000e+01 : f32
    %49 = vector.broadcast %cst_28 : f32 to vector<16x1xf32>
    %50 = arith.divf %48, %49 : vector<16x1xf32>
    %51 = vector.broadcast %43 : vector<16x1xf32> to vector<16x16xf32>
    %52 = arith.subf %37, %51 : vector<16x16xf32>
    %cst_29 = arith.constant 9.99999974E-6 : f32
    %53 = vector.broadcast %cst_29 : f32 to vector<16x1xf32>
    %54 = arith.addf %50, %53 : vector<16x1xf32>
    %55 = math.rsqrt %54 : vector<16x1xf32>
    %56 = vector.broadcast %55 : vector<16x1xf32> to vector<16x16xf32>
    %57 = arith.mulf %52, %56 : vector<16x16xf32>
    %58 = vector.broadcast %38 : vector<1x16xf32> to vector<16x16xf32>
    %59 = arith.mulf %57, %58 : vector<16x16xf32>
    %60 = vector.broadcast %39 : vector<1x16xf32> to vector<16x16xf32>
    %61 = arith.addf %59, %60 : vector<16x16xf32>
    %62 = tpu.concatenate %30, %61 in 1 : vector<16x16xf32>, vector<16x16xf32> -> vector<16x32xf32>
    %c0_30 = arith.constant 0 : index
    %c0_31 = arith.constant 0 : index
    %63 = vector.load %arg13[%c0_30, %c0_31] : memref<16x32xf32, #tpu.memory_space<vmem>>, vector<16x32xf32>
    tpu.vector_store %arg13[%c0_30, %c0_31], %62 {strides = array<i32>} : memref<16x32xf32, #tpu.memory_space<vmem>>, vector<16x32xf32>,
    %64 = arith.truncf %62 : vector<16x32xf32> to vector<16x32xbf16>
    %c0_32 = arith.constant 0 : index
    %c0_33 = arith.constant 0 : index
    %65 = vector.load %arg11[%c0_32, %c0_33] : memref<32x96xbf16, #tpu.memory_space<vmem>>, vector<32x96xbf16>
    %cst_34 = arith.constant dense<0.000000e+00> : vector<16x96xf32>
    %66 = tpu.matmul %64, %65, %cst_34 {dimension_numbers = #tpu.dot_dimension_numbers<[1], [0], [0], [1], [0, 0, 1, 1], [], []>} : vector<16x32xbf16>, vector<32x96xbf16>, vector<16x96xf32> -> vector<16x96xf32>
    %c0_35 = arith.constant 0 : index
    %c0_36 = arith.constant 0 : index
    %67 = vector.load %arg12[%c0_35, %c0_36] : memref<1x96xf32, #tpu.memory_space<vmem>>, vector<1x96xf32>
    %68 = vector.broadcast %67 : vector<1x96xf32> to vector<16x96xf32>
    %69 = arith.addf %66, %68 : vector<16x96xf32>
    %c0_37 = arith.constant 0 : index
    %c0_38 = arith.constant 0 : index
    %70 = vector.load %arg14[%c0_37, %c0_38] : memref<16x96xf32, #tpu.memory_space<vmem>>, vector<16x96xf32>
    tpu.vector_store %arg14[%c0_37, %c0_38], %69 {strides = array<i32>} : memref<16x96xf32, #tpu.memory_space<vmem>>, vector<16x96xf32>,
    return
  }
  func.func @transform_0(%arg0: i32) -> (i32, i32) {
    %c0_i32 = arith.constant 0 : i32
    %c0_i32_0 = arith.constant 0 : i32
    return %arg0, %c0_i32 : i32, i32
  }
  func.func @transform_1(%arg0: i32) -> (i32, i32) {
    %c0_i32 = arith.constant 0 : i32
    %c0_i32_0 = arith.constant 0 : i32
    return %arg0, %c0_i32 : i32, i32
  }
  func.func @transform_2(%arg0: i32) -> (i32, i32) {
    %c0_i32 = arith.constant 0 : i32
    %c0_i32_0 = arith.constant 0 : i32
    %c0_i32_1 = arith.constant 0 : i32
    return %c0_i32, %c0_i32_0 : i32, i32
  }
  func.func @transform_3(%arg0: i32) -> (i32, i32) {
    %c0_i32 = arith.constant 0 : i32
    %c0_i32_0 = arith.constant 0 : i32
    %c0_i32_1 = arith.constant 0 : i32
    return %c0_i32, %c0_i32_0 : i32, i32
  }
  func.func @transform_4(%arg0: i32) -> (i32, i32) {
    %c0_i32 = arith.constant 0 : i32
    %c0_i32_0 = arith.constant 0 : i32
    %c0_i32_1 = arith.constant 0 : i32
    return %c0_i32, %c0_i32_0 : i32, i32
  }
  func.func @transform_5(%arg0: i32) -> (i32, i32) {
    %c0_i32 = arith.constant 0 : i32
    %c0_i32_0 = arith.constant 0 : i32
    %c0_i32_1 = arith.constant 0 : i32
    return %c0_i32, %c0_i32_0 : i32, i32
  }
  func.func @transform_6(%arg0: i32) -> (i32, i32) {
    %c0_i32 = arith.constant 0 : i32
    %c0_i32_0 = arith.constant 0 : i32
    %c0_i32_1 = arith.constant 0 : i32
    return %c0_i32, %c0_i32_0 : i32, i32
  }
  func.func @transform_7(%arg0: i32) -> (i32, i32) {
    %c0_i32 = arith.constant 0 : i32
    %c0_i32_0 = arith.constant 0 : i32
    %c0_i32_1 = arith.constant 0 : i32
    return %c0_i32, %c0_i32_0 : i32, i32
  }
  func.func @transform_8(%arg0: i32) -> (i32, i32) {
    %c0_i32 = arith.constant 0 : i32
    %c0_i32_0 = arith.constant 0 : i32
    %c0_i32_1 = arith.constant 0 : i32
    return %c0_i32, %c0_i32_0 : i32, i32
  }
  func.func @transform_9(%arg0: i32) -> (i32, i32) {
    %c0_i32 = arith.constant 0 : i32
    %c0_i32_0 = arith.constant 0 : i32
    %c0_i32_1 = arith.constant 0 : i32
    return %c0_i32, %c0_i32_0 : i32, i32
  }
  func.func @transform_10(%arg0: i32) -> (i32, i32) {
    %c0_i32 = arith.constant 0 : i32
    %c0_i32_0 = arith.constant 0 : i32
    %c0_i32_1 = arith.constant 0 : i32
    return %c0_i32, %c0_i32_0 : i32, i32
  }
  func.func @transform_11(%arg0: i32) -> (i32, i32) {
    %c0_i32 = arith.constant 0 : i32
    %c0_i32_0 = arith.constant 0 : i32
    %c0_i32_1 = arith.constant 0 : i32
    return %c0_i32, %c0_i32_0 : i32, i32
  }
  func.func @transform_12(%arg0: i32) -> (i32, i32) {
    %c0_i32 = arith.constant 0 : i32
    %c0_i32_0 = arith.constant 0 : i32
    return %arg0, %c0_i32 : i32, i32
  }
  func.func @transform_13(%arg0: i32) -> (i32, i32) {
    %c0_i32 = arith.constant 0 : i32
    %c0_i32_0 = arith.constant 0 : i32
    return %arg0, %c0_i32 : i32, i32
  }
}

module attributes {stable_mosaic.version = 11 : i64} {
  func.func @_attn_ffn_kernel(%arg0: i32, %arg1: memref<2x32xf32, #tpu.memory_space<vmem>>, %arg2: memref<16x32xf32, #tpu.memory_space<vmem>>, %arg3: memref<16x32xf32, #tpu.memory_space<vmem>>, %arg4: memref<16x32xf32, #tpu.memory_space<vmem>>, %arg5: memref<16x1xf32, #tpu.memory_space<vmem>>, %arg6: memref<32x4xf32, #tpu.memory_space<vmem>>, %arg7: memref<4x32xf32, #tpu.memory_space<vmem>>, %arg8: memref<32x32xbf16, #tpu.memory_space<vmem>>, %arg9: memref<1x32xf32, #tpu.memory_space<vmem>>, %arg10: memref<32x32xbf16, #tpu.memory_space<vmem>>, %arg11: memref<1x32xf32, #tpu.memory_space<vmem>>, %arg12: memref<32x32xbf16, #tpu.memory_space<vmem>>, %arg13: memref<1x32xf32, #tpu.memory_space<vmem>>, %arg14: memref<32x32xbf16, #tpu.memory_space<vmem>>, %arg15: memref<1x32xf32, #tpu.memory_space<vmem>>, %arg16: memref<1x32xf32, #tpu.memory_space<vmem>>, %arg17: memref<1x32xf32, #tpu.memory_space<vmem>>, %arg18: memref<32x32xbf16, #tpu.memory_space<vmem>>, %arg19: memref<1x32xf32, #tpu.memory_space<vmem>>, %arg20: memref<32x32xbf16, #tpu.memory_space<vmem>>, %arg21: memref<1x32xf32, #tpu.memory_space<vmem>>, %arg22: memref<1x32xf32, #tpu.memory_space<vmem>>, %arg23: memref<1x32xf32, #tpu.memory_space<vmem>>, %arg24: memref<16x32xf32, #tpu.memory_space<vmem>>, %arg25: memref<16x32xf32, #tpu.memory_space<vmem>>) attributes {dimension_semantics = [#tpu.dimension_semantics<parallel>], iteration_bounds = array<i64: 1>, scalar_prefetch = 0 : i64, scratch_operands = 1 : i64, tpu.core_type = #tpu.core_type<tc>, window_params = [{transform_indices = @transform_0, window_bounds = array<i64: 2, 32>}, {transform_indices = @transform_1, window_bounds = array<i64: 16, 32>}, {transform_indices = @transform_2, window_bounds = array<i64: 16, 32>}, {transform_indices = @transform_3, window_bounds = array<i64: 16, 32>}, {transform_indices = @transform_4, window_bounds = array<i64: 16, 1>}, {pipeline_mode = #tpu.pipeline_mode<synchronous>, transform_indices = @transform_5, window_bounds = array<i64: 32, 4>}, {pipeline_mode = #tpu.pipeline_mode<synchronous>, transform_indices = @transform_6, window_bounds = array<i64: 4, 32>}, {pipeline_mode = #tpu.pipeline_mode<synchronous>, transform_indices = @transform_7, window_bounds = array<i64: 32, 32>}, {pipeline_mode = #tpu.pipeline_mode<synchronous>, transform_indices = @transform_8, window_bounds = array<i64: 1, 32>}, {pipeline_mode = #tpu.pipeline_mode<synchronous>, transform_indices = @transform_9, window_bounds = array<i64: 32, 32>}, {pipeline_mode = #tpu.pipeline_mode<synchronous>, transform_indices = @transform_10, window_bounds = array<i64: 1, 32>}, {pipeline_mode = #tpu.pipeline_mode<synchronous>, transform_indices = @transform_11, window_bounds = array<i64: 32, 32>}, {pipeline_mode = #tpu.pipeline_mode<synchronous>, transform_indices = @transform_12, window_bounds = array<i64: 1, 32>}, {pipeline_mode = #tpu.pipeline_mode<synchronous>, transform_indices = @transform_13, window_bounds = array<i64: 32, 32>}, {pipeline_mode = #tpu.pipeline_mode<synchronous>, transform_indices = @transform_14, window_bounds = array<i64: 1, 32>}, {pipeline_mode = #tpu.pipeline_mode<synchronous>, transform_indices = @transform_15, window_bounds = array<i64: 1, 32>}, {pipeline_mode = #tpu.pipeline_mode<synchronous>, transform_indices = @transform_16, window_bounds = array<i64: 1, 32>}, {pipeline_mode = #tpu.pipeline_mode<synchronous>, transform_indices = @transform_17, window_bounds = array<i64: 32, 32>}, {pipeline_mode = #tpu.pipeline_mode<synchronous>, transform_indices = @transform_18, window_bounds = array<i64: 1, 32>}, {pipeline_mode = #tpu.pipeline_mode<synchronous>, transform_indices = @transform_19, window_bounds = array<i64: 32, 32>}, {pipeline_mode = #tpu.pipeline_mode<synchronous>, transform_indices = @transform_20, window_bounds = array<i64: 1, 32>}, {pipeline_mode = #tpu.pipeline_mode<synchronous>, transform_indices = @transform_21, window_bounds = array<i64: 1, 32>}, {pipeline_mode = #tpu.pipeline_mode<synchronous>, transform_indices = @transform_22, window_bounds = array<i64: 1, 32>}, {transform_indices = @transform_23, window_bounds = array<i64: 16, 32>}]} {
    %c0 = arith.constant 0 : index
    %c0_0 = arith.constant 0 : index
    %0 = vector.load %arg1[%c0, %c0_0] : memref<2x32xf32, #tpu.memory_space<vmem>>, vector<2x32xf32>
    %1 = arith.truncf %0 : vector<2x32xf32> to vector<2x32xbf16>
    %c0_1 = arith.constant 0 : index
    %c0_2 = arith.constant 0 : index
    %2 = vector.load %arg8[%c0_1, %c0_2] : memref<32x32xbf16, #tpu.memory_space<vmem>>, vector<32x32xbf16>
    %cst = arith.constant dense<0.000000e+00> : vector<2x32xf32>
    %3 = tpu.matmul %1, %2, %cst {dimension_numbers = #tpu.dot_dimension_numbers<[1], [0], [0], [1], [0, 0, 1, 1], [], []>} : vector<2x32xbf16>, vector<32x32xbf16>, vector<2x32xf32> -> vector<2x32xf32>
    %c0_3 = arith.constant 0 : index
    %c0_4 = arith.constant 0 : index
    %4 = vector.load %arg9[%c0_3, %c0_4] : memref<1x32xf32, #tpu.memory_space<vmem>>, vector<1x32xf32>
    %5 = vector.broadcast %4 : vector<1x32xf32> to vector<2x32xf32>
    %6 = arith.addf %3, %5 : vector<2x32xf32>
    %cst_5 = arith.constant 0.353553385 : f32
    %7 = vector.broadcast %cst_5 : f32 to vector<2x32xf32>
    %8 = arith.mulf %6, %7 : vector<2x32xf32>
    %c0_6 = arith.constant 0 : index
    %c0_7 = arith.constant 0 : index
    %9 = vector.load %arg2[%c0_6, %c0_7] : memref<16x32xf32, #tpu.memory_space<vmem>>, vector<16x32xf32>
    %10 = arith.truncf %9 : vector<16x32xf32> to vector<16x32xbf16>
    %c0_8 = arith.constant 0 : index
    %c0_9 = arith.constant 0 : index
    %11 = vector.load %arg10[%c0_8, %c0_9] : memref<32x32xbf16, #tpu.memory_space<vmem>>, vector<32x32xbf16>
    %cst_10 = arith.constant dense<0.000000e+00> : vector<16x32xf32>
    %12 = tpu.matmul %10, %11, %cst_10 {dimension_numbers = #tpu.dot_dimension_numbers<[1], [0], [0], [1], [0, 0, 1, 1], [], []>} : vector<16x32xbf16>, vector<32x32xbf16>, vector<16x32xf32> -> vector<16x32xf32>
    %c0_11 = arith.constant 0 : index
    %c0_12 = arith.constant 0 : index
    %13 = vector.load %arg11[%c0_11, %c0_12] : memref<1x32xf32, #tpu.memory_space<vmem>>, vector<1x32xf32>
    %14 = vector.broadcast %13 : vector<1x32xf32> to vector<16x32xf32>
    %15 = arith.addf %12, %14 : vector<16x32xf32>
    %c0_13 = arith.constant 0 : index
    %c0_14 = arith.constant 0 : index
    %16 = vector.load %arg3[%c0_13, %c0_14] : memref<16x32xf32, #tpu.memory_space<vmem>>, vector<16x32xf32>
    %17 = arith.truncf %16 : vector<16x32xf32> to vector<16x32xbf16>
    %c0_15 = arith.constant 0 : index
    %c0_16 = arith.constant 0 : index
    %18 = vector.load %arg12[%c0_15, %c0_16] : memref<32x32xbf16, #tpu.memory_space<vmem>>, vector<32x32xbf16>
    %cst_17 = arith.constant dense<0.000000e+00> : vector<16x32xf32>
    %19 = tpu.matmul %17, %18, %cst_17 {dimension_numbers = #tpu.dot_dimension_numbers<[1], [0], [0], [1], [0, 0, 1, 1], [], []>} : vector<16x32xbf16>, vector<32x32xbf16>, vector<16x32xf32> -> vector<16x32xf32>
    %c0_18 = arith.constant 0 : index
    %c0_19 = arith.constant 0 : index
    %20 = vector.load %arg13[%c0_18, %c0_19] : memref<1x32xf32, #tpu.memory_space<vmem>>, vector<1x32xf32>
    %21 = vector.broadcast %20 : vector<1x32xf32> to vector<16x32xf32>
    %22 = arith.addf %19, %21 : vector<16x32xf32>
    %c0_20 = arith.constant 0 : index
    %c0_21 = arith.constant 0 : index
    %23 = vector.load %arg5[%c0_20, %c0_21] : memref<16x1xf32, #tpu.memory_space<vmem>>, vector<16x1xf32>
    %c0_22 = arith.constant 0 : index
    %c0_23 = arith.constant 0 : index
    %24 = vector.load %arg6[%c0_22, %c0_23] : memref<32x4xf32, #tpu.memory_space<vmem>>, vector<32x4xf32>
    %c0_24 = arith.constant 0 : index
    %c0_25 = arith.constant 0 : index
    %25 = vector.load %arg7[%c0_24, %c0_25] : memref<4x32xf32, #tpu.memory_space<vmem>>, vector<4x32xf32>
    %c0_26 = arith.constant 0 : index
    %c0_27 = arith.constant 0 : index
    %26 = vector.load %arg15[%c0_26, %c0_27] : memref<1x32xf32, #tpu.memory_space<vmem>>, vector<1x32xf32>
    %27 = vector.extract_strided_slice %15 {offsets = [0, 0], sizes = [8, 32], strides = [1, 1]} : vector<16x32xf32> to vector<8x32xf32>
    %28 = vector.extract_strided_slice %22 {offsets = [0, 0], sizes = [8, 32], strides = [1, 1]} : vector<16x32xf32> to vector<8x32xf32>
    %29 = vector.extract_strided_slice %8 {offsets = [0, 0], sizes = [1, 32], strides = [1, 1]} : vector<2x32xf32> to vector<1x32xf32>
    %30 = vector.broadcast %29 : vector<1x32xf32> to vector<8x32xf32>
    %31 = arith.mulf %27, %30 : vector<8x32xf32>
    %cst_28 = arith.constant dense<0.000000e+00> : vector<8x4xf32>
    %32 = tpu.matmul %31, %24, %cst_28 {dimension_numbers = #tpu.dot_dimension_numbers<[1], [0], [0], [1], [0, 0, 1, 1], [], []>} : vector<8x32xf32>, vector<32x4xf32>, vector<8x4xf32> -> vector<8x4xf32>
    %33 = vector.extract_strided_slice %23 {offsets = [0, 0], sizes = [8, 1], strides = [1, 1]} : vector<16x1xf32> to vector<8x1xf32>
    %34 = vector.broadcast %33 : vector<8x1xf32> to vector<8x4xf32>
    %35 = arith.addf %32, %34 : vector<8x4xf32>
    %cst_29 = arith.constant dense<0xFF800000> : vector<4xf32>
    %36 = vector.multi_reduction <maximumf>, %35, %cst_29 [0] : vector<8x4xf32> to vector<4xf32>
    %37 = vector.shape_cast %36 : vector<4xf32> to vector<1x4xf32>
    %38 = vector.broadcast %37 : vector<1x4xf32> to vector<8x4xf32>
    %39 = arith.subf %35, %38 : vector<8x4xf32>
    %40 = math.exp %39 : vector<8x4xf32>
    %cst_30 = arith.constant dense<0.000000e+00> : vector<4xf32>
    %41 = vector.multi_reduction <add>, %40, %cst_30 [0] : vector<8x4xf32> to vector<4xf32>
    %42 = vector.shape_cast %41 : vector<4xf32> to vector<1x4xf32>
    %43 = tpu.reciprocal %42 {approx = true} : vector<1x4xf32> -> vector<1x4xf32>
    %44 = vector.broadcast %43 : vector<1x4xf32> to vector<8x4xf32>
    %45 = arith.mulf %40, %44 : vector<8x4xf32>
    %cst_31 = arith.constant dense<0.000000e+00> : vector<8x32xf32>
    %46 = tpu.matmul %45, %25, %cst_31 {dimension_numbers = #tpu.dot_dimension_numbers<[1], [0], [0], [1], [0, 0, 1, 1], [], []>} : vector<8x4xf32>, vector<4x32xf32>, vector<8x32xf32> -> vector<8x32xf32>
    %47 = arith.mulf %46, %28 : vector<8x32xf32>
    %cst_32 = arith.constant dense<0.000000e+00> : vector<32xf32>
    %48 = vector.multi_reduction <add>, %47, %cst_32 [0] : vector<8x32xf32> to vector<32xf32>
    %49 = vector.shape_cast %48 : vector<32xf32> to vector<1x32xf32>
    %50 = arith.truncf %49 : vector<1x32xf32> to vector<1x32xbf16>
    %c0_33 = arith.constant 0 : index
    %c0_34 = arith.constant 0 : index
    %51 = vector.load %arg14[%c0_33, %c0_34] : memref<32x32xbf16, #tpu.memory_space<vmem>>, vector<32x32xbf16>
    %cst_35 = arith.constant dense<0.000000e+00> : vector<1x32xf32>
    %52 = tpu.matmul %50, %51, %cst_35 {dimension_numbers = #tpu.dot_dimension_numbers<[1], [0], [0], [1], [0, 0, 1, 1], [], []>} : vector<1x32xbf16>, vector<32x32xbf16>, vector<1x32xf32> -> vector<1x32xf32>
    %53 = arith.addf %52, %26 : vector<1x32xf32>
    %c0_36 = arith.constant 0 : index
    %c0_37 = arith.constant 0 : index
    %54 = vector.load %arg4[%c0_36, %c0_37] : memref<16x32xf32, #tpu.memory_space<vmem>>, vector<8x32xf32>
    %55 = vector.broadcast %53 : vector<1x32xf32> to vector<8x32xf32>
    %56 = arith.addf %54, %55 : vector<8x32xf32>
    %c0_38 = arith.constant 0 : index
    %c0_39 = arith.constant 0 : index
    %57 = vector.load %arg25[%c0_38, %c0_39] : memref<16x32xf32, #tpu.memory_space<vmem>>, vector<8x32xf32>
    tpu.vector_store %arg25[%c0_38, %c0_39], %56 {strides = array<i32>} : memref<16x32xf32, #tpu.memory_space<vmem>>, vector<8x32xf32>,
    %58 = vector.extract_strided_slice %15 {offsets = [8, 0], sizes = [8, 32], strides = [1, 1]} : vector<16x32xf32> to vector<8x32xf32>
    %59 = vector.extract_strided_slice %22 {offsets = [8, 0], sizes = [8, 32], strides = [1, 1]} : vector<16x32xf32> to vector<8x32xf32>
    %60 = vector.extract_strided_slice %8 {offsets = [1, 0], sizes = [1, 32], strides = [1, 1]} : vector<2x32xf32> to vector<1x32xf32>
    %61 = vector.broadcast %60 : vector<1x32xf32> to vector<8x32xf32>
    %62 = arith.mulf %58, %61 : vector<8x32xf32>
    %cst_40 = arith.constant dense<0.000000e+00> : vector<8x4xf32>
    %63 = tpu.matmul %62, %24, %cst_40 {dimension_numbers = #tpu.dot_dimension_numbers<[1], [0], [0], [1], [0, 0, 1, 1], [], []>} : vector<8x32xf32>, vector<32x4xf32>, vector<8x4xf32> -> vector<8x4xf32>
    %64 = vector.extract_strided_slice %23 {offsets = [8, 0], sizes = [8, 1], strides = [1, 1]} : vector<16x1xf32> to vector<8x1xf32>
    %65 = vector.broadcast %64 : vector<8x1xf32> to vector<8x4xf32>
    %66 = arith.addf %63, %65 : vector<8x4xf32>
    %cst_41 = arith.constant dense<0xFF800000> : vector<4xf32>
    %67 = vector.multi_reduction <maximumf>, %66, %cst_41 [0] : vector<8x4xf32> to vector<4xf32>
    %68 = vector.shape_cast %67 : vector<4xf32> to vector<1x4xf32>
    %69 = vector.broadcast %68 : vector<1x4xf32> to vector<8x4xf32>
    %70 = arith.subf %66, %69 : vector<8x4xf32>
    %71 = math.exp %70 : vector<8x4xf32>
    %cst_42 = arith.constant dense<0.000000e+00> : vector<4xf32>
    %72 = vector.multi_reduction <add>, %71, %cst_42 [0] : vector<8x4xf32> to vector<4xf32>
    %73 = vector.shape_cast %72 : vector<4xf32> to vector<1x4xf32>
    %74 = tpu.reciprocal %73 {approx = true} : vector<1x4xf32> -> vector<1x4xf32>
    %75 = vector.broadcast %74 : vector<1x4xf32> to vector<8x4xf32>
    %76 = arith.mulf %71, %75 : vector<8x4xf32>
    %cst_43 = arith.constant dense<0.000000e+00> : vector<8x32xf32>
    %77 = tpu.matmul %76, %25, %cst_43 {dimension_numbers = #tpu.dot_dimension_numbers<[1], [0], [0], [1], [0, 0, 1, 1], [], []>} : vector<8x4xf32>, vector<4x32xf32>, vector<8x32xf32> -> vector<8x32xf32>
    %78 = arith.mulf %77, %59 : vector<8x32xf32>
    %cst_44 = arith.constant dense<0.000000e+00> : vector<32xf32>
    %79 = vector.multi_reduction <add>, %78, %cst_44 [0] : vector<8x32xf32> to vector<32xf32>
    %80 = vector.shape_cast %79 : vector<32xf32> to vector<1x32xf32>
    %81 = arith.truncf %80 : vector<1x32xf32> to vector<1x32xbf16>
    %c0_45 = arith.constant 0 : index
    %c0_46 = arith.constant 0 : index
    %82 = vector.load %arg14[%c0_45, %c0_46] : memref<32x32xbf16, #tpu.memory_space<vmem>>, vector<32x32xbf16>
    %cst_47 = arith.constant dense<0.000000e+00> : vector<1x32xf32>
    %83 = tpu.matmul %81, %82, %cst_47 {dimension_numbers = #tpu.dot_dimension_numbers<[1], [0], [0], [1], [0, 0, 1, 1], [], []>} : vector<1x32xbf16>, vector<32x32xbf16>, vector<1x32xf32> -> vector<1x32xf32>
    %84 = arith.addf %83, %26 : vector<1x32xf32>
    %c8 = arith.constant 8 : index
    %c0_48 = arith.constant 0 : index
    %85 = vector.load %arg4[%c8, %c0_48] : memref<16x32xf32, #tpu.memory_space<vmem>>, vector<8x32xf32>
    %86 = vector.broadcast %84 : vector<1x32xf32> to vector<8x32xf32>
    %87 = arith.addf %85, %86 : vector<8x32xf32>
    %c8_49 = arith.constant 8 : index
    %c0_50 = arith.constant 0 : index
    %88 = vector.load %arg25[%c8_49, %c0_50] : memref<16x32xf32, #tpu.memory_space<vmem>>, vector<8x32xf32>
    tpu.vector_store %arg25[%c8_49, %c0_50], %87 {strides = array<i32>} : memref<16x32xf32, #tpu.memory_space<vmem>>, vector<8x32xf32>,
    %c0_51 = arith.constant 0 : index
    %c0_52 = arith.constant 0 : index
    %89 = vector.load %arg4[%c0_51, %c0_52] : memref<16x32xf32, #tpu.memory_space<vmem>>, vector<16x32xf32>
    %c0_53 = arith.constant 0 : index
    %c0_54 = arith.constant 0 : index
    %90 = vector.load %arg25[%c0_53, %c0_54] : memref<16x32xf32, #tpu.memory_space<vmem>>, vector<16x32xf32>
    %c0_55 = arith.constant 0 : index
    %c0_56 = arith.constant 0 : index
    %91 = vector.load %arg16[%c0_55, %c0_56] : memref<1x32xf32, #tpu.memory_space<vmem>>, vector<1x32xf32>
    %c0_57 = arith.constant 0 : index
    %c0_58 = arith.constant 0 : index
    %92 = vector.load %arg17[%c0_57, %c0_58] : memref<1x32xf32, #tpu.memory_space<vmem>>, vector<1x32xf32>
    %cst_59 = arith.constant dense<0.000000e+00> : vector<16xf32>
    %93 = vector.multi_reduction <add>, %90, %cst_59 [1] : vector<16x32xf32> to vector<16xf32>
    %94 = vector.shape_cast %93 : vector<16xf32> to vector<16x1xf32>
    %cst_60 = arith.constant 3.200000e+01 : f32
    %95 = vector.broadcast %cst_60 : f32 to vector<16x1xf32>
    %96 = arith.divf %94, %95 : vector<16x1xf32>
    %97 = vector.broadcast %96 : vector<16x1xf32> to vector<16x32xf32>
    %98 = arith.subf %90, %97 : vector<16x32xf32>
    %99 = arith.mulf %98, %98 : vector<16x32xf32>
    %cst_61 = arith.constant dense<0.000000e+00> : vector<16xf32>
    %100 = vector.multi_reduction <add>, %99, %cst_61 [1] : vector<16x32xf32> to vector<16xf32>
    %101 = vector.shape_cast %100 : vector<16xf32> to vector<16x1xf32>
    %cst_62 = arith.constant 3.200000e+01 : f32
    %102 = vector.broadcast %cst_62 : f32 to vector<16x1xf32>
    %103 = arith.divf %101, %102 : vector<16x1xf32>
    %104 = vector.broadcast %96 : vector<16x1xf32> to vector<16x32xf32>
    %105 = arith.subf %90, %104 : vector<16x32xf32>
    %cst_63 = arith.constant 9.99999974E-6 : f32
    %106 = vector.broadcast %cst_63 : f32 to vector<16x1xf32>
    %107 = arith.addf %103, %106 : vector<16x1xf32>
    %108 = math.rsqrt %107 : vector<16x1xf32>
    %109 = vector.broadcast %108 : vector<16x1xf32> to vector<16x32xf32>
    %110 = arith.mulf %105, %109 : vector<16x32xf32>
    %111 = vector.broadcast %91 : vector<1x32xf32> to vector<16x32xf32>
    %112 = arith.mulf %110, %111 : vector<16x32xf32>
    %113 = vector.broadcast %92 : vector<1x32xf32> to vector<16x32xf32>
    %114 = arith.addf %112, %113 : vector<16x32xf32>
    %115 = arith.truncf %114 : vector<16x32xf32> to vector<16x32xbf16>
    %c0_64 = arith.constant 0 : index
    %c0_65 = arith.constant 0 : index
    %116 = vector.load %arg18[%c0_64, %c0_65] : memref<32x32xbf16, #tpu.memory_space<vmem>>, vector<32x32xbf16>
    %cst_66 = arith.constant dense<0.000000e+00> : vector<16x32xf32>
    %117 = tpu.matmul %115, %116, %cst_66 {dimension_numbers = #tpu.dot_dimension_numbers<[1], [0], [0], [1], [0, 0, 1, 1], [], []>} : vector<16x32xbf16>, vector<32x32xbf16>, vector<16x32xf32> -> vector<16x32xf32>
    %c0_67 = arith.constant 0 : index
    %c0_68 = arith.constant 0 : index
    %118 = vector.load %arg19[%c0_67, %c0_68] : memref<1x32xf32, #tpu.memory_space<vmem>>, vector<1x32xf32>
    %119 = vector.broadcast %118 : vector<1x32xf32> to vector<16x32xf32>
    %120 = arith.addf %117, %119 : vector<16x32xf32>
    %cst_69 = arith.constant 0.000000e+00 : f32
    %121 = vector.broadcast %cst_69 : f32 to vector<16x32xf32>
    %122 = arith.maximumf %120, %121 : vector<16x32xf32>
    %123 = arith.truncf %122 : vector<16x32xf32> to vector<16x32xbf16>
    %c0_70 = arith.constant 0 : index
    %c0_71 = arith.constant 0 : index
    %124 = vector.load %arg20[%c0_70, %c0_71] : memref<32x32xbf16, #tpu.memory_space<vmem>>, vector<32x32xbf16>
    %cst_72 = arith.constant dense<0.000000e+00> : vector<16x32xf32>
    %125 = tpu.matmul %123, %124, %cst_72 {dimension_numbers = #tpu.dot_dimension_numbers<[1], [0], [0], [1], [0, 0, 1, 1], [], []>} : vector<16x32xbf16>, vector<32x32xbf16>, vector<16x32xf32> -> vector<16x32xf32>
    %c0_73 = arith.constant 0 : index
    %c0_74 = arith.constant 0 : index
    %126 = vector.load %arg21[%c0_73, %c0_74] : memref<1x32xf32, #tpu.memory_space<vmem>>, vector<1x32xf32>
    %127 = vector.broadcast %126 : vector<1x32xf32> to vector<16x32xf32>
    %128 = arith.addf %125, %127 : vector<16x32xf32>
    %129 = arith.addf %89, %128 : vector<16x32xf32>
    %c0_75 = arith.constant 0 : index
    %c0_76 = arith.constant 0 : index
    %130 = vector.load %arg22[%c0_75, %c0_76] : memref<1x32xf32, #tpu.memory_space<vmem>>, vector<1x32xf32>
    %c0_77 = arith.constant 0 : index
    %c0_78 = arith.constant 0 : index
    %131 = vector.load %arg23[%c0_77, %c0_78] : memref<1x32xf32, #tpu.memory_space<vmem>>, vector<1x32xf32>
    %cst_79 = arith.constant dense<0.000000e+00> : vector<16xf32>
    %132 = vector.multi_reduction <add>, %129, %cst_79 [1] : vector<16x32xf32> to vector<16xf32>
    %133 = vector.shape_cast %132 : vector<16xf32> to vector<16x1xf32>
    %cst_80 = arith.constant 3.200000e+01 : f32
    %134 = vector.broadcast %cst_80 : f32 to vector<16x1xf32>
    %135 = arith.divf %133, %134 : vector<16x1xf32>
    %136 = vector.broadcast %135 : vector<16x1xf32> to vector<16x32xf32>
    %137 = arith.subf %129, %136 : vector<16x32xf32>
    %138 = arith.mulf %137, %137 : vector<16x32xf32>
    %cst_81 = arith.constant dense<0.000000e+00> : vector<16xf32>
    %139 = vector.multi_reduction <add>, %138, %cst_81 [1] : vector<16x32xf32> to vector<16xf32>
    %140 = vector.shape_cast %139 : vector<16xf32> to vector<16x1xf32>
    %cst_82 = arith.constant 3.200000e+01 : f32
    %141 = vector.broadcast %cst_82 : f32 to vector<16x1xf32>
    %142 = arith.divf %140, %141 : vector<16x1xf32>
    %143 = vector.broadcast %135 : vector<16x1xf32> to vector<16x32xf32>
    %144 = arith.subf %129, %143 : vector<16x32xf32>
    %cst_83 = arith.constant 9.99999974E-6 : f32
    %145 = vector.broadcast %cst_83 : f32 to vector<16x1xf32>
    %146 = arith.addf %142, %145 : vector<16x1xf32>
    %147 = math.rsqrt %146 : vector<16x1xf32>
    %148 = vector.broadcast %147 : vector<16x1xf32> to vector<16x32xf32>
    %149 = arith.mulf %144, %148 : vector<16x32xf32>
    %150 = vector.broadcast %130 : vector<1x32xf32> to vector<16x32xf32>
    %151 = arith.mulf %149, %150 : vector<16x32xf32>
    %152 = vector.broadcast %131 : vector<1x32xf32> to vector<16x32xf32>
    %153 = arith.addf %151, %152 : vector<16x32xf32>
    %c0_84 = arith.constant 0 : index
    %c0_85 = arith.constant 0 : index
    %154 = vector.load %arg24[%c0_84, %c0_85] : memref<16x32xf32, #tpu.memory_space<vmem>>, vector<16x32xf32>
    tpu.vector_store %arg24[%c0_84, %c0_85], %153 {strides = array<i32>} : memref<16x32xf32, #tpu.memory_space<vmem>>, vector<16x32xf32>,
    return
  }
  func.func @transform_0(%arg0: i32) -> (i32, i32) {
    %c0_i32 = arith.constant 0 : i32
    %c0_i32_0 = arith.constant 0 : i32
    return %arg0, %c0_i32 : i32, i32
  }
  func.func @transform_1(%arg0: i32) -> (i32, i32) {
    %c0_i32 = arith.constant 0 : i32
    %c0_i32_0 = arith.constant 0 : i32
    return %arg0, %c0_i32 : i32, i32
  }
  func.func @transform_2(%arg0: i32) -> (i32, i32) {
    %c0_i32 = arith.constant 0 : i32
    %c0_i32_0 = arith.constant 0 : i32
    return %arg0, %c0_i32 : i32, i32
  }
  func.func @transform_3(%arg0: i32) -> (i32, i32) {
    %c0_i32 = arith.constant 0 : i32
    %c0_i32_0 = arith.constant 0 : i32
    return %arg0, %c0_i32 : i32, i32
  }
  func.func @transform_4(%arg0: i32) -> (i32, i32) {
    %c0_i32 = arith.constant 0 : i32
    %c0_i32_0 = arith.constant 0 : i32
    return %arg0, %c0_i32 : i32, i32
  }
  func.func @transform_5(%arg0: i32) -> (i32, i32) {
    %c0_i32 = arith.constant 0 : i32
    %c0_i32_0 = arith.constant 0 : i32
    %c0_i32_1 = arith.constant 0 : i32
    return %c0_i32, %c0_i32_0 : i32, i32
  }
  func.func @transform_6(%arg0: i32) -> (i32, i32) {
    %c0_i32 = arith.constant 0 : i32
    %c0_i32_0 = arith.constant 0 : i32
    %c0_i32_1 = arith.constant 0 : i32
    return %c0_i32, %c0_i32_0 : i32, i32
  }
  func.func @transform_7(%arg0: i32) -> (i32, i32) {
    %c0_i32 = arith.constant 0 : i32
    %c0_i32_0 = arith.constant 0 : i32
    %c0_i32_1 = arith.constant 0 : i32
    return %c0_i32, %c0_i32_0 : i32, i32
  }
  func.func @transform_8(%arg0: i32) -> (i32, i32) {
    %c0_i32 = arith.constant 0 : i32
    %c0_i32_0 = arith.constant 0 : i32
    %c0_i32_1 = arith.constant 0 : i32
    return %c0_i32, %c0_i32_0 : i32, i32
  }
  func.func @transform_9(%arg0: i32) -> (i32, i32) {
    %c0_i32 = arith.constant 0 : i32
    %c0_i32_0 = arith.constant 0 : i32
    %c0_i32_1 = arith.constant 0 : i32
    return %c0_i32, %c0_i32_0 : i32, i32
  }
  func.func @transform_10(%arg0: i32) -> (i32, i32) {
    %c0_i32 = arith.constant 0 : i32
    %c0_i32_0 = arith.constant 0 : i32
    %c0_i32_1 = arith.constant 0 : i32
    return %c0_i32, %c0_i32_0 : i32, i32
  }
  func.func @transform_11(%arg0: i32) -> (i32, i32) {
    %c0_i32 = arith.constant 0 : i32
    %c0_i32_0 = arith.constant 0 : i32
    %c0_i32_1 = arith.constant 0 : i32
    return %c0_i32, %c0_i32_0 : i32, i32
  }
  func.func @transform_12(%arg0: i32) -> (i32, i32) {
    %c0_i32 = arith.constant 0 : i32
    %c0_i32_0 = arith.constant 0 : i32
    %c0_i32_1 = arith.constant 0 : i32
    return %c0_i32, %c0_i32_0 : i32, i32
  }
  func.func @transform_13(%arg0: i32) -> (i32, i32) {
    %c0_i32 = arith.constant 0 : i32
    %c0_i32_0 = arith.constant 0 : i32
    %c0_i32_1 = arith.constant 0 : i32
    return %c0_i32, %c0_i32_0 : i32, i32
  }
  func.func @transform_14(%arg0: i32) -> (i32, i32) {
    %c0_i32 = arith.constant 0 : i32
    %c0_i32_0 = arith.constant 0 : i32
    %c0_i32_1 = arith.constant 0 : i32
    return %c0_i32, %c0_i32_0 : i32, i32
  }
  func.func @transform_15(%arg0: i32) -> (i32, i32) {
    %c0_i32 = arith.constant 0 : i32
    %c0_i32_0 = arith.constant 0 : i32
    %c0_i32_1 = arith.constant 0 : i32
    return %c0_i32, %c0_i32_0 : i32, i32
  }
  func.func @transform_16(%arg0: i32) -> (i32, i32) {
    %c0_i32 = arith.constant 0 : i32
    %c0_i32_0 = arith.constant 0 : i32
    %c0_i32_1 = arith.constant 0 : i32
    return %c0_i32, %c0_i32_0 : i32, i32
  }
  func.func @transform_17(%arg0: i32) -> (i32, i32) {
    %c0_i32 = arith.constant 0 : i32
    %c0_i32_0 = arith.constant 0 : i32
    %c0_i32_1 = arith.constant 0 : i32
    return %c0_i32, %c0_i32_0 : i32, i32
  }
  func.func @transform_18(%arg0: i32) -> (i32, i32) {
    %c0_i32 = arith.constant 0 : i32
    %c0_i32_0 = arith.constant 0 : i32
    %c0_i32_1 = arith.constant 0 : i32
    return %c0_i32, %c0_i32_0 : i32, i32
  }
  func.func @transform_19(%arg0: i32) -> (i32, i32) {
    %c0_i32 = arith.constant 0 : i32
    %c0_i32_0 = arith.constant 0 : i32
    %c0_i32_1 = arith.constant 0 : i32
    return %c0_i32, %c0_i32_0 : i32, i32
  }
  func.func @transform_20(%arg0: i32) -> (i32, i32) {
    %c0_i32 = arith.constant 0 : i32
    %c0_i32_0 = arith.constant 0 : i32
    %c0_i32_1 = arith.constant 0 : i32
    return %c0_i32, %c0_i32_0 : i32, i32
  }
  func.func @transform_21(%arg0: i32) -> (i32, i32) {
    %c0_i32 = arith.constant 0 : i32
    %c0_i32_0 = arith.constant 0 : i32
    %c0_i32_1 = arith.constant 0 : i32
    return %c0_i32, %c0_i32_0 : i32, i32
  }
  func.func @transform_22(%arg0: i32) -> (i32, i32) {
    %c0_i32 = arith.constant 0 : i32
    %c0_i32_0 = arith.constant 0 : i32
    %c0_i32_1 = arith.constant 0 : i32
    return %c0_i32, %c0_i32_0 : i32, i32
  }
  func.func @transform_23(%arg0: i32) -> (i32, i32) {
    %c0_i32 = arith.constant 0 : i32
    %c0_i32_0 = arith.constant 0 : i32
    return %arg0, %c0_i32 : i32, i32
  }
}

</mosaic_0001>

<bundles_post_ra>
// kernel: last_query_forward.3
= control target key start
LH: loop header
LB: loop body
LE: loop exit
PB: predicated region body
PF: predicated region fallthrough
CT: control target
= control target key end

     0   :  { %vm83_vm0 = vcmask 1040384   ;;  %vm177_vm1 = vcmask 1041408   ;;  %v363_v1 = vmov 65535   ;;  %vm173_vm2 = vcmask 23552   ;;  %s365_s28 = smov 16   ;;  %s537_s6 = inlined_call_operand.vmem [shape: bf16[3,16], index: 6, kind: input, shape index: {}]   ;;  %s538_s2 = inlined_call_operand.vmem [shape: bf16[50,16], index: 2, kind: input, shape index: {}]   ;;  %s539_s1 = inlined_call_operand.vmem [shape: f32[16,3], index: 1, kind: input, shape index: {}]   ;;  %s540_s7 = inlined_call_operand.vmem [shape: f32[1,16], index: 7, kind: input, shape index: {}]   ;;  %s541_s0 = inlined_call_operand.vmem [shape: f32[16,50], index: 0, kind: input, shape index: {}]   ;;  %s542_s3 = inlined_call_operand.vmem [shape: f32[1,16], index: 3, kind: input, shape index: {}]   ;;  %s543_s8 = inlined_call_operand.vmem [shape: f32[1,16], index: 8, kind: input, shape index: {}]   ;;  %s544_s9 = inlined_call_operand.vmem [shape: f32[1,16], index: 9, kind: input, shape index: {}]   ;;  %s545_s4 = inlined_call_operand.vmem [shape: f32[1,16], index: 4, kind: input, shape index: {}]   ;;  %s546_s5 = inlined_call_operand.vmem [shape: f32[1,16], index: 5, kind: input, shape index: {}]   ;;  %s547_s11 = inlined_call_operand.vmem [shape: f32[1,96], index: 11, kind: input, shape index: {}]   ;;  %s548_s10 = inlined_call_operand.vmem [shape: bf16[32,96], index: 10, kind: input, shape index: {}]   ;;  %s549_s12 = inlined_call_operand.vmem [shape: f32[16,32], index: 12, kind: output, shape index: {0}]   ;;  %s550_s13 = inlined_call_operand.vmem [shape: f32[16,96], index: 13, kind: output, shape index: {1}]  }
   0x1   :  { %v168_v0 = vld [vmem:[%s537_s6] sm:$0x3]  ;;  %v178_v2 = vsel %vm83_vm0, 4294967295, %v363_v1  ;;  %v53_v3 = vld [vmem:[%s538_s2 + $0x18] sm:$0x1]  ;;  %v166_v7 = vld [vmem:[%s539_s1 + $0x8] sm:$0xff] }
   0x2   :  { %v165_v4 = vld [vmem:[%s539_s1] sm:$0xff]  ;;  %v179_v5 = vsel %vm177_vm1, %v178_v2, 0  ;;  %v71_v6 = vunpack.c.l.b16 %v53_v3  ;;  %v340_v12 = vld [vmem:[%s538_s2 + $0x10] sm:$0xff]  ;;  %v339_v13 = vld [vmem:[%s538_s2 + $0x8] sm:$0xff]  ;;  %vm79_vm3 = vcmask 408576   ;;  %vm103_vm4 = vcmask 130048  }
   0x3   :  { %v181_v8 = vand.u32 %v179_v5, %v168_v0  ;;  %v167_v10 = vpack.c.bf16 %v166_v7, %v165_v4  ;;  %v338_v14 = vld [vmem:[%s538_s2] sm:$0xff]  ;;  %v45_v16 = vld [vmem:[%s541_s0 + $0x8] sm:$0xff]  ;;  %v364_v32 = vmov 16.0   ;;  %vm263_vm15 = vcmask 261120  }
   0x4   :  { %v75_v9 = vpack.c.b16 %v71_v6, %v71_v6  ;;  %v44_v15 = vld [vmem:[%s541_s0] sm:$0xff]  ;;  %353 = vrcp.f32 %v364_v32 }
   0x5   :  { %190 = vmatpush.bf16.msra.mxu1 %v181_v8  ;;  %v46_v17 = vpack.c.bf16 %v45_v16, %v44_v15  ;;  %v346_v18 = vld [vmem:[%s540_s7] ss:$0 sm:$0xff] }
   0x6   :  { %v85_v11 = vsel %vm83_vm0, %v75_v9, 0  ;;  %v347_v25 = vld [vmem:[%s542_s3] ss:$0 sm:$0xff] }
   0x7   :  { %91 = vmatpush.bf16.msra.mxu0 %v85_v11  ;;  %v348_v9 = vld [vmem:[%s543_s8] ss:$0 sm:$0xff] }
   0x8   :  { %328 = vmatmul.msk.bf16.vlgmr.msra.gmra.mxu1 %vm173_vm2, %v167_v10 }
   0xa   :  { %v354_v33 = vpop.eup %353 }
   0xb   :  { %92 = vmatpush.bf16.msra.mxu0 %v340_v12  ;;  %v111_v34 = vmul.f32 16.0, %v354_v33  ;;  %vm115_vm5 = vweird.f32 %v354_v33 }
   0xd   :  { %v112_v35 = vsub.f32 1.0, %v111_v34 }
   0xf   :  { %93 = vmatpush.bf16.msra.mxu0 %v339_v13  ;;  %v113_v36 = vmul.f32 %v354_v33, %v112_v35  ;;  %v349_v13 = vld [vmem:[%s544_s9] ss:$0 sm:$0xff] }
  0x11   :  { %v114_v37 = vadd.f32 %v354_v33, %v113_v36 }
  0x13   :  { %94 = vmatpush.bf16.msra.mxu0 %v338_v14  ;;  %v475_v38 = vsel %vm115_vm5, %v354_v33, %v114_v37 }
  0x16   :  { %327 = vmatmul.msk.bf16.vlgmr.msra.gmra.mxu0 %vm79_vm3, %v46_v17  ;;  %vm304_vm3 = vcmask 785408  }
  0x85   :  { %v192_v19 = vpop.f32.mrf.mxu1 }
  0x86   :  { %v193_v20 = vadd.f32 %v346_v18, %v192_v19 }
  0x88   :  { %v199_v21 = vsel %vm103_vm4, %v193_v20, 0.0 }
  0x89   :  { %200 = vadd.xlane.f32.xlu0 %v199_v21 }
  0x8d   :  { %v194_v22 = vpop.f32.mrf.mxu1 }
  0x8e   :  { %v195_v23 = vadd.f32 %v346_v18, %v194_v22 }
  0x90   :  { %v202_v24 = vsel %vm103_vm4, %v195_v23, 0.0 }
  0x91   :  { %203 = vadd.xlane.f32.xlu0 %v202_v24 }
  0x93   :  { %v96_v26 = vpop.f32.mrf.mxu0 }
  0x94   :  { %v97_v27 = vadd.f32 %v347_v25, %v96_v26 }
  0x96   :  { %v104_v28 = vsel %vm103_vm4, %v97_v27, 0.0 }
  0x97   :  { %105 = vadd.xlane.f32.xlu1 %v104_v28  ;;  %v342_v28 = vld [vmem:[%s548_s10 + $0x8] sm:$0xff] }
  0x98   :  { %296 = vmatpush.bf16.msra.mxu2 %v342_v28 }
  0x9b   :  { %v98_v29 = vpop.f32.mrf.mxu0 }
  0x9c   :  { %v99_v30 = vadd.f32 %v347_v25, %v98_v29 }
  0x9e   :  { %v107_v31 = vsel %vm103_vm4, %v99_v30, 0.0 }
  0x9f   :  { %108 = vadd.xlane.f32.xlu1 %v107_v31 }
  0xfc   :  { %v201_v39 = vpop.xlane.xlu0 %200 }
  0xfd   :  { %v205_v40 = vmul.f32 %v201_v39, %v475_v38  ;;  %v350_v39 = vld [vmem:[%s545_s4] ss:$0 sm:$0xff] }
  0xff   :  { %v207_v41 = vsub.f32 %v193_v20, %v205_v40  ;;  %v351_v40 = vld [vmem:[%s546_s5] ss:$0 sm:$0xff] }
 0x101   :  { %v209_v42 = vmul.f32 %v207_v41, %v207_v41 }
 0x103   :  { %v211_v43 = vsel %vm103_vm4, %v209_v42, 0.0 }
 0x104   :  { %212 = vadd.xlane.f32.xlu2 %v211_v43  ;;  %v204_v44 = vpop.xlane.xlu0 %203  ;;  %v341_v43 = vld [vmem:[%s548_s10] sm:$0xff] }
 0x105   :  { %v206_v45 = vmul.f32 %v204_v44, %v475_v38  ;;  %297 = vmatpush.bf16.msra.mxu2 %v341_v43 }
 0x107   :  { %v208_v46 = vsub.f32 %v195_v23, %v206_v45 }
 0x109   :  { %v210_v47 = vmul.f32 %v208_v46, %v208_v46 }
 0x10a   :  { %v106_v48 = vpop.xlane.xlu1 %105 }
 0x10b   :  { %v117_v49 = vmul.f32 %v475_v38, %v106_v48  ;;  %v214_v50 = vsel %vm103_vm4, %v210_v47, 0.0 }
 0x10c   :  { %215 = vadd.xlane.f32.xlu2 %v214_v50 }
 0x10d   :  { %v482_v51 = vsub.f32 %v97_v27, %v117_v49 }
 0x10f   :  { %v121_v52 = vmul.f32 %v482_v51, %v482_v51 }
 0x111   :  { %v123_v53 = vsel %vm103_vm4, %v121_v52, 0.0 }
 0x112   :  { %124 = vadd.xlane.f32.xlu0 %v123_v53  ;;  %v109_v54 = vpop.xlane.xlu1 %108 }
 0x113   :  { %v118_v55 = vmul.f32 %v475_v38, %v109_v54 }
 0x115   :  { %v488_v56 = vsub.f32 %v99_v30, %v118_v55 }
 0x117   :  { %v122_v57 = vmul.f32 %v488_v56, %v488_v56 }
 0x119   :  { %v126_v58 = vsel %vm103_vm4, %v122_v57, 0.0 }
 0x11a   :  { %127 = vadd.xlane.f32.xlu1 %v126_v58 }
 0x177   :  { %v213_v59 = vpop.xlane.xlu2 %212 }
 0x178   :  { %v217_v60 = vmul.f32 %v213_v59, %v475_v38  ;;  %v352_v59 = vld [vmem:[%s547_s11] ss:$0 sm:$0xff] }
 0x17a   :  { %v219_v61 = vadd.f32 1e-05, %v217_v60 }
 0x17c   :  { %355 = vrsqrt.f32 %v219_v61  ;;  %vm227_vm7 = vweird.f32 %v219_v61 }
 0x17f   :  { %v216_v62 = vpop.xlane.xlu2 %215 }
 0x180   :  { %v218_v63 = vmul.f32 %v216_v62, %v475_v38 }
 0x182   :  { %v356_v0 = vpop.eup %355  ;;  %v220_v1 = vadd.f32 1e-05, %v218_v63 }
 0x183   :  { %v222_v2 = vmul.f32 %v356_v0, %v219_v61  ;;  %vm228_vm6 = vweird.f32 %v356_v0 }
 0x184   :  { %357 = vrsqrt.f32 %v220_v1  ;;  %vm229_vm8 = vmor %vm227_vm7, %vm228_vm6  ;;  %vm237_vm10 = vweird.f32 %v220_v1 }
 0x185   :  { %v223_v3 = vmul.f32 %v356_v0, %v222_v2  ;;  %v125_v23 = vpop.xlane.xlu0 %124 }
 0x186   :  { %v129_v24 = vmul.f32 %v125_v23, %v475_v38 }
 0x187   :  { %v224_v4 = vmul.f32 0.5, %v223_v3 }
 0x188   :  { %v131_v25 = vadd.f32 1e-05, %v129_v24 }
 0x189   :  { %v225_v5 = vsub.f32 1.5, %v224_v4 }
 0x18a   :  { %v358_v6 = vpop.eup %357  ;;  %359 = vrsqrt.f32 %v131_v25  ;;  %vm139_vm13 = vweird.f32 %v131_v25 }
 0x18b   :  { %v226_v7 = vmul.f32 %v356_v0, %v225_v5  ;;  %v232_v8 = vmul.f32 %v358_v6, %v220_v1  ;;  %vm238_vm9 = vweird.f32 %v358_v6 }
 0x18c   :  { %vm239_vm11 = vmor %vm237_vm10, %vm238_vm9 }
 0x18d   :  { %v230_v10 = vsel %vm229_vm8, %v356_v0, %v226_v7  ;;  %v233_v11 = vmul.f32 %v358_v6, %v232_v8  ;;  %v128_v32 = vpop.xlane.xlu1 %127 }
 0x18e   :  { %v241_v12 = vmul.f32 %v230_v10, %v207_v41  ;;  %v130_v33 = vmul.f32 %v128_v32, %v475_v38 }
 0x18f   :  { %v234_v14 = vmul.f32 0.5, %v233_v11 }
 0x190   :  { %v246_v15 = vmul.f32 %v348_v9, %v241_v12  ;;  %v360_v26 = vpop.eup %359  ;;  %v132_v35 = vadd.f32 1e-05, %v130_v33 }
 0x191   :  { %v235_v16 = vsub.f32 1.5, %v234_v14  ;;  %v134_v27 = vmul.f32 %v360_v26, %v131_v25  ;;  %vm140_vm12 = vweird.f32 %v360_v26 }
 0x192   :  { %v251_v17 = vadd.f32 %v349_v13, %v246_v15  ;;  %vm141_vm14 = vmor %vm139_vm13, %vm140_vm12  ;;  %361 = vrsqrt.f32 %v132_v35  ;;  %vm149_vm1 = vweird.f32 %v132_v35 }
 0x193   :  { %v236_v18 = vmul.f32 %v358_v6, %v235_v16  ;;  %v135_v29 = vmul.f32 %v360_v26, %v134_v27 }
 0x194   :  { %255 = vrot.lane.b32.xlu2 %v251_v17, %s365_s28 }
 0x195   :  { %v240_v19 = vsel %vm239_vm11, %v358_v6, %v236_v18  ;;  %v136_v30 = vmul.f32 0.5, %v135_v29 }
 0x196   :  { %v242_v20 = vmul.f32 %v240_v19, %v208_v46 }
 0x197   :  { %v137_v31 = vsub.f32 1.5, %v136_v30 }
 0x198   :  { %v247_v21 = vmul.f32 %v348_v9, %v242_v20  ;;  %v362_v42 = vpop.eup %361 }
 0x199   :  { %v138_v34 = vmul.f32 %v360_v26, %v137_v31  ;;  %v144_v44 = vmul.f32 %v362_v42, %v132_v35  ;;  %vm150_vm0 = vweird.f32 %v362_v42 }
 0x19a   :  { %v252_v22 = vadd.f32 %v349_v13, %v247_v21  ;;  %vm151_vm2 = vmor %vm149_vm1, %vm150_vm0 }
 0x19b   :  { %v142_v36 = vsel %vm141_vm14, %v360_v26, %v138_v34  ;;  %v145_v47 = vmul.f32 %v362_v42, %v144_v44 }
 0x19c   :  { %257 = vrot.lane.b32.xlu0 %v252_v22, %s365_s28  ;;  %v153_v37 = vmul.f32 %v142_v36, %v482_v51 }
 0x19d   :  { %v146_v48 = vmul.f32 0.5, %v145_v47 }
 0x19e   :  { %v158_v41 = vmul.f32 %v350_v39, %v153_v37 }
 0x19f   :  { %v147_v49 = vsub.f32 1.5, %v146_v48 }
 0x1a0   :  { %v163_v38 = vadd.f32 %v351_v40, %v158_v41 }
 0x1a1   :  { %v148_v50 = vmul.f32 %v362_v42, %v147_v49 }
 0x1a3   :  { %v152_v51 = vsel %vm151_vm2, %v362_v42, %v148_v50 }
 0x1a4   :  { %v154_v52 = vmul.f32 %v152_v51, %v488_v56 }
 0x1a6   :  { %v159_v53 = vmul.f32 %v350_v39, %v154_v52 }
 0x1a8   :  { %v164_v54 = vadd.f32 %v351_v40, %v159_v53 }
 0x1ee   :  { %v256_v45 = vpop.permute.xlu2 %255 }
 0x1ef   :  { %v261_v46 = vsel %vm103_vm4, %v163_v38, %v256_v45 }
 0x1f0   :  { %264 = vst.msk [vmem:[%s549_s12] sm:$0xff] %vm263_vm15, %v261_v46 }
 0x20e   :  { %v258_v55 = vpop.permute.xlu0 %257 }
 0x20f   :  { %v262_v57 = vsel %vm103_vm4, %v164_v54, %v258_v55 }
 0x210   :  { %v266_v58 = vpack.c.bf16 %v262_v57, %v261_v46  ;;  %265 = vst.msk [vmem:[%s549_s12 + $0x8] sm:$0xff] %vm263_vm15, %v262_v57 }
 0x212   :  { %337 = vmatmul.msk.bf16.vlgmr.msra.gmra.mxu2 %vm263_vm15, %v266_v58 }
 0x295   :  { %v299_v60 = vpop.f32.mrf.mxu2 }
 0x296   :  { %v300_v56 = vadd.f32 %v352_v59, %v299_v60 }
 0x298   :  { %305 = vst.msk [vmem:[%s550_s13] sm:$0xff] %vm304_vm3, %v300_v56 }
 0x29d   :  { %v301_v61 = vpop.f32.mrf.mxu2 }
 0x29e   :  { %v302_v62 = vadd.f32 %v352_v59, %v301_v61 }
 0x2a0   :  { %306 = vst.msk [vmem:[%s550_s13 + $0x8] sm:$0xff] %vm304_vm3, %v302_v62 }

// kernel: last_query_forward.4
= control target key start
LH: loop header
LB: loop body
LE: loop exit
PB: predicated region body
PF: predicated region fallthrough
CT: control target
= control target key end

     0   :  { %vm97_vm0 = vcmask 261120   ;;  %v764_v13 = vmov 0   ;;  %vm233_vm1 = vcmask 31744   ;;  %vm256_vm2 = vcmask 1043456   ;;  %s1053_s7 = inlined_call_operand.vmem [shape: bf16[32,32], index: 7, kind: input, shape index: {}]   ;;  %s1054_s9 = inlined_call_operand.vmem [shape: bf16[32,32], index: 9, kind: input, shape index: {}]   ;;  %s1055_s0 = inlined_call_operand.vmem [shape: f32[2,32], index: 0, kind: input, shape index: {}]   ;;  %s1056_s1 = inlined_call_operand.vmem [shape: f32[16,32], index: 1, kind: input, shape index: {}]   ;;  %s1057_s8 = inlined_call_operand.vmem [shape: f32[1,32], index: 8, kind: input, shape index: {}]   ;;  %s1058_s10 = inlined_call_operand.vmem [shape: f32[1,32], index: 10, kind: input, shape index: {}]   ;;  %s1059_s5 = inlined_call_operand.vmem [shape: f32[32,4], index: 5, kind: input, shape index: {}]   ;;  %s1060_s4 = inlined_call_operand.vmem [shape: f32[16,1], index: 4, kind: input, shape index: {}]   ;;  %s1061_s12 = inlined_call_operand.vmem [shape: f32[1,32], index: 12, kind: input, shape index: {}]   ;;  %s1062_s11 = inlined_call_operand.vmem [shape: bf16[32,32], index: 11, kind: input, shape index: {}]   ;;  %s1063_s2 = inlined_call_operand.vmem [shape: f32[16,32], index: 2, kind: input, shape index: {}]   ;;  %s1064_s6 = inlined_call_operand.vmem [shape: f32[4,32], index: 6, kind: input, shape index: {}]   ;;  %s1065_s13 = inlined_call_operand.vmem [shape: bf16[32,32], index: 13, kind: input, shape index: {}]   ;;  %s1066_s14 = inlined_call_operand.vmem [shape: f32[1,32], index: 14, kind: input, shape index: {}]   ;;  %s1067_s3 = inlined_call_operand.vmem [shape: f32[16,32], index: 3, kind: input, shape index: {}]   ;;  %s1068_s15 = inlined_call_operand.vmem [shape: f32[1,32], index: 15, kind: input, shape index: {}]   ;;  %s1069_s16 = inlined_call_operand.vmem [shape: f32[1,32], index: 16, kind: input, shape index: {}]   ;;  %s1070_s18 = inlined_call_operand.vmem [shape: f32[1,32], index: 18, kind: input, shape index: {}]   ;;  %s1071_s17 = inlined_call_operand.vmem [shape: bf16[32,32], index: 17, kind: input, shape index: {}]   ;;  %s1072_s20 = inlined_call_operand.vmem [shape: f32[1,32], index: 20, kind: input, shape index: {}]   ;;  %s1073_s19 = inlined_call_operand.vmem [shape: bf16[32,32], index: 19, kind: input, shape index: {}]   ;;  %s1074_s21 = inlined_call_operand.vmem [shape: f32[1,32], index: 21, kind: input, shape index: {}]   ;;  %s1075_s22 = inlined_call_operand.vmem [shape: f32[1,32], index: 22, kind: input, shape index: {}]   ;;  %s1076_s23 = inlined_call_operand.vmem [shape: f32[16,32], index: 23, kind: output, shape index: {}]  }
   0x1   :  { %1082 = sst [smem:[#allocation3_spill]] %s1053_s7  ;;  %736 = vset.pattern.permute.xlu0 %v764_v13  ;;  %v725_v30 = vld [vmem:[%s1062_s11 + $0x8] sm:$0xff]  ;;  %v724_v32 = vld [vmem:[%s1062_s11] sm:$0xff] }
   0x2   :  { %1083 = sst [smem:[#allocation4_spill]] %s1054_s9  ;;  %187 = vmatpush.bf16.msra.mxu2 %v725_v30  ;;  %v155_v33 = vld [vmem:[%s1063_s2] sm:$0xff]  ;;  %v156_v34 = vld [vmem:[%s1063_s2 + $0x8] sm:$0xff] }
   0x3   :  { %1084 = sst [smem:[#allocation5_spill]] %s1055_s0  ;;  %v157_v35 = vpack.c.bf16 %v156_v34, %v155_v33  ;;  %v201_v46 = vld [vmem:[%s1064_s6] sm:$0xf] }
   0x4   :  { %1085 = sst [smem:[#allocation6_spill]] %s1056_s1 }
   0x5   :  { %1086 = sst [smem:[#allocation7_spill]] %s1057_s8 }
   0x6   :  { %1087 = sst [smem:[#allocation8_spill]] %s1058_s10  ;;  %188 = vmatpush.bf16.msra.mxu2 %v724_v32 }
   0x7   :  { %1088 = sst [smem:[#allocation9_spill]] %s1059_s5 }
   0x8   :  { %1089 = sst [smem:[#allocation10_spill]] %s1060_s4 }
   0x9   :  { %1090 = sst [smem:[#allocation11_spill]] %s1070_s18  ;;  %677 = vmatmul.msk.bf16.vlgmr.msra.gmra.mxu2 %vm97_vm0, %v157_v35 }
   0xa   :  { %s1091_s24 = sld [smem:[#allocation3_spill]]  ;;  %691 = vmatpush.msk.msrb.mxu2 %vm256_vm2, %v201_v46 }
   0xb   :  { %s1092_s18 = sld [smem:[#allocation4_spill]] }
   0xc   :  { %s1093_s28 = sld [smem:[#allocation5_spill]] }
   0xd   :  { %s1094_s7 = sld [smem:[#allocation6_spill]] }
   0xe   :  { %s1095_s25 = sld [smem:[#allocation9_spill]] }
   0xf   :  { %s1096_s29 = sld [smem:[#allocation10_spill]] }
  0x10   :  { %v721_v0 = vld [vmem:[%s1091_s24 + $0x8] sm:$0xff]  ;;  %v720_v2 = vld [vmem:[%s1091_s24] sm:$0xff]  ;;  %s1098_s10 = sld [smem:[#allocation8_spill]] }
  0x11   :  { %v723_v1 = vld [vmem:[%s1092_s18 + $0x8] sm:$0xff]  ;;  %v722_v3 = vld [vmem:[%s1092_s18] sm:$0xff]  ;;  %107 = vmatpush.bf16.msra.mxu0 %v721_v0  ;;  %s1097_s18 = sld [smem:[#allocation7_spill]] }
  0x12   :  { %v75_v4 = vld [vmem:[%s1093_s28] sm:$0x3]  ;;  %147 = vmatpush.bf16.msra.mxu1 %v723_v1  ;;  %s1099_s30 = sld [smem:[#allocation11_spill]] }
  0x13   :  { %v115_v5 = vld [vmem:[%s1094_s7] sm:$0xff]  ;;  %v116_v6 = vld [vmem:[%s1094_s7 + $0x8] sm:$0xff]  ;;  %v76_v7 = vpack.c.bf16 %v75_v4, %v75_v4 }
  0x14   :  { %v117_v8 = vpack.c.bf16 %v116_v6, %v115_v5  ;;  %v200_v9 = vld [vmem:[%s1095_s25 + $0x18] sm:$0xff]  ;;  %v199_v10 = vld [vmem:[%s1095_s25 + $0x10] sm:$0xff]  ;;  %v198_v11 = vld [vmem:[%s1095_s25 + $0x8] sm:$0xff] }
  0x15   :  { %108 = vmatpush.bf16.msra.mxu0 %v720_v2  ;;  %225 = vmatpush.msra.mxu3 %v200_v9  ;;  %v197_v12 = vld [vmem:[%s1095_s25] sm:$0xff]  ;;  %v196_v14 = vld [vmem:[%s1096_s29 + $0x8] sm:$0xff] }
  0x16   :  { %148 = vmatpush.bf16.msra.mxu1 %v722_v3  ;;  %329 = vperm.xlu0 %736, %v196_v14   ;;  %v195_v15 = vld [vmem:[%s1096_s29] sm:$0xff] }
  0x17   :  { %226 = vmatpush.msra.mxu3 %v199_v10  ;;  %v737_v16 = vld [vmem:[%s1097_s18] ss:$0 sm:$0xff] }
  0x18   :  { %659 = vmatmul.msk.bf16.vlgmr.msra.gmra.mxu0 %vm97_vm0, %v76_v7  ;;  %v738_v17 = vld [vmem:[%s1098_s10] ss:$0 sm:$0xff] }
  0x19   :  { %668 = vmatmul.msk.bf16.vlgmr.msra.gmra.mxu1 %vm97_vm0, %v117_v8  ;;  %227 = vmatpush.msra.mxu3 %v198_v11 }
  0x1a   :  { %347 = vmatpush.msrb.mxu1 %v200_v9 }
  0x1b   :  { %228 = vmatpush.msra.mxu3 %v197_v12 }
  0x1c   :  { %348 = vmatpush.msrb.mxu1 %v199_v10 }
  0x1d   :  { %679 = vmatpush.msk.msrb.mxu3 %vm256_vm2, %v201_v46 }
  0x1e   :  { %349 = vmatpush.msrb.mxu1 %v198_v11  ;;  %207 = vperm.xlu0 %736, %v195_v15  }
  0x20   :  { %350 = vmatpush.msrb.mxu1 %v197_v12 }
  0x88   :  { %v330_v31 = vpop.permute.xlu0 %329 }
  0x90   :  { %v208_v38 = vpop.permute.xlu0 %207 }
  0x95   :  { %v110_v18 = vpop.f32.mrf.mxu0 }
  0x96   :  { %v150_v19 = vpop.f32.mrf.mxu1  ;;  %v111_v20 = vadd.f32 %v737_v16, %v110_v18  ;;  %v729_v16 = vld [vmem:[%s1065_s13 + $0x8] sm:$0xff]  ;;  %v728_v18 = vld [vmem:[%s1065_s13] sm:$0xff] }
  0x97   :  { %v151_v22 = vadd.f32 %v738_v17, %v150_v19  ;;  %v190_v19 = vpop.f32.mrf.mxu2 }
  0x98   :  { %v114_v21 = vmul.f32 0.35355338, %v111_v20  ;;  %v726_v20 = vld [vmem:[%s1065_s13] sm:$0xff] }
  0x9a   :  { %v203_v23 = vperm.slane %v114_v21, 0  ;;  %v325_v27 = vperm.slane %v114_v21, 1 }
  0x9c   :  { %v204_v24 = vmul.f32 %v203_v23, %v151_v22  ;;  %v739_v22 = vld [vmem:[%s1061_s12] ss:$0 sm:$0xff] }
  0x9d   :  { %v112_v25 = vpop.f32.mrf.mxu0 }
  0x9e   :  { %v152_v26 = vpop.f32.mrf.mxu1  ;;  %678 = vmatmul.msk.f32.vlgmr.msra.gmra.mxu3 %vm97_vm0, %v204_v24  ;;  %v191_v25 = vadd.f32 %v739_v22, %v190_v19 }
  0x9f   :  { %v153_v28 = vadd.f32 %v738_v17, %v152_v26  ;;  %v727_v17 = vld [vmem:[%s1065_s13 + $0x8] sm:$0xff]  ;;  %431 = vmatpush.bf16.msra.mxu3 %v729_v16  ;;  %v192_v21 = vpop.f32.mrf.mxu2 }
  0xa0   :  { %314 = vmatpush.bf16.msrb.mxu0 %v727_v17  ;;  %v193_v23 = vadd.f32 %v739_v22, %v192_v21 }
  0xa1   :  { %v326_v29 = vmul.f32 %v325_v27, %v153_v28 }
  0xa3   :  { %690 = vmatmul.msk.f32.vlgmr.msrb.gmra.mxu1 %vm97_vm0, %v326_v29  ;;  %432 = vmatpush.bf16.msra.mxu3 %v728_v18  ;;  %v730_v18 = vld [vmem:[%s1071_s17] sm:$0xff] }
  0xa4   :  { %315 = vmatpush.bf16.msrb.mxu0 %v726_v20 }
 0x120   :  { %v352_v36 = vpop.f32.mrf.mxu1 }
 0x121   :  { %v353_v37 = vadd.f32 %v352_v36, %v330_v31  ;;  %v230_v39 = vpop.f32.mrf.mxu3 }
 0x122   :  { %v231_v41 = vadd.f32 %v230_v39, %v208_v38 }
 0x123   :  { %v355_v40 = vsel %vm233_vm1, %v353_v37, -inf }
 0x124   :  { %v356_v42 = vrot.slane %v355_v40, 4  ;;  %v234_v43 = vsel %vm233_vm1, %v231_v41, -inf }
 0x125   :  { %v235_v45 = vrot.slane %v234_v43, 4 }
 0x126   :  { %v357_v44 = vmax.f32 %v355_v40, %v356_v42 }
 0x127   :  { %v236_v48 = vmax.f32 %v234_v43, %v235_v45  ;;  %v202_v45 = vld [vmem:[%s1066_s14] sm:$0x1] }
 0x128   :  { %v358_v47 = vrot.slane %v357_v44, 2 }
 0x129   :  { %v237_v50 = vrot.slane %v236_v48, 2 }
 0x12a   :  { %v359_v49 = vmax.f32 %v357_v44, %v358_v47 }
 0x12b   :  { %v238_v52 = vmax.f32 %v236_v48, %v237_v50  ;;  %v982_v48 = vld [vmem:[%s1067_s3] sm:$0xff] }
 0x12c   :  { %v360_v51 = vrot.slane %v359_v49, 1 }
 0x12d   :  { %v239_v54 = vrot.slane %v238_v52, 1 }
 0x12e   :  { %v361_v53 = vmax.f32 %v359_v49, %v360_v51 }
 0x12f   :  { %v240_v56 = vmax.f32 %v238_v52, %v239_v54 }
 0x130   :  { %v362_v55 = vsub.f32 %v353_v37, %v361_v53  ;;  %v988_v53 = vld [vmem:[%s1067_s3 + $0x8] sm:$0xff] }
 0x131   :  { %v241_v58 = vsub.f32 %v231_v41, %v240_v56 }
 0x132   :  { %v363_v57 = vmul.f32 1.442695, %v362_v55 }
 0x133   :  { %v242_v59 = vmul.f32 1.442695, %v241_v58 }
 0x134   :  { %746 = vpow2.f32 %v363_v57 }
 0x135   :  { %748 = vpow2.f32 %v242_v59 }
 0x13a   :  { %v747_v60 = vpop.eup %746 }
 0x13b   :  { %v365_v61 = vsel %vm233_vm1, %v747_v60, 0.0  ;;  %v749_v62 = vpop.eup %748 }
 0x13c   :  { %v366_v63 = vrot.slane %v365_v61, 4  ;;  %v244_v0 = vsel %vm233_vm1, %v749_v62, 0.0 }
 0x13d   :  { %v245_v2 = vrot.slane %v244_v0, 4 }
 0x13e   :  { %v367_v1 = vadd.f32 %v366_v63, %v365_v61 }
 0x13f   :  { %v246_v4 = vadd.f32 %v245_v2, %v244_v0 }
 0x140   :  { %v368_v3 = vrot.slane %v367_v1, 2 }
 0x141   :  { %v247_v6 = vrot.slane %v246_v4, 2 }
 0x142   :  { %v369_v5 = vadd.f32 %v368_v3, %v367_v1 }
 0x143   :  { %v248_v8 = vadd.f32 %v247_v6, %v246_v4 }
 0x144   :  { %v370_v7 = vrot.slane %v369_v5, 1 }
 0x145   :  { %v249_v9 = vrot.slane %v248_v8, 1 }
 0x146   :  { %v371_v10 = vadd.f32 %v370_v7, %v369_v5 }
 0x147   :  { %v250_v11 = vadd.f32 %v249_v9, %v248_v8 }
 0x148   :  { %750 = vrcp.f32 %v371_v10 }
 0x149   :  { %752 = vrcp.f32 %v250_v11 }
 0x14e   :  { %v751_v12 = vpop.eup %750 }
 0x14f   :  { %v373_v13 = vmul.f32 %v751_v12, %v747_v60  ;;  %v753_v14 = vpop.eup %752 }
 0x150   :  { %v252_v15 = vmul.f32 %v753_v14, %v749_v62  ;;  %v765_v62 = vmov 32.0  }
 0x151   :  { %692 = vmatmul.msk.f32.vlgmr.msrb.gmra.mxu2 %vm233_vm1, %v373_v13  ;;  %754 = vrcp.f32 %v765_v62 }
 0x152   :  { %680 = vmatmul.msk.f32.vlgmr.msrb.gmra.mxu3 %vm233_vm1, %v252_v15  ;;  %v731_v15 = vld [vmem:[%s1071_s17 + $0x8] sm:$0xff] }
 0x153   :  { %539 = vmatpush.bf16.msra.mxu1 %v731_v15 }
 0x157   :  { %v755_v63 = vpop.eup %754  ;;  %540 = vmatpush.bf16.msra.mxu1 %v730_v18 }
 0x158   :  { %v455_v0 = vmul.f32 32.0, %v755_v63  ;;  %vm459_vm3 = vweird.f32 %v755_v63 }
 0x15a   :  { %v456_v1 = vsub.f32 1.0, %v455_v0 }
 0x15c   :  { %v457_v2 = vmul.f32 %v755_v63, %v456_v1 }
 0x15e   :  { %v458_v3 = vadd.f32 %v755_v63, %v457_v2 }
 0x160   :  { %v995_v4 = vsel %vm459_vm3, %v755_v63, %v458_v3 }
 0x1d4   :  { %v394_v24 = vpop.f32.mrf.mxu2 }
 0x1d5   :  { %v397_v26 = vmul.f32 %v394_v24, %v193_v23  ;;  %v277_v27 = vpop.f32.mrf.mxu3 }
 0x1d6   :  { %v280_v29 = vmul.f32 %v277_v27, %v191_v25 }
 0x1d7   :  { %v398_v28 = vsel %vm97_vm0, %v397_v26, 0.0 }
 0x1d8   :  { %v399_v30 = vrot.slane %v398_v28, 4  ;;  %v281_v31 = vsel %vm97_vm0, %v280_v29, 0.0 }
 0x1d9   :  { %v282_v33 = vrot.slane %v281_v31, 4 }
 0x1da   :  { %v400_v32 = vadd.f32 %v399_v30, %v398_v28 }
 0x1db   :  { %v283_v35 = vadd.f32 %v282_v33, %v281_v31 }
 0x1dc   :  { %v401_v34 = vrot.slane %v400_v32, 2 }
 0x1dd   :  { %v284_v37 = vrot.slane %v283_v35, 2 }
 0x1de   :  { %v402_v36 = vadd.f32 %v401_v34, %v400_v32 }
 0x1df   :  { %v285_v39 = vadd.f32 %v284_v37, %v283_v35  ;;  %v740_v35 = vld [vmem:[%s1068_s15] ss:$0 sm:$0xff] }
 0x1e0   :  { %v403_v38 = vrot.slane %v402_v36, 1 }
 0x1e1   :  { %v286_v41 = vrot.slane %v285_v39, 1 }
 0x1e2   :  { %v404_v40 = vadd.f32 %v403_v38, %v402_v36 }
 0x1e3   :  { %v287_v43 = vadd.f32 %v286_v41, %v285_v39  ;;  %v741_v39 = vld [vmem:[%s1069_s16] ss:$0 sm:$0xff] }
 0x1e4   :  { %v405_v42 = vpack.c.bf16 %v404_v40, %v404_v40 }
 0x1e5   :  { %v288_v44 = vpack.c.bf16 %v287_v43, %v287_v43 }
 0x1e6   :  { %701 = vmatmul.msk.bf16.vlgmr.msra.gmra.mxu3 %vm97_vm0, %v405_v42 }
 0x1e7   :  { %689 = vmatmul.msk.bf16.vlgmr.msrb.gmra.mxu0 %vm97_vm0, %v288_v44 }
 0x264   :  { %v317_v46 = vpop.f32.mrf.mxu0 }
 0x265   :  { %v318_v47 = vadd.f32 %v317_v46, %v202_v45  ;;  %v733_v46 = vld [vmem:[%s1073_s19 + $0x8] sm:$0xff] }
 0x266   :  { %579 = vmatpush.bf16.msra.mxu2 %v733_v46 }
 0x267   :  { %v322_v49 = vperm.slane %v318_v47, 0  ;;  %v732_v47 = vld [vmem:[%s1073_s19] sm:$0xff] }
 0x269   :  { %v434_v50 = vpop.f32.mrf.mxu3  ;;  %v323_v51 = vadd.f32 %v322_v49, %v982_v48 }
 0x26a   :  { %v435_v52 = vadd.f32 %v434_v50, %v202_v45  ;;  %580 = vmatpush.bf16.msra.mxu2 %v732_v47  ;;  %v742_v50 = vld [vmem:[%s1099_s30] ss:$0 sm:$0xff] }
 0x26b   :  { %324 = vst.msk [vmem:[#allocation2] sm:$0xff] %vm97_vm0, %v323_v51 }
 0x26c   :  { %v439_v54 = vperm.slane %v435_v52, 0  ;;  %v319_v55 = vpop.f32.mrf.mxu0 }
 0x26e   :  { %v440_v56 = vadd.f32 %v439_v54, %v988_v53 }
 0x270   :  { %441 = vst.msk [vmem:[#allocation2 + $0x8] sm:$0xff] %vm97_vm0, %v440_v56 }
 0x271   :  { %v436_v57 = vpop.f32.mrf.mxu3 }
 0x272   :  { %v444_v58 = vld [vmem:[#allocation2] sm:$0xff] }
 0x273   :  { %v448_v59 = vsel %vm97_vm0, %v444_v58, 0.0 }
 0x274   :  { %449 = vadd.xlane.f32.xlu1 %v448_v59 }
 0x277   :  { %v445_v60 = vld [vmem:[#allocation2 + $0x8] sm:$0xff] }
 0x278   :  { %v451_v61 = vsel %vm97_vm0, %v445_v60, 0.0 }
 0x27c   :  { %452 = vadd.xlane.f32.xlu1 %v451_v61 }
 0x2e7   :  { %v450_v5 = vpop.xlane.xlu1 %449 }
 0x2e8   :  { %v461_v6 = vmul.f32 %v995_v4, %v450_v5 }
 0x2ea   :  { %v463_v7 = vsub.f32 %v444_v58, %v461_v6  ;;  %v743_v58 = vld [vmem:[%s1072_s20] ss:$0 sm:$0xff] }
 0x2ec   :  { %v465_v8 = vmul.f32 %v463_v7, %v463_v7 }
 0x2ee   :  { %v467_v9 = vsel %vm97_vm0, %v465_v8, 0.0 }
 0x2ef   :  { %468 = vadd.xlane.f32.xlu2 %v467_v9  ;;  %v453_v10 = vpop.xlane.xlu1 %452 }
 0x2f0   :  { %v462_v11 = vmul.f32 %v995_v4, %v453_v10 }
 0x2f2   :  { %v464_v12 = vsub.f32 %v445_v60, %v462_v11 }
 0x2f4   :  { %v466_v13 = vmul.f32 %v464_v12, %v464_v12 }
 0x2f6   :  { %v470_v14 = vsel %vm97_vm0, %v466_v13, 0.0 }
 0x2f7   :  { %471 = vadd.xlane.f32.xlu2 %v470_v14 }
 0x362   :  { %v469_v16 = vpop.xlane.xlu2 %468 }
 0x363   :  { %v473_v17 = vmul.f32 %v469_v16, %v995_v4 }
 0x365   :  { %v475_v19 = vadd.f32 1e-05, %v473_v17 }
 0x367   :  { %756 = vrsqrt.f32 %v475_v19  ;;  %vm483_vm5 = vweird.f32 %v475_v19 }
 0x36a   :  { %v472_v20 = vpop.xlane.xlu2 %471 }
 0x36b   :  { %v474_v21 = vmul.f32 %v472_v20, %v995_v4 }
 0x36d   :  { %v757_v22 = vpop.eup %756  ;;  %v476_v23 = vadd.f32 1e-05, %v474_v21 }
 0x36e   :  { %v478_v24 = vmul.f32 %v757_v22, %v475_v19  ;;  %vm484_vm4 = vweird.f32 %v757_v22 }
 0x36f   :  { %758 = vrsqrt.f32 %v476_v23  ;;  %vm485_vm6 = vmor %vm483_vm5, %vm484_vm4  ;;  %vm493_vm8 = vweird.f32 %v476_v23 }
 0x370   :  { %v479_v25 = vmul.f32 %v757_v22, %v478_v24 }
 0x372   :  { %v480_v26 = vmul.f32 0.5, %v479_v25 }
 0x374   :  { %v481_v27 = vsub.f32 1.5, %v480_v26  ;;  %v744_v26 = vld [vmem:[%s1074_s21] ss:$0 sm:$0xff] }
 0x375   :  { %v759_v28 = vpop.eup %758 }
 0x376   :  { %v482_v29 = vmul.f32 %v757_v22, %v481_v27  ;;  %v488_v30 = vmul.f32 %v759_v28, %v476_v23  ;;  %vm494_vm7 = vweird.f32 %v759_v28 }
 0x377   :  { %vm495_vm9 = vmor %vm493_vm8, %vm494_vm7 }
 0x378   :  { %v489_v31 = vmul.f32 %v759_v28, %v488_v30  ;;  %v486_v32 = vsel %vm485_vm6, %v757_v22, %v482_v29 }
 0x379   :  { %v497_v36 = vmul.f32 %v486_v32, %v463_v7 }
 0x37a   :  { %v490_v33 = vmul.f32 0.5, %v489_v31 }
 0x37b   :  { %v502_v40 = vmul.f32 %v740_v35, %v497_v36 }
 0x37c   :  { %v491_v34 = vsub.f32 1.5, %v490_v33 }
 0x37d   :  { %v507_v43 = vadd.f32 %v741_v39, %v502_v40 }
 0x37e   :  { %v492_v37 = vmul.f32 %v759_v28, %v491_v34 }
 0x380   :  { %v496_v38 = vsel %vm495_vm9, %v759_v28, %v492_v37 }
 0x381   :  { %v498_v41 = vmul.f32 %v496_v38, %v464_v12 }
 0x383   :  { %v503_v42 = vmul.f32 %v740_v35, %v498_v41 }
 0x385   :  { %v508_v44 = vadd.f32 %v741_v39, %v503_v42 }
 0x387   :  { %v509_v45 = vpack.c.bf16 %v508_v44, %v507_v43 }
 0x389   :  { %710 = vmatmul.msk.bf16.vlgmr.msra.gmra.mxu1 %vm97_vm0, %v509_v45 }
 0x406   :  { %v542_v49 = vpop.f32.mrf.mxu1 }
 0x407   :  { %v543_v51 = vadd.f32 %v742_v50, %v542_v49 }
 0x409   :  { %v547_v55 = vmax.f32 %v543_v51, 0.0 }
 0x40e   :  { %v544_v52 = vpop.f32.mrf.mxu1 }
 0x40f   :  { %v545_v54 = vadd.f32 %v742_v50, %v544_v52 }
 0x411   :  { %v548_v56 = vmax.f32 %v545_v54, 0.0 }
 0x413   :  { %v549_v57 = vpack.c.bf16 %v548_v56, %v547_v55 }
 0x415   :  { %719 = vmatmul.msk.bf16.vlgmr.msra.gmra.mxu2 %vm97_vm0, %v549_v57 }
 0x498   :  { %v582_v59 = vpop.f32.mrf.mxu2 }
 0x499   :  { %v583_v60 = vadd.f32 %v743_v58, %v582_v59 }
 0x49b   :  { %v587_v61 = vadd.f32 %v583_v60, %v982_v48 }
 0x49d   :  { %v591_v62 = vsel %vm97_vm0, %v587_v61, 0.0 }
 0x49e   :  { %592 = vadd.xlane.f32.xlu0 %v591_v62 }
 0x4a0   :  { %v584_v63 = vpop.f32.mrf.mxu2 }
 0x4a1   :  { %v585_v0 = vadd.f32 %v743_v58, %v584_v63 }
 0x4a3   :  { %v588_v1 = vadd.f32 %v585_v0, %v988_v53 }
 0x4a5   :  { %v594_v2 = vsel %vm97_vm0, %v588_v1, 0.0 }
 0x4a6   :  { %595 = vadd.xlane.f32.xlu1 %v594_v2 }
 0x511   :  { %v593_v3 = vpop.xlane.xlu0 %592 }
 0x512   :  { %v597_v5 = vmul.f32 %v593_v3, %v995_v4 }
 0x514   :  { %v599_v6 = vsub.f32 %v587_v61, %v597_v5 }
 0x516   :  { %v601_v7 = vmul.f32 %v599_v6, %v599_v6 }
 0x518   :  { %v603_v8 = vsel %vm97_vm0, %v601_v7, 0.0 }
 0x519   :  { %v596_v9 = vpop.xlane.xlu1 %595  ;;  %604 = vadd.xlane.f32.xlu2 %v603_v8 }
 0x51a   :  { %v598_v48 = vmul.f32 %v596_v9, %v995_v4 }
 0x51c   :  { %v600_v10 = vsub.f32 %v588_v1, %v598_v48 }
 0x51e   :  { %v602_v11 = vmul.f32 %v600_v10, %v600_v10 }
 0x520   :  { %v606_v12 = vsel %vm97_vm0, %v602_v11, 0.0 }
 0x521   :  { %607 = vadd.xlane.f32.xlu1 %v606_v12 }
 0x58c   :  { %v605_v53 = vpop.xlane.xlu2 %604 }
 0x58d   :  { %v609_v13 = vmul.f32 %v605_v53, %v995_v4 }
 0x58f   :  { %v611_v14 = vadd.f32 1e-05, %v609_v13 }
 0x591   :  { %760 = vrsqrt.f32 %v611_v14  ;;  %vm619_vm11 = vweird.f32 %v611_v14 }
 0x594   :  { %v608_v15 = vpop.xlane.xlu1 %607 }
 0x595   :  { %v610_v16 = vmul.f32 %v608_v15, %v995_v4  ;;  %v745_v4 = vld [vmem:[%s1075_s22] ss:$0 sm:$0xff] }
 0x597   :  { %v761_v17 = vpop.eup %760  ;;  %v612_v18 = vadd.f32 1e-05, %v610_v16 }
 0x598   :  { %v614_v19 = vmul.f32 %v761_v17, %v611_v14  ;;  %vm620_vm10 = vweird.f32 %v761_v17 }
 0x599   :  { %762 = vrsqrt.f32 %v612_v18  ;;  %vm621_vm12 = vmor %vm619_vm11, %vm620_vm10  ;;  %vm629_vm14 = vweird.f32 %v612_v18 }
 0x59a   :  { %v615_v20 = vmul.f32 %v761_v17, %v614_v19 }
 0x59c   :  { %v616_v21 = vmul.f32 0.5, %v615_v20 }
 0x59e   :  { %v617_v22 = vsub.f32 1.5, %v616_v21 }
 0x59f   :  { %v763_v23 = vpop.eup %762 }
 0x5a0   :  { %v618_v24 = vmul.f32 %v761_v17, %v617_v22  ;;  %v624_v25 = vmul.f32 %v763_v23, %v612_v18  ;;  %vm630_vm13 = vweird.f32 %v763_v23 }
 0x5a1   :  { %vm631_vm15 = vmor %vm629_vm14, %vm630_vm13 }
 0x5a2   :  { %v622_v27 = vsel %vm621_vm12, %v761_v17, %v618_v24  ;;  %v625_v28 = vmul.f32 %v763_v23, %v624_v25 }
 0x5a3   :  { %v633_v29 = vmul.f32 %v622_v27, %v599_v6 }
 0x5a4   :  { %v626_v30 = vmul.f32 0.5, %v625_v28 }
 0x5a5   :  { %v638_v31 = vmul.f32 %v744_v26, %v633_v29 }
 0x5a6   :  { %v627_v32 = vsub.f32 1.5, %v626_v30 }
 0x5a7   :  { %v643_v33 = vadd.f32 %v745_v4, %v638_v31 }
 0x5a8   :  { %v628_v34 = vmul.f32 %v763_v23, %v627_v32 }
 0x5a9   :  { %645 = vst.msk [vmem:[%s1076_s23] sm:$0xff] %vm97_vm0, %v643_v33 }
 0x5aa   :  { %v632_v35 = vsel %vm631_vm15, %v763_v23, %v628_v34 }
 0x5ab   :  { %v634_v36 = vmul.f32 %v632_v35, %v600_v10 }
 0x5ad   :  { %v639_v37 = vmul.f32 %v744_v26, %v634_v36 }
 0x5af   :  { %v644_v38 = vadd.f32 %v745_v4, %v639_v37 }
 0x5b1   :  { %646 = vst.msk [vmem:[%s1076_s23 + $0x8] sm:$0xff] %vm97_vm0, %v644_v38 }

// kernel: last_query_forward.5
= control target key start
LH: loop header
LB: loop body
LE: loop exit
PB: predicated region body
PF: predicated region fallthrough
CT: control target
= control target key end

     0   :  { %s1960_s0 = inlined_call_operand.vmem [shape: f32[16,32], index: 0, kind: input, shape index: {}]   ;;  %s1961_s1 = inlined_call_operand.vmem [shape: bf16[2,32,128], index: 1, kind: input, shape index: {}]   ;;  %s1962_s2 = inlined_call_operand.vmem [shape: bf16[2,32,128], index: 2, kind: input, shape index: {}]   ;;  %s1963_s3 = inlined_call_operand.vmem [shape: f32[2,1,128], index: 3, kind: input, shape index: {}]   ;;  %s1964_s4 = inlined_call_operand.vmem [shape: f32[1,32], index: 4, kind: input, shape index: {}]   ;;  %s1965_s5 = inlined_call_operand.<no memory space> [shape: f32[1,1], index: 5, kind: input, shape index: {}]   ;;  %s1966_s6 = inlined_call_operand.hbm [shape: f32[2,8], index: 6, kind: output, shape index: {}]  }
   0x1   :  { %v11_v0 = vstv %s1965_s5 }
   0x2   :  { %12 = vst [vmem:[#allocation6] sm:$0x1] %v11_v0 }
   0x3   :  { %v1511_v1 = vld [vmem:[%s1961_s1 + $0x8] sm:$0xff]  ;;  %vm74_vm0 = vcmask 254976   ;;  %v1510_v3 = vld [vmem:[%s1961_s1] sm:$0xff]  ;;  %v1696_v5 = vmov 0.0  }
   0x4   :  { %v1513_v2 = vld [vmem:[%s1962_s2 + $0x8] sm:$0xff]  ;;  %v1512_v4 = vld [vmem:[%s1962_s2] sm:$0xff]  ;;  %75 = vst.msk [vmem:[#allocation2] sm:$0x3] %vm74_vm0, %v1696_v5  ;;  %64 = vmatpush.bf16.msra.mxu0 %v1511_v1 }
   0x5   :  { %101 = vmatpush.bf16.msra.mxu1 %v1513_v2  ;;  %v36_v6 = vld [vmem:[%s1960_s0] sm:$0xff]  ;;  %v37_v7 = vld [vmem:[%s1960_s0 + $0x8] sm:$0xff]  ;;  %76 = vst.msk [vmem:[#allocation3] sm:$0x3] %vm74_vm0, %v1696_v5  ;;  %174 = vmatpush.bf16.msra.mxu2 %v1513_v2 }
   0x6   :  { %247 = vmatpush.bf16.msra.mxu3 %v1513_v2 }
   0x7   :  { %13 = vsyncpa [#allocation8], 0  ;;  %v38_v8 = vpack.c.bf16 %v37_v7, %v36_v6  ;;  %vm54_vm1 = vcmask 261120   ;;  %v1530_v11 = vld [vmem:[%s1963_s3] ss:$0 sm:$0xff]  ;;  %s1697_s11 = smov 32  }
   0x8   :  { %65 = vmatpush.bf16.msra.mxu0 %v1510_v3  ;;  %s1698_s12 = smov 64   ;;  %s1699_s13 = smov 96  }
   0x9   :  { %102 = vmatpush.bf16.msra.mxu1 %v1512_v4  ;;  %175 = vmatpush.bf16.msra.mxu2 %v1512_v4  ;;  %s1701_s23 = smov 2   ;;  %s1702_s24 = smov 3  }
   0xa   :  { %248 = vmatpush.bf16.msra.mxu3 %v1512_v4  ;;  %s1703_s25 = smov 6   ;;  %s1704_s26 = smov 4  }
   0xb   :  { %v78_v9 = vld [vmem:[#allocation2] sm:$0x3]  ;;  %1441 = vmatmul.msk.bf16.vlgmr.msra.gmra.mxu0 %vm54_vm1, %v38_v8  ;;  %s1705_s27 = smov 5   ;;  %s1706_s28 = smov 7  }
   0xc   :  { %320 = vmatpush.bf16.msrb.mxu0 %v1513_v2  ;;  %v79_v10 = vpack.c.bf16 %v78_v9, %v78_v9  ;;  %v129_v21 = vld [vmem:[#allocation3] sm:$0x3]  ;;  %s1707_s29 = smov [#allocation7]   ;;  %s1424_s8 = sshll.u32 %s1966_s6, 4  ;;  %s1425_s8 = int_to_ptr.hbm [resolvable:$true] %s1424_s8 }
   0xd   :  { %393 = vmatpush.bf16.msrb.mxu1 %v1513_v2  ;;  %466 = vmatpush.bf16.msrb.mxu2 %v1513_v2  ;;  %s1422_s30 = sshll.u32 %s1707_s29, 4  ;;  %s1423_s30 = int_to_ptr.vmem [resolvable:$true] %s1422_s30 }
   0xe   :  { %539 = vmatpush.bf16.msrb.mxu3 %v1513_v2  ;;  %1450 = vmatmul.msk.bf16.vlgmr.msra.gmra.mxu1 %vm54_vm1, %v79_v10 }
  0x10   :  { %321 = vmatpush.bf16.msrb.mxu0 %v1512_v4 }
  0x11   :  { %394 = vmatpush.bf16.msrb.mxu1 %v1512_v4  ;;  %467 = vmatpush.bf16.msrb.mxu2 %v1512_v4 }
  0x12   :  { %540 = vmatpush.bf16.msrb.mxu3 %v1512_v4 }
  0x14   :  { %612 = vmatpush.bf16.msra.mxu0 %v1513_v2 }
  0x18   :  { %613 = vmatpush.bf16.msra.mxu0 %v1512_v4 }
  0x88   :  { %v67_v12 = vpop.f32.mrf.mxu0 }
  0x89   :  { %v68_v13 = vadd.f32 %v1530_v11, %v67_v12 }
  0x8b   :  { %v104_v14 = vpop.f32.mrf.mxu1  ;;  %72 = vst [vmem:[#allocation5] sm:$0xff] %v68_v13 }
  0x90   :  { %v69_v15 = vpop.f32.mrf.mxu0 }
  0x91   :  { %v70_v16 = vadd.f32 %v1530_v11, %v69_v15 }
  0x92   :  { %v77_v17 = vld [vmem:[#allocation5] sm:$0x3]  ;;  %v162_v49 = vld [vmem:[#allocation5 + $0x2] sm:$0x3] }
  0x93   :  { %v106_v18 = vpop.f32.mrf.mxu1  ;;  %v108_v19 = vadd.f32 %v104_v14, %v77_v17  ;;  %73 = vst [vmem:[#allocation5 + $0x8] sm:$0xff] %v70_v16 }
  0x94   :  { %v235_v18 = vld [vmem:[#allocation5 + $0x4] sm:$0x3] }
  0x95   :  { %1534 = vtanh.f32 %v108_v19  ;;  %v1451_v22 = vmul.f32 -1.442695, %v108_v19 }
  0x97   :  { %1536 = vpow2.f32 %v1451_v22 }
  0x9b   :  { %v1535_v20 = vpop.eup %1534 }
  0x9c   :  { %136 = vrot.lane.b32.xlu0 %v1535_v20, %s1697_s11 }
  0x9d   :  { %v1537_v23 = vpop.eup %1536 }
  0x9e   :  { %v112_v24 = vadd.f32 1.0, %v1537_v23 }
  0xa0   :  { %1538 = vrcp.f32 %v112_v24  ;;  %v124_v30 = vand.u32 2147483648, %v112_v24  ;;  %vm118_vm3 = vweird.f32 %v112_v24  ;;  %v122_v31 = vand.u32 2147483647, %v112_v24 }
  0xa2   :  { %v125_v33 = vor.u32 1.1754944e-38, %v124_v30  ;;  %vm123_vm5 = vcmp.eq.f32.partialorder %v122_v31, 8.507059e+37 }
  0xa4   :  { %131 = vrot.lane.b32.xlu0 %v129_v21, %s1697_s11 }
  0xa6   :  { %v1539_v25 = vpop.eup %1538 }
  0xa7   :  { %v114_v26 = vmul.f32 %v1539_v25, %v112_v24  ;;  %vm119_vm2 = vweird.f32 %v1539_v25 }
  0xa8   :  { %vm120_vm4 = vmor %vm118_vm3, %vm119_vm2 }
  0xa9   :  { %v115_v27 = vsub.f32 1.0, %v114_v26 }
  0xab   :  { %v116_v28 = vmul.f32 %v1539_v25, %v115_v27 }
  0xad   :  { %v117_v29 = vadd.f32 %v1539_v25, %v116_v28 }
  0xaf   :  { %v121_v32 = vsel %vm120_vm4, %v1539_v25, %v117_v29 }
  0xb0   :  { %v126_v35 = vsel %vm123_vm5, %v125_v33, %v121_v32 }
 0x10e   :  { %v137_v34 = vpop.permute.xlu0 %136 }
 0x10f   :  { %v139_v36 = vmul.f32 %v137_v34, %v126_v35 }
 0x111   :  { %141 = vrot.lane.b32.xlu1 %v139_v36, %s1697_s11 }
 0x116   :  { %v132_v37 = vpop.permute.xlu0 %131 }
 0x117   :  { %v134_v38 = vmul.f32 %v132_v37, %v126_v35 }
 0x183   :  { %v142_v39 = vpop.permute.xlu1 %141 }
 0x184   :  { %v144_v40 = vadd.f32 %v142_v39, %v134_v38 }
 0x186   :  { %1540 = vtanh.f32 %v144_v40 }
 0x18c   :  { %v1541_v41 = vpop.eup %1540 }
 0x18d   :  { %147 = vrot.lane.b32.xlu1 %v1541_v41, %s1697_s11 }
 0x1ff   :  { %v148_v42 = vpop.permute.xlu1 %147 }
 0x200   :  { %v150_v43 = vmul.f32 %v148_v42, %v126_v35 }
 0x202   :  { %157 = vrot.lane.b32.xlu2 %v150_v43, %s1698_s12 }
 0x20a   :  { %152 = vrot.lane.b32.xlu2 %v144_v40, %s1699_s13 }
 0x25c   :  { %v158_v44 = vpop.permute.xlu2 %157 }
 0x25d   :  { %160 = vst.msk [vmem:[#allocation2] sm:$0x3] %vm74_vm0, %v158_v44 }
 0x25e   :  { %161 = vst.msk [vmem:[#allocation4] sm:$0x3] %vm74_vm0, %v158_v44 }
 0x264   :  { %v163_v45 = vld [vmem:[#allocation2] sm:$0x3]  ;;  %v153_v46 = vpop.permute.xlu2 %152 }
 0x265   :  { %155 = vst.msk [vmem:[#allocation3] sm:$0x3] %vm74_vm0, %v153_v46  ;;  %v164_v47 = vpack.c.bf16 %v163_v45, %v163_v45 }
 0x267   :  { %1452 = vmatmul.msk.bf16.vlgmr.msra.gmra.mxu2 %vm54_vm1, %v164_v47 }
 0x26c   :  { %v202_v48 = vld [vmem:[#allocation3] sm:$0x3] }
 0x26d   :  { %204 = vrot.lane.b32.xlu1 %v202_v48, %s1697_s11 }
 0x2df   :  { %v205_v6 = vpop.permute.xlu1 %204 }
 0x2ea   :  { %v177_v50 = vpop.f32.mrf.mxu2 }
 0x2eb   :  { %v181_v51 = vadd.f32 %v177_v50, %v162_v49  ;;  %v308_v50 = vld [vmem:[#allocation5 + $0x6] sm:$0x3] }
 0x2ed   :  { %1542 = vtanh.f32 %v181_v51  ;;  %v1453_v54 = vmul.f32 -1.442695, %v181_v51 }
 0x2ef   :  { %1544 = vpow2.f32 %v1453_v54 }
 0x2f2   :  { %v179_v52 = vpop.f32.mrf.mxu2 }
 0x2f3   :  { %v1543_v53 = vpop.eup %1542 }
 0x2f4   :  { %209 = vrot.lane.b32.xlu0 %v1543_v53, %s1697_s11 }
 0x2f5   :  { %v1545_v55 = vpop.eup %1544 }
 0x2f6   :  { %v185_v56 = vadd.f32 1.0, %v1545_v55 }
 0x2f8   :  { %1546 = vrcp.f32 %v185_v56  ;;  %v197_v62 = vand.u32 2147483648, %v185_v56  ;;  %vm191_vm7 = vweird.f32 %v185_v56  ;;  %v195_v63 = vand.u32 2147483647, %v185_v56 }
 0x2fa   :  { %v198_v1 = vor.u32 1.1754944e-38, %v197_v62  ;;  %vm196_vm9 = vcmp.eq.f32.partialorder %v195_v63, 8.507059e+37 }
 0x2fe   :  { %v1547_v57 = vpop.eup %1546 }
 0x2ff   :  { %v187_v58 = vmul.f32 %v1547_v57, %v185_v56  ;;  %vm192_vm6 = vweird.f32 %v1547_v57 }
 0x300   :  { %vm193_vm8 = vmor %vm191_vm7, %vm192_vm6 }
 0x301   :  { %v188_v59 = vsub.f32 1.0, %v187_v58 }
 0x303   :  { %v189_v60 = vmul.f32 %v1547_v57, %v188_v59 }
 0x305   :  { %v190_v61 = vadd.f32 %v1547_v57, %v189_v60 }
 0x307   :  { %v194_v0 = vsel %vm193_vm8, %v1547_v57, %v190_v61 }
 0x308   :  { %v199_v3 = vsel %vm196_vm9, %v198_v1, %v194_v0 }
 0x309   :  { %v207_v7 = vmul.f32 %v205_v6, %v199_v3 }
 0x366   :  { %v210_v2 = vpop.permute.xlu0 %209 }
 0x367   :  { %v212_v4 = vmul.f32 %v210_v2, %v199_v3 }
 0x369   :  { %214 = vrot.lane.b32.xlu2 %v212_v4, %s1697_s11 }
 0x3c3   :  { %v215_v8 = vpop.permute.xlu2 %214 }
 0x3c4   :  { %v217_v9 = vadd.f32 %v215_v8, %v207_v7 }
 0x3c6   :  { %1548 = vtanh.f32 %v217_v9  ;;  %225 = vrot.lane.b32.xlu2 %v217_v9, %s1699_s13 }
 0x3cc   :  { %v1549_v10 = vpop.eup %1548 }
 0x3cd   :  { %220 = vrot.lane.b32.xlu0 %v1549_v10, %s1697_s11 }
 0x420   :  { %v226_v11 = vpop.permute.xlu2 %225 }
 0x421   :  { %228 = vst.msk [vmem:[#allocation3] sm:$0x3] %vm74_vm0, %v226_v11 }
 0x428   :  { %v275_v14 = vld [vmem:[#allocation3] sm:$0x3] }
 0x43f   :  { %v221_v12 = vpop.permute.xlu0 %220 }
 0x440   :  { %v223_v13 = vmul.f32 %v221_v12, %v199_v3 }
 0x442   :  { %230 = vrot.lane.b32.xlu1 %v223_v13, %s1698_s12 }
 0x44a   :  { %277 = vrot.lane.b32.xlu1 %v275_v14, %s1697_s11 }
 0x4b4   :  { %v231_v15 = vpop.permute.xlu1 %230 }
 0x4b5   :  { %233 = vst.msk [vmem:[#allocation2] sm:$0x3] %vm74_vm0, %v231_v15 }
 0x4b6   :  { %234 = vst.msk [vmem:[#allocation4 + $0x2] sm:$0x3] %vm74_vm0, %v231_v15 }
 0x4bc   :  { %v236_v16 = vld [vmem:[#allocation2] sm:$0x3]  ;;  %v278_v38 = vpop.permute.xlu1 %277 }
 0x4bd   :  { %v237_v17 = vpack.c.bf16 %v236_v16, %v236_v16 }
 0x4bf   :  { %1454 = vmatmul.msk.bf16.vlgmr.msra.gmra.mxu3 %vm54_vm1, %v237_v17 }
 0x542   :  { %v250_v19 = vpop.f32.mrf.mxu3 }
 0x543   :  { %v254_v20 = vadd.f32 %v250_v19, %v235_v18  ;;  %v381_v19 = vld [vmem:[#allocation5 + $0x8] sm:$0x3] }
 0x545   :  { %1550 = vtanh.f32 %v254_v20  ;;  %v1455_v23 = vmul.f32 -1.442695, %v254_v20 }
 0x547   :  { %1552 = vpow2.f32 %v1455_v23 }
 0x54a   :  { %v252_v21 = vpop.f32.mrf.mxu3 }
 0x54b   :  { %v1551_v22 = vpop.eup %1550 }
 0x54c   :  { %282 = vrot.lane.b32.xlu0 %v1551_v22, %s1697_s11 }
 0x54d   :  { %v1553_v24 = vpop.eup %1552 }
 0x54e   :  { %v258_v25 = vadd.f32 1.0, %v1553_v24 }
 0x550   :  { %1554 = vrcp.f32 %v258_v25  ;;  %v270_v31 = vand.u32 2147483648, %v258_v25  ;;  %vm264_vm11 = vweird.f32 %v258_v25  ;;  %v268_v32 = vand.u32 2147483647, %v258_v25 }
 0x552   :  { %v271_v34 = vor.u32 1.1754944e-38, %v270_v31  ;;  %vm269_vm13 = vcmp.eq.f32.partialorder %v268_v32, 8.507059e+37 }
 0x556   :  { %v1555_v26 = vpop.eup %1554 }
 0x557   :  { %v260_v27 = vmul.f32 %v1555_v26, %v258_v25  ;;  %vm265_vm10 = vweird.f32 %v1555_v26 }
 0x558   :  { %vm266_vm12 = vmor %vm264_vm11, %vm265_vm10 }
 0x559   :  { %v261_v28 = vsub.f32 1.0, %v260_v27 }
 0x55b   :  { %v262_v29 = vmul.f32 %v1555_v26, %v261_v28 }
 0x55d   :  { %v263_v30 = vadd.f32 %v1555_v26, %v262_v29 }
 0x55f   :  { %v267_v33 = vsel %vm266_vm12, %v1555_v26, %v263_v30 }
 0x560   :  { %v272_v36 = vsel %vm269_vm13, %v271_v34, %v267_v33 }
 0x561   :  { %v280_v39 = vmul.f32 %v278_v38, %v272_v36 }
 0x5be   :  { %v283_v35 = vpop.permute.xlu0 %282 }
 0x5bf   :  { %v285_v37 = vmul.f32 %v283_v35, %v272_v36 }
 0x5c1   :  { %287 = vrot.lane.b32.xlu2 %v285_v37, %s1697_s11 }
 0x61b   :  { %v288_v40 = vpop.permute.xlu2 %287 }
 0x61c   :  { %v290_v41 = vadd.f32 %v288_v40, %v280_v39 }
 0x61e   :  { %1556 = vtanh.f32 %v290_v41  ;;  %298 = vrot.lane.b32.xlu2 %v290_v41, %s1699_s13 }
 0x624   :  { %v1557_v42 = vpop.eup %1556 }
 0x625   :  { %293 = vrot.lane.b32.xlu0 %v1557_v42, %s1697_s11 }
 0x678   :  { %v299_v43 = vpop.permute.xlu2 %298 }
 0x679   :  { %301 = vst.msk [vmem:[#allocation3] sm:$0x3] %vm74_vm0, %v299_v43 }
 0x680   :  { %v348_v46 = vld [vmem:[#allocation3] sm:$0x3] }
 0x697   :  { %v294_v44 = vpop.permute.xlu0 %293 }
 0x698   :  { %v296_v45 = vmul.f32 %v294_v44, %v272_v36 }
 0x69a   :  { %303 = vrot.lane.b32.xlu1 %v296_v45, %s1698_s12 }
 0x6a2   :  { %350 = vrot.lane.b32.xlu1 %v348_v46, %s1697_s11 }
 0x70c   :  { %v304_v47 = vpop.permute.xlu1 %303 }
 0x70d   :  { %306 = vst.msk [vmem:[#allocation2] sm:$0x3] %vm74_vm0, %v304_v47 }
 0x70e   :  { %307 = vst.msk [vmem:[#allocation4 + $0x4] sm:$0x3] %vm74_vm0, %v304_v47 }
 0x714   :  { %v309_v48 = vld [vmem:[#allocation2] sm:$0x3]  ;;  %v351_v7 = vpop.permute.xlu1 %350 }
 0x715   :  { %v310_v49 = vpack.c.bf16 %v309_v48, %v309_v48 }
 0x717   :  { %1456 = vmatmul.msk.bf16.vlgmr.msrb.gmra.mxu0 %vm54_vm1, %v310_v49 }
 0x794   :  { %v323_v51 = vpop.f32.mrf.mxu0 }
 0x795   :  { %v327_v52 = vadd.f32 %v323_v51, %v308_v50  ;;  %v454_v51 = vld [vmem:[#allocation5 + $0xa] sm:$0x3] }
 0x797   :  { %1558 = vtanh.f32 %v327_v52  ;;  %v1457_v55 = vmul.f32 -1.442695, %v327_v52 }
 0x799   :  { %1560 = vpow2.f32 %v1457_v55 }
 0x79c   :  { %v325_v53 = vpop.f32.mrf.mxu0 }
 0x79d   :  { %v1559_v54 = vpop.eup %1558 }
 0x79e   :  { %355 = vrot.lane.b32.xlu0 %v1559_v54, %s1697_s11 }
 0x79f   :  { %v1561_v56 = vpop.eup %1560 }
 0x7a0   :  { %v331_v57 = vadd.f32 1.0, %v1561_v56 }
 0x7a2   :  { %1562 = vrcp.f32 %v331_v57  ;;  %v343_v63 = vand.u32 2147483648, %v331_v57  ;;  %vm337_vm15 = vweird.f32 %v331_v57  ;;  %v341_v0 = vand.u32 2147483647, %v331_v57 }
 0x7a4   :  { %v344_v2 = vor.u32 1.1754944e-38, %v343_v63  ;;  %vm342_vm3 = vcmp.eq.f32.partialorder %v341_v0, 8.507059e+37 }
 0x7a8   :  { %v1563_v58 = vpop.eup %1562 }
 0x7a9   :  { %v333_v59 = vmul.f32 %v1563_v58, %v331_v57  ;;  %vm338_vm14 = vweird.f32 %v1563_v58 }
 0x7aa   :  { %vm339_vm2 = vmor %vm337_vm15, %vm338_vm14 }
 0x7ab   :  { %v334_v60 = vsub.f32 1.0, %v333_v59 }
 0x7ad   :  { %v335_v61 = vmul.f32 %v1563_v58, %v334_v60 }
 0x7af   :  { %v336_v62 = vadd.f32 %v1563_v58, %v335_v61 }
 0x7b1   :  { %v340_v1 = vsel %vm339_vm2, %v1563_v58, %v336_v62 }
 0x7b2   :  { %v345_v4 = vsel %vm342_vm3, %v344_v2, %v340_v1 }
 0x7b3   :  { %v353_v8 = vmul.f32 %v351_v7, %v345_v4 }
 0x810   :  { %v356_v3 = vpop.permute.xlu0 %355 }
 0x811   :  { %v358_v6 = vmul.f32 %v356_v3, %v345_v4 }
 0x813   :  { %360 = vrot.lane.b32.xlu2 %v358_v6, %s1697_s11 }
 0x86d   :  { %v361_v9 = vpop.permute.xlu2 %360 }
 0x86e   :  { %v363_v10 = vadd.f32 %v361_v9, %v353_v8 }
 0x870   :  { %1564 = vtanh.f32 %v363_v10  ;;  %371 = vrot.lane.b32.xlu2 %v363_v10, %s1699_s13 }
 0x876   :  { %v1565_v11 = vpop.eup %1564 }
 0x877   :  { %366 = vrot.lane.b32.xlu0 %v1565_v11, %s1697_s11 }
 0x8ca   :  { %v372_v12 = vpop.permute.xlu2 %371 }
 0x8cb   :  { %374 = vst.msk [vmem:[#allocation3] sm:$0x3] %vm74_vm0, %v372_v12 }
 0x8d2   :  { %v421_v15 = vld [vmem:[#allocation3] sm:$0x3] }
 0x8e9   :  { %v367_v13 = vpop.permute.xlu0 %366 }
 0x8ea   :  { %v369_v14 = vmul.f32 %v367_v13, %v345_v4 }
 0x8ec   :  { %376 = vrot.lane.b32.xlu1 %v369_v14, %s1698_s12 }
 0x8f4   :  { %423 = vrot.lane.b32.xlu1 %v421_v15, %s1697_s11 }
 0x95e   :  { %v377_v16 = vpop.permute.xlu1 %376 }
 0x95f   :  { %379 = vst.msk [vmem:[#allocation2] sm:$0x3] %vm74_vm0, %v377_v16 }
 0x960   :  { %380 = vst.msk [vmem:[#allocation4 + $0x6] sm:$0x3] %vm74_vm0, %v377_v16 }
 0x966   :  { %v382_v17 = vld [vmem:[#allocation2] sm:$0x3]  ;;  %v424_v39 = vpop.permute.xlu1 %423 }
 0x967   :  { %v383_v18 = vpack.c.bf16 %v382_v17, %v382_v17 }
 0x969   :  { %1458 = vmatmul.msk.bf16.vlgmr.msrb.gmra.mxu1 %vm54_vm1, %v383_v18 }
 0x9e6   :  { %v396_v20 = vpop.f32.mrf.mxu1 }
 0x9e7   :  { %v400_v21 = vadd.f32 %v396_v20, %v381_v19  ;;  %v527_v20 = vld [vmem:[#allocation5 + $0xc] sm:$0x3] }
 0x9e9   :  { %1566 = vtanh.f32 %v400_v21  ;;  %v1459_v24 = vmul.f32 -1.442695, %v400_v21 }
 0x9eb   :  { %1568 = vpow2.f32 %v1459_v24 }
 0x9ee   :  { %v398_v22 = vpop.f32.mrf.mxu1 }
 0x9ef   :  { %v1567_v23 = vpop.eup %1566 }
 0x9f0   :  { %428 = vrot.lane.b32.xlu0 %v1567_v23, %s1697_s11 }
 0x9f1   :  { %v1569_v25 = vpop.eup %1568 }
 0x9f2   :  { %v404_v26 = vadd.f32 1.0, %v1569_v25 }
 0x9f4   :  { %1570 = vrcp.f32 %v404_v26  ;;  %v416_v32 = vand.u32 2147483648, %v404_v26  ;;  %vm410_vm5 = vweird.f32 %v404_v26  ;;  %v414_v33 = vand.u32 2147483647, %v404_v26 }
 0x9f6   :  { %v417_v35 = vor.u32 1.1754944e-38, %v416_v32  ;;  %vm415_vm7 = vcmp.eq.f32.partialorder %v414_v33, 8.507059e+37 }
 0x9fa   :  { %v1571_v27 = vpop.eup %1570 }
 0x9fb   :  { %v406_v28 = vmul.f32 %v1571_v27, %v404_v26  ;;  %vm411_vm4 = vweird.f32 %v1571_v27 }
 0x9fc   :  { %vm412_vm6 = vmor %vm410_vm5, %vm411_vm4 }
 0x9fd   :  { %v407_v29 = vsub.f32 1.0, %v406_v28 }
 0x9ff   :  { %v408_v30 = vmul.f32 %v1571_v27, %v407_v29 }
 0xa01   :  { %v409_v31 = vadd.f32 %v1571_v27, %v408_v30 }
 0xa03   :  { %v413_v34 = vsel %vm412_vm6, %v1571_v27, %v409_v31 }
 0xa04   :  { %v418_v37 = vsel %vm415_vm7, %v417_v35, %v413_v34 }
 0xa05   :  { %v426_v40 = vmul.f32 %v424_v39, %v418_v37 }
 0xa62   :  { %v429_v36 = vpop.permute.xlu0 %428 }
 0xa63   :  { %v431_v38 = vmul.f32 %v429_v36, %v418_v37 }
 0xa65   :  { %433 = vrot.lane.b32.xlu2 %v431_v38, %s1697_s11 }
 0xabf   :  { %v434_v41 = vpop.permute.xlu2 %433 }
 0xac0   :  { %v436_v42 = vadd.f32 %v434_v41, %v426_v40 }
 0xac2   :  { %1572 = vtanh.f32 %v436_v42  ;;  %444 = vrot.lane.b32.xlu2 %v436_v42, %s1699_s13 }
 0xac8   :  { %v1573_v43 = vpop.eup %1572 }
 0xac9   :  { %439 = vrot.lane.b32.xlu0 %v1573_v43, %s1697_s11 }
 0xb1c   :  { %v445_v44 = vpop.permute.xlu2 %444 }
 0xb1d   :  { %447 = vst.msk [vmem:[#allocation3] sm:$0x3] %vm74_vm0, %v445_v44 }
 0xb24   :  { %v494_v47 = vld [vmem:[#allocation3] sm:$0x3] }
 0xb3b   :  { %v440_v45 = vpop.permute.xlu0 %439 }
 0xb3c   :  { %v442_v46 = vmul.f32 %v440_v45, %v418_v37 }
 0xb3e   :  { %449 = vrot.lane.b32.xlu1 %v442_v46, %s1698_s12 }
 0xb46   :  { %496 = vrot.lane.b32.xlu1 %v494_v47, %s1697_s11 }
 0xbb0   :  { %v450_v48 = vpop.permute.xlu1 %449 }
 0xbb1   :  { %452 = vst.msk [vmem:[#allocation2] sm:$0x3] %vm74_vm0, %v450_v48 }
 0xbb2   :  { %453 = vst.msk [vmem:[#allocation4 + $0x8] sm:$0x3] %vm74_vm0, %v450_v48 }
 0xbb8   :  { %v455_v49 = vld [vmem:[#allocation2] sm:$0x3]  ;;  %v497_v8 = vpop.permute.xlu1 %496 }
 0xbb9   :  { %v456_v50 = vpack.c.bf16 %v455_v49, %v455_v49 }
 0xbbb   :  { %1460 = vmatmul.msk.bf16.vlgmr.msrb.gmra.mxu2 %vm54_vm1, %v456_v50 }
 0xc3e   :  { %v469_v52 = vpop.f32.mrf.mxu2 }
 0xc3f   :  { %v473_v53 = vadd.f32 %v469_v52, %v454_v51  ;;  %v600_v52 = vld [vmem:[#allocation5 + $0xe] sm:$0x3] }
 0xc41   :  { %1574 = vtanh.f32 %v473_v53  ;;  %v1461_v56 = vmul.f32 -1.442695, %v473_v53 }
 0xc43   :  { %1576 = vpow2.f32 %v1461_v56 }
 0xc46   :  { %v471_v54 = vpop.f32.mrf.mxu2 }
 0xc47   :  { %v1575_v55 = vpop.eup %1574 }
 0xc48   :  { %501 = vrot.lane.b32.xlu0 %v1575_v55, %s1697_s11 }
 0xc49   :  { %v1577_v57 = vpop.eup %1576 }
 0xc4a   :  { %v477_v58 = vadd.f32 1.0, %v1577_v57 }
 0xc4c   :  { %1578 = vrcp.f32 %v477_v58  ;;  %v489_v0 = vand.u32 2147483648, %v477_v58  ;;  %vm483_vm9 = vweird.f32 %v477_v58  ;;  %v487_v1 = vand.u32 2147483647, %v477_v58 }
 0xc4e   :  { %v490_v3 = vor.u32 1.1754944e-38, %v489_v0  ;;  %vm488_vm11 = vcmp.eq.f32.partialorder %v487_v1, 8.507059e+37 }
 0xc52   :  { %v1579_v59 = vpop.eup %1578 }
 0xc53   :  { %v479_v60 = vmul.f32 %v1579_v59, %v477_v58  ;;  %vm484_vm8 = vweird.f32 %v1579_v59 }
 0xc54   :  { %vm485_vm10 = vmor %vm483_vm9, %vm484_vm8 }
 0xc55   :  { %v480_v61 = vsub.f32 1.0, %v479_v60 }
 0xc57   :  { %v481_v62 = vmul.f32 %v1579_v59, %v480_v61 }
 0xc59   :  { %v482_v63 = vadd.f32 %v1579_v59, %v481_v62 }
 0xc5b   :  { %v486_v2 = vsel %vm485_vm10, %v1579_v59, %v482_v63 }
 0xc5c   :  { %v491_v6 = vsel %vm488_vm11, %v490_v3, %v486_v2 }
 0xc5d   :  { %v499_v9 = vmul.f32 %v497_v8, %v491_v6 }
 0xcba   :  { %v502_v4 = vpop.permute.xlu0 %501 }
 0xcbb   :  { %v504_v7 = vmul.f32 %v502_v4, %v491_v6 }
 0xcbd   :  { %506 = vrot.lane.b32.xlu2 %v504_v7, %s1697_s11 }
 0xd17   :  { %v507_v10 = vpop.permute.xlu2 %506 }
 0xd18   :  { %v509_v11 = vadd.f32 %v507_v10, %v499_v9 }
 0xd1a   :  { %1580 = vtanh.f32 %v509_v11  ;;  %517 = vrot.lane.b32.xlu2 %v509_v11, %s1699_s13 }
 0xd20   :  { %v1581_v12 = vpop.eup %1580 }
 0xd21   :  { %512 = vrot.lane.b32.xlu0 %v1581_v12, %s1697_s11 }
 0xd74   :  { %v518_v13 = vpop.permute.xlu2 %517 }
 0xd75   :  { %520 = vst.msk [vmem:[#allocation3] sm:$0x3] %vm74_vm0, %v518_v13 }
 0xd7c   :  { %v567_v16 = vld [vmem:[#allocation3] sm:$0x3] }
 0xd93   :  { %v513_v14 = vpop.permute.xlu0 %512 }
 0xd94   :  { %v515_v15 = vmul.f32 %v513_v14, %v491_v6 }
 0xd96   :  { %522 = vrot.lane.b32.xlu1 %v515_v15, %s1698_s12  ;;  %v1515_v15 = vld [vmem:[%s1961_s1 + $0x18] sm:$0xff] }
 0xd97   :  { %712 = vmatpush.bf16.msra.mxu1 %v1515_v15 }
 0xd9e   :  { %569 = vrot.lane.b32.xlu1 %v567_v16, %s1697_s11  ;;  %v1517_v16 = vld [vmem:[%s1962_s2 + $0x18] sm:$0xff] }
 0xd9f   :  { %748 = vmatpush.bf16.msra.mxu2 %v1517_v16  ;;  %821 = vmatpush.bf16.msra.mxu3 %v1517_v16 }
 0xda0   :  { %894 = vmatpush.bf16.msrb.mxu0 %v1517_v16 }
 0xe08   :  { %v523_v17 = vpop.permute.xlu1 %522 }
 0xe09   :  { %525 = vst.msk [vmem:[#allocation2] sm:$0x3] %vm74_vm0, %v523_v17 }
 0xe0a   :  { %526 = vst.msk [vmem:[#allocation4 + $0xa] sm:$0x3] %vm74_vm0, %v523_v17 }
 0xe10   :  { %v528_v18 = vld [vmem:[#allocation2] sm:$0x3]  ;;  %v570_v40 = vpop.permute.xlu1 %569 }
 0xe11   :  { %v529_v19 = vpack.c.bf16 %v528_v18, %v528_v18 }
 0xe13   :  { %1462 = vmatmul.msk.bf16.vlgmr.msrb.gmra.mxu3 %vm54_vm1, %v529_v19  ;;  %v1514_v19 = vld [vmem:[%s1961_s1 + $0x10] sm:$0xff] }
 0xe14   :  { %713 = vmatpush.bf16.msra.mxu1 %v1514_v19 }
 0xe18   :  { %967 = vmatpush.bf16.msrb.mxu1 %v1517_v16 }
 0xe96   :  { %v542_v21 = vpop.f32.mrf.mxu3 }
 0xe97   :  { %v546_v22 = vadd.f32 %v542_v21, %v527_v20  ;;  %v1516_v20 = vld [vmem:[%s1962_s2 + $0x10] sm:$0xff] }
 0xe98   :  { %749 = vmatpush.bf16.msra.mxu2 %v1516_v20  ;;  %822 = vmatpush.bf16.msra.mxu3 %v1516_v20 }
 0xe99   :  { %1582 = vtanh.f32 %v546_v22  ;;  %v1463_v25 = vmul.f32 -1.442695, %v546_v22  ;;  %895 = vmatpush.bf16.msrb.mxu0 %v1516_v20  ;;  %968 = vmatpush.bf16.msrb.mxu1 %v1516_v20 }
 0xe9b   :  { %1584 = vpow2.f32 %v1463_v25 }
 0xe9c   :  { %1040 = vmatpush.bf16.msrb.mxu2 %v1517_v16  ;;  %1113 = vmatpush.bf16.msrb.mxu3 %v1517_v16 }
 0xe9e   :  { %v544_v23 = vpop.f32.mrf.mxu3 }
 0xe9f   :  { %v1583_v24 = vpop.eup %1582  ;;  %v685_v23 = vld [vmem:[#allocation4] sm:$0xff] }
 0xea0   :  { %574 = vrot.lane.b32.xlu0 %v1583_v24, %s1697_s11  ;;  %1041 = vmatpush.bf16.msrb.mxu2 %v1516_v20 }
 0xea1   :  { %v1585_v26 = vpop.eup %1584  ;;  %1114 = vmatpush.bf16.msrb.mxu3 %v1516_v20 }
 0xea2   :  { %v550_v27 = vadd.f32 1.0, %v1585_v26 }
 0xea4   :  { %1586 = vrcp.f32 %v550_v27  ;;  %v562_v33 = vand.u32 2147483648, %v550_v27  ;;  %vm556_vm13 = vweird.f32 %v550_v27  ;;  %v560_v34 = vand.u32 2147483647, %v550_v27 }
 0xea6   :  { %v563_v36 = vor.u32 1.1754944e-38, %v562_v33  ;;  %vm561_vm15 = vcmp.eq.f32.partialorder %v560_v34, 8.507059e+37 }
 0xeaa   :  { %v1587_v28 = vpop.eup %1586 }
 0xeab   :  { %v552_v29 = vmul.f32 %v1587_v28, %v550_v27  ;;  %vm557_vm12 = vweird.f32 %v1587_v28 }
 0xeac   :  { %vm558_vm14 = vmor %vm556_vm13, %vm557_vm12 }
 0xead   :  { %v553_v30 = vsub.f32 1.0, %v552_v29 }
 0xeaf   :  { %v554_v31 = vmul.f32 %v1587_v28, %v553_v30 }
 0xeb1   :  { %v555_v32 = vadd.f32 %v1587_v28, %v554_v31 }
 0xeb3   :  { %v559_v35 = vsel %vm558_vm14, %v1587_v28, %v555_v32  ;;  %v1531_v28 = vld [vmem:[%s1963_s3 + $0x1] ss:$0 sm:$0xff] }
 0xeb4   :  { %v564_v38 = vsel %vm561_vm15, %v563_v36, %v559_v35 }
 0xeb5   :  { %v572_v41 = vmul.f32 %v570_v40, %v564_v38 }
 0xf12   :  { %v575_v37 = vpop.permute.xlu0 %574 }
 0xf13   :  { %v577_v39 = vmul.f32 %v575_v37, %v564_v38 }
 0xf15   :  { %579 = vrot.lane.b32.xlu2 %v577_v39, %s1697_s11 }
 0xf6f   :  { %v580_v42 = vpop.permute.xlu2 %579 }
 0xf70   :  { %v582_v43 = vadd.f32 %v580_v42, %v572_v41 }
 0xf72   :  { %1588 = vtanh.f32 %v582_v43  ;;  %590 = vrot.lane.b32.xlu2 %v582_v43, %s1699_s13 }
 0xf78   :  { %v1589_v44 = vpop.eup %1588 }
 0xf79   :  { %585 = vrot.lane.b32.xlu0 %v1589_v44, %s1697_s11 }
 0xfcc   :  { %v591_v45 = vpop.permute.xlu2 %590 }
 0xfcd   :  { %593 = vst.msk [vmem:[#allocation3] sm:$0x3] %vm74_vm0, %v591_v45 }
 0xfd4   :  { %v640_v48 = vld [vmem:[#allocation3] sm:$0x3] }
 0xfeb   :  { %v586_v46 = vpop.permute.xlu0 %585 }
 0xfec   :  { %v588_v47 = vmul.f32 %v586_v46, %v564_v38 }
 0xfee   :  { %595 = vrot.lane.b32.xlu1 %v588_v47, %s1698_s12 }
 0xff6   :  { %642 = vrot.lane.b32.xlu1 %v640_v48, %s1697_s11 }
0x1060   :  { %v596_v49 = vpop.permute.xlu1 %595 }
0x1061   :  { %598 = vst.msk [vmem:[#allocation2] sm:$0x3] %vm74_vm0, %v596_v49 }
0x1062   :  { %599 = vst.msk [vmem:[#allocation4 + $0xc] sm:$0x3] %vm74_vm0, %v596_v49 }
0x1068   :  { %v601_v50 = vld [vmem:[#allocation2] sm:$0x3]  ;;  %v643_v9 = vpop.permute.xlu1 %642 }
0x1069   :  { %v602_v51 = vpack.c.bf16 %v601_v50, %v601_v50 }
0x106b   :  { %1464 = vmatmul.msk.bf16.vlgmr.msra.gmra.mxu0 %vm54_vm1, %v602_v51 }
0x106c   :  { %1186 = vmatpush.bf16.msra.mxu0 %v1517_v16 }
0x1070   :  { %1187 = vmatpush.bf16.msra.mxu0 %v1516_v20 }
0x10e8   :  { %v615_v53 = vpop.f32.mrf.mxu0 }
0x10e9   :  { %v619_v54 = vadd.f32 %v615_v53, %v600_v52 }
0x10eb   :  { %1590 = vtanh.f32 %v619_v54  ;;  %v1465_v57 = vmul.f32 -1.442695, %v619_v54 }
0x10ed   :  { %1592 = vpow2.f32 %v1465_v57 }
0x10f0   :  { %v617_v55 = vpop.f32.mrf.mxu0 }
0x10f1   :  { %v1591_v56 = vpop.eup %1590 }
0x10f2   :  { %647 = vrot.lane.b32.xlu0 %v1591_v56, %s1697_s11 }
0x10f3   :  { %v1593_v58 = vpop.eup %1592 }
0x10f4   :  { %v623_v59 = vadd.f32 1.0, %v1593_v58 }
0x10f6   :  { %1594 = vrcp.f32 %v623_v59  ;;  %v635_v1 = vand.u32 2147483648, %v623_v59  ;;  %vm629_vm3 = vweird.f32 %v623_v59  ;;  %v633_v2 = vand.u32 2147483647, %v623_v59 }
0x10f8   :  { %v636_v4 = vor.u32 1.1754944e-38, %v635_v1  ;;  %vm634_vm5 = vcmp.eq.f32.partialorder %v633_v2, 8.507059e+37 }
0x10fc   :  { %v1595_v60 = vpop.eup %1594 }
0x10fd   :  { %v625_v61 = vmul.f32 %v1595_v60, %v623_v59  ;;  %vm630_vm2 = vweird.f32 %v1595_v60 }
0x10fe   :  { %vm631_vm4 = vmor %vm629_vm3, %vm630_vm2 }
0x10ff   :  { %v626_v62 = vsub.f32 1.0, %v625_v61 }
0x1101   :  { %v627_v63 = vmul.f32 %v1595_v60, %v626_v62 }
0x1103   :  { %v628_v0 = vadd.f32 %v1595_v60, %v627_v63 }
0x1105   :  { %v632_v3 = vsel %vm631_vm4, %v1595_v60, %v628_v0 }
0x1106   :  { %v637_v7 = vsel %vm634_vm5, %v636_v4, %v632_v3 }
0x1107   :  { %v645_v10 = vmul.f32 %v643_v9, %v637_v7 }
0x1164   :  { %v648_v6 = vpop.permute.xlu0 %647 }
0x1165   :  { %v650_v8 = vmul.f32 %v648_v6, %v637_v7 }
0x1167   :  { %652 = vrot.lane.b32.xlu2 %v650_v8, %s1697_s11 }
0x11c1   :  { %v653_v11 = vpop.permute.xlu2 %652 }
0x11c2   :  { %v655_v12 = vadd.f32 %v653_v11, %v645_v10 }
0x11c4   :  { %1596 = vtanh.f32 %v655_v12  ;;  %663 = vrot.lane.b32.xlu2 %v655_v12, %s1699_s13 }
0x11ca   :  { %v1597_v13 = vpop.eup %1596 }
0x11cb   :  { %658 = vrot.lane.b32.xlu0 %v1597_v13, %s1697_s11 }
0x121e   :  { %v664_v14 = vpop.permute.xlu2 %663 }
0x121f   :  { %666 = vst.msk [vmem:[#allocation3] sm:$0x3] %vm74_vm0, %v664_v14 }
0x1220   :  { %723 = vst.msk [vmem:[#allocation3] sm:$0x3] %vm74_vm0, %v1696_v5 }
0x1227   :  { %v776_v21 = vld [vmem:[#allocation3] sm:$0x3] }
0x123d   :  { %v659_v17 = vpop.permute.xlu0 %658 }
0x123e   :  { %v661_v18 = vmul.f32 %v659_v17, %v637_v7 }
0x1240   :  { %668 = vrot.lane.b32.xlu1 %v661_v18, %s1698_s12 }
0x1248   :  { %778 = vrot.lane.b32.xlu1 %v776_v21, %s1697_s11 }
0x12b2   :  { %v669_v22 = vpop.permute.xlu1 %668 }
0x12b3   :  { %671 = vst.msk [vmem:[#allocation2] sm:$0x3] %vm74_vm0, %v669_v22 }
0x12b4   :  { %672 = vst.msk [vmem:[#allocation4 + $0xe] sm:$0x3] %vm74_vm0, %v669_v22 }
0x12b5   :  { %722 = vst.msk [vmem:[#allocation2] sm:$0x3] %vm74_vm0, %v1696_v5 }
0x12ba   :  { %v779_v52 = vpop.permute.xlu1 %778 }
0x12bb   :  { %v686_v24 = vld [vmem:[#allocation4 + $0x8] sm:$0xff] }
0x12bc   :  { %v687_v25 = vpack.c.bf16 %v686_v24, %v685_v23  ;;  %v725_v26 = vld [vmem:[#allocation2] sm:$0x3] }
0x12bd   :  { %v726_v27 = vpack.c.bf16 %v725_v26, %v725_v26 }
0x12be   :  { %1483 = vmatmul.msk.bf16.vlgmr.msra.gmra.mxu1 %vm54_vm1, %v687_v25 }
0x12bf   :  { %1492 = vmatmul.msk.bf16.vlgmr.msra.gmra.mxu2 %vm54_vm1, %v726_v27  ;;  %1259 = vmatpush.bf16.msra.mxu1 %v1517_v16 }
0x12c3   :  { %1260 = vmatpush.bf16.msra.mxu1 %v1516_v20 }
0x133b   :  { %v715_v29 = vpop.f32.mrf.mxu1 }
0x133c   :  { %v716_v30 = vadd.f32 %v1531_v28, %v715_v29 }
0x133e   :  { %720 = vst [vmem:[#allocation5] sm:$0xff] %v716_v30 }
0x1342   :  { %v751_v31 = vpop.f32.mrf.mxu2 }
0x1343   :  { %v717_v5 = vpop.f32.mrf.mxu1 }
0x1344   :  { %v718_v32 = vadd.f32 %v1531_v28, %v717_v5 }
0x1345   :  { %v724_v33 = vld [vmem:[#allocation5] sm:$0x3]  ;;  %v809_v0 = vld [vmem:[#allocation5 + $0x2] sm:$0x3] }
0x1346   :  { %v755_v34 = vadd.f32 %v751_v31, %v724_v33  ;;  %721 = vst [vmem:[#allocation5 + $0x8] sm:$0xff] %v718_v32  ;;  %v882_v32 = vld [vmem:[#allocation5 + $0x4] sm:$0x3] }
0x1348   :  { %1598 = vtanh.f32 %v755_v34  ;;  %v1493_v37 = vmul.f32 -1.442695, %v755_v34 }
0x134a   :  { %v753_v35 = vpop.f32.mrf.mxu2  ;;  %1600 = vpow2.f32 %v1493_v37 }
0x134e   :  { %v1599_v36 = vpop.eup %1598 }
0x134f   :  { %783 = vrot.lane.b32.xlu0 %v1599_v36, %s1697_s11 }
0x1350   :  { %v1601_v38 = vpop.eup %1600 }
0x1351   :  { %v759_v39 = vadd.f32 1.0, %v1601_v38 }
0x1353   :  { %1602 = vrcp.f32 %v759_v39  ;;  %v771_v45 = vand.u32 2147483648, %v759_v39  ;;  %vm765_vm7 = vweird.f32 %v759_v39  ;;  %v769_v46 = vand.u32 2147483647, %v759_v39 }
0x1355   :  { %v772_v48 = vor.u32 1.1754944e-38, %v771_v45  ;;  %vm770_vm9 = vcmp.eq.f32.partialorder %v769_v46, 8.507059e+37 }
0x1359   :  { %v1603_v40 = vpop.eup %1602 }
0x135a   :  { %v761_v41 = vmul.f32 %v1603_v40, %v759_v39  ;;  %vm766_vm6 = vweird.f32 %v1603_v40 }
0x135b   :  { %vm767_vm8 = vmor %vm765_vm7, %vm766_vm6 }
0x135c   :  { %v762_v42 = vsub.f32 1.0, %v761_v41 }
0x135e   :  { %v763_v43 = vmul.f32 %v1603_v40, %v762_v42 }
0x1360   :  { %v764_v44 = vadd.f32 %v1603_v40, %v763_v43 }
0x1362   :  { %v768_v47 = vsel %vm767_vm8, %v1603_v40, %v764_v44 }
0x1363   :  { %v773_v49 = vsel %vm770_vm9, %v772_v48, %v768_v47 }
0x1364   :  { %v781_v53 = vmul.f32 %v779_v52, %v773_v49 }
0x13c1   :  { %v784_v50 = vpop.permute.xlu0 %783 }
0x13c2   :  { %v786_v51 = vmul.f32 %v784_v50, %v773_v49 }
0x13c4   :  { %788 = vrot.lane.b32.xlu2 %v786_v51, %s1697_s11 }
0x141e   :  { %v789_v54 = vpop.permute.xlu2 %788 }
0x141f   :  { %v791_v55 = vadd.f32 %v789_v54, %v781_v53 }
0x1421   :  { %1604 = vtanh.f32 %v791_v55  ;;  %799 = vrot.lane.b32.xlu2 %v791_v55, %s1699_s13 }
0x1427   :  { %v1605_v56 = vpop.eup %1604 }
0x1428   :  { %794 = vrot.lane.b32.xlu0 %v1605_v56, %s1697_s11 }
0x147b   :  { %v800_v57 = vpop.permute.xlu2 %799 }
0x147c   :  { %802 = vst.msk [vmem:[#allocation3] sm:$0x3] %vm74_vm0, %v800_v57 }
0x1483   :  { %v849_v60 = vld [vmem:[#allocation3] sm:$0x3] }
0x149a   :  { %v795_v58 = vpop.permute.xlu0 %794 }
0x149b   :  { %v797_v59 = vmul.f32 %v795_v58, %v773_v49 }
0x149d   :  { %804 = vrot.lane.b32.xlu1 %v797_v59, %s1698_s12 }
0x14a5   :  { %851 = vrot.lane.b32.xlu1 %v849_v60, %s1697_s11 }
0x150f   :  { %v805_v61 = vpop.permute.xlu1 %804 }
0x1510   :  { %807 = vst.msk [vmem:[#allocation2] sm:$0x3] %vm74_vm0, %v805_v61 }
0x1511   :  { %808 = vst.msk [vmem:[#allocation4] sm:$0x3] %vm74_vm0, %v805_v61 }
0x1517   :  { %v810_v62 = vld [vmem:[#allocation2] sm:$0x3]  ;;  %v852_v21 = vpop.permute.xlu1 %851 }
0x1518   :  { %v811_v63 = vpack.c.bf16 %v810_v62, %v810_v62 }
0x151a   :  { %1494 = vmatmul.msk.bf16.vlgmr.msra.gmra.mxu3 %vm54_vm1, %v811_v63 }
0x159d   :  { %v824_v1 = vpop.f32.mrf.mxu3 }
0x159e   :  { %v828_v2 = vadd.f32 %v824_v1, %v809_v0  ;;  %v955_v0 = vld [vmem:[#allocation5 + $0x6] sm:$0x3] }
0x15a0   :  { %1606 = vtanh.f32 %v828_v2  ;;  %v1495_v6 = vmul.f32 -1.442695, %v828_v2 }
0x15a2   :  { %1608 = vpow2.f32 %v1495_v6 }
0x15a5   :  { %v826_v3 = vpop.f32.mrf.mxu3 }
0x15a6   :  { %v1607_v4 = vpop.eup %1606 }
0x15a7   :  { %856 = vrot.lane.b32.xlu0 %v1607_v4, %s1697_s11 }
0x15a8   :  { %v1609_v7 = vpop.eup %1608 }
0x15a9   :  { %v832_v8 = vadd.f32 1.0, %v1609_v7 }
0x15ab   :  { %1610 = vrcp.f32 %v832_v8  ;;  %v844_v14 = vand.u32 2147483648, %v832_v8  ;;  %vm838_vm11 = vweird.f32 %v832_v8  ;;  %v842_v15 = vand.u32 2147483647, %v832_v8 }
0x15ad   :  { %v845_v17 = vor.u32 1.1754944e-38, %v844_v14  ;;  %vm843_vm13 = vcmp.eq.f32.partialorder %v842_v15, 8.507059e+37 }
0x15b1   :  { %v1611_v9 = vpop.eup %1610 }
0x15b2   :  { %v834_v10 = vmul.f32 %v1611_v9, %v832_v8  ;;  %vm839_vm10 = vweird.f32 %v1611_v9 }
0x15b3   :  { %vm840_vm12 = vmor %vm838_vm11, %vm839_vm10 }
0x15b4   :  { %v835_v11 = vsub.f32 1.0, %v834_v10 }
0x15b6   :  { %v836_v12 = vmul.f32 %v1611_v9, %v835_v11 }
0x15b8   :  { %v837_v13 = vadd.f32 %v1611_v9, %v836_v12 }
0x15ba   :  { %v841_v16 = vsel %vm840_vm12, %v1611_v9, %v837_v13 }
0x15bb   :  { %v846_v19 = vsel %vm843_vm13, %v845_v17, %v841_v16 }
0x15bc   :  { %v854_v22 = vmul.f32 %v852_v21, %v846_v19 }
0x1619   :  { %v857_v18 = vpop.permute.xlu0 %856 }
0x161a   :  { %v859_v20 = vmul.f32 %v857_v18, %v846_v19 }
0x161c   :  { %861 = vrot.lane.b32.xlu2 %v859_v20, %s1697_s11 }
0x1676   :  { %v862_v23 = vpop.permute.xlu2 %861 }
0x1677   :  { %v864_v24 = vadd.f32 %v862_v23, %v854_v22 }
0x1679   :  { %1612 = vtanh.f32 %v864_v24  ;;  %872 = vrot.lane.b32.xlu2 %v864_v24, %s1699_s13 }
0x167f   :  { %v1613_v25 = vpop.eup %1612 }
0x1680   :  { %867 = vrot.lane.b32.xlu0 %v1613_v25, %s1697_s11 }
0x16d3   :  { %v873_v26 = vpop.permute.xlu2 %872 }
0x16d4   :  { %875 = vst.msk [vmem:[#allocation3] sm:$0x3] %vm74_vm0, %v873_v26 }
0x16db   :  { %v922_v29 = vld [vmem:[#allocation3] sm:$0x3] }
0x16f2   :  { %v868_v27 = vpop.permute.xlu0 %867 }
0x16f3   :  { %v870_v28 = vmul.f32 %v868_v27, %v846_v19 }
0x16f5   :  { %877 = vrot.lane.b32.xlu1 %v870_v28, %s1698_s12 }
0x16fd   :  { %924 = vrot.lane.b32.xlu1 %v922_v29, %s1697_s11 }
0x1767   :  { %v878_v30 = vpop.permute.xlu1 %877 }
0x1768   :  { %880 = vst.msk [vmem:[#allocation2] sm:$0x3] %vm74_vm0, %v878_v30 }
0x1769   :  { %881 = vst.msk [vmem:[#allocation4 + $0x2] sm:$0x3] %vm74_vm0, %v878_v30 }
0x176f   :  { %v883_v31 = vld [vmem:[#allocation2] sm:$0x3]  ;;  %v925_v52 = vpop.permute.xlu1 %924 }
0x1770   :  { %v884_v5 = vpack.c.bf16 %v883_v31, %v883_v31 }
0x1772   :  { %1496 = vmatmul.msk.bf16.vlgmr.msrb.gmra.mxu0 %vm54_vm1, %v884_v5 }
0x17ef   :  { %v897_v33 = vpop.f32.mrf.mxu0 }
0x17f0   :  { %v901_v34 = vadd.f32 %v897_v33, %v882_v32  ;;  %v1028_v32 = vld [vmem:[#allocation5 + $0x8] sm:$0x3] }
0x17f2   :  { %1614 = vtanh.f32 %v901_v34  ;;  %v1497_v37 = vmul.f32 -1.442695, %v901_v34 }
0x17f4   :  { %1616 = vpow2.f32 %v1497_v37 }
0x17f7   :  { %v899_v35 = vpop.f32.mrf.mxu0 }
0x17f8   :  { %v1615_v36 = vpop.eup %1614 }
0x17f9   :  { %929 = vrot.lane.b32.xlu0 %v1615_v36, %s1697_s11 }
0x17fa   :  { %v1617_v38 = vpop.eup %1616 }
0x17fb   :  { %v905_v39 = vadd.f32 1.0, %v1617_v38 }
0x17fd   :  { %1618 = vrcp.f32 %v905_v39  ;;  %v917_v45 = vand.u32 2147483648, %v905_v39  ;;  %vm911_vm15 = vweird.f32 %v905_v39  ;;  %v915_v46 = vand.u32 2147483647, %v905_v39 }
0x17ff   :  { %v918_v48 = vor.u32 1.1754944e-38, %v917_v45  ;;  %vm916_vm3 = vcmp.eq.f32.partialorder %v915_v46, 8.507059e+37 }
0x1803   :  { %v1619_v40 = vpop.eup %1618 }
0x1804   :  { %v907_v41 = vmul.f32 %v1619_v40, %v905_v39  ;;  %vm912_vm14 = vweird.f32 %v1619_v40 }
0x1805   :  { %vm913_vm2 = vmor %vm911_vm15, %vm912_vm14 }
0x1806   :  { %v908_v42 = vsub.f32 1.0, %v907_v41 }
0x1808   :  { %v909_v43 = vmul.f32 %v1619_v40, %v908_v42 }
0x180a   :  { %v910_v44 = vadd.f32 %v1619_v40, %v909_v43 }
0x180c   :  { %v914_v47 = vsel %vm913_vm2, %v1619_v40, %v910_v44 }
0x180d   :  { %v919_v50 = vsel %vm916_vm3, %v918_v48, %v914_v47 }
0x180e   :  { %v927_v53 = vmul.f32 %v925_v52, %v919_v50 }
0x186b   :  { %v930_v49 = vpop.permute.xlu0 %929 }
0x186c   :  { %v932_v51 = vmul.f32 %v930_v49, %v919_v50 }
0x186e   :  { %934 = vrot.lane.b32.xlu2 %v932_v51, %s1697_s11 }
0x18c8   :  { %v935_v54 = vpop.permute.xlu2 %934 }
0x18c9   :  { %v937_v55 = vadd.f32 %v935_v54, %v927_v53 }
0x18cb   :  { %1620 = vtanh.f32 %v937_v55  ;;  %945 = vrot.lane.b32.xlu2 %v937_v55, %s1699_s13 }
0x18d1   :  { %v1621_v56 = vpop.eup %1620 }
0x18d2   :  { %940 = vrot.lane.b32.xlu0 %v1621_v56, %s1697_s11 }
0x1925   :  { %v946_v57 = vpop.permute.xlu2 %945 }
0x1926   :  { %948 = vst.msk [vmem:[#allocation3] sm:$0x3] %vm74_vm0, %v946_v57 }
0x192d   :  { %v995_v60 = vld [vmem:[#allocation3] sm:$0x3] }
0x1944   :  { %v941_v58 = vpop.permute.xlu0 %940 }
0x1945   :  { %v943_v59 = vmul.f32 %v941_v58, %v919_v50 }
0x1947   :  { %950 = vrot.lane.b32.xlu1 %v943_v59, %s1698_s12 }
0x194f   :  { %997 = vrot.lane.b32.xlu1 %v995_v60, %s1697_s11 }
0x19b9   :  { %v951_v61 = vpop.permute.xlu1 %950 }
0x19ba   :  { %953 = vst.msk [vmem:[#allocation2] sm:$0x3] %vm74_vm0, %v951_v61 }
0x19bb   :  { %954 = vst.msk [vmem:[#allocation4 + $0x4] sm:$0x3] %vm74_vm0, %v951_v61 }
0x19c1   :  { %v956_v62 = vld [vmem:[#allocation2] sm:$0x3]  ;;  %v998_v21 = vpop.permute.xlu1 %997 }
0x19c2   :  { %v957_v63 = vpack.c.bf16 %v956_v62, %v956_v62 }
0x19c4   :  { %1498 = vmatmul.msk.bf16.vlgmr.msrb.gmra.mxu1 %vm54_vm1, %v957_v63 }
0x1a41   :  { %v970_v1 = vpop.f32.mrf.mxu1 }
0x1a42   :  { %v974_v2 = vadd.f32 %v970_v1, %v955_v0  ;;  %v1101_v0 = vld [vmem:[#allocation5 + $0xa] sm:$0x3] }
0x1a44   :  { %1622 = vtanh.f32 %v974_v2  ;;  %v1499_v6 = vmul.f32 -1.442695, %v974_v2 }
0x1a46   :  { %1624 = vpow2.f32 %v1499_v6 }
0x1a49   :  { %v972_v3 = vpop.f32.mrf.mxu1 }
0x1a4a   :  { %v1623_v4 = vpop.eup %1622 }
0x1a4b   :  { %1002 = vrot.lane.b32.xlu0 %v1623_v4, %s1697_s11 }
0x1a4c   :  { %v1625_v7 = vpop.eup %1624 }
0x1a4d   :  { %v978_v8 = vadd.f32 1.0, %v1625_v7 }
0x1a4f   :  { %1626 = vrcp.f32 %v978_v8  ;;  %v990_v14 = vand.u32 2147483648, %v978_v8  ;;  %vm984_vm5 = vweird.f32 %v978_v8  ;;  %v988_v15 = vand.u32 2147483647, %v978_v8 }
0x1a51   :  { %v991_v17 = vor.u32 1.1754944e-38, %v990_v14  ;;  %vm989_vm7 = vcmp.eq.f32.partialorder %v988_v15, 8.507059e+37 }
0x1a55   :  { %v1627_v9 = vpop.eup %1626 }
0x1a56   :  { %v980_v10 = vmul.f32 %v1627_v9, %v978_v8  ;;  %vm985_vm4 = vweird.f32 %v1627_v9 }
0x1a57   :  { %vm986_vm6 = vmor %vm984_vm5, %vm985_vm4 }
0x1a58   :  { %v981_v11 = vsub.f32 1.0, %v980_v10 }
0x1a5a   :  { %v982_v12 = vmul.f32 %v1627_v9, %v981_v11 }
0x1a5c   :  { %v983_v13 = vadd.f32 %v1627_v9, %v982_v12 }
0x1a5e   :  { %v987_v16 = vsel %vm986_vm6, %v1627_v9, %v983_v13 }
0x1a5f   :  { %v992_v19 = vsel %vm989_vm7, %v991_v17, %v987_v16 }
0x1a60   :  { %v1000_v22 = vmul.f32 %v998_v21, %v992_v19 }
0x1abd   :  { %v1003_v18 = vpop.permute.xlu0 %1002 }
0x1abe   :  { %v1005_v20 = vmul.f32 %v1003_v18, %v992_v19 }
0x1ac0   :  { %1007 = vrot.lane.b32.xlu2 %v1005_v20, %s1697_s11 }
0x1b1a   :  { %v1008_v23 = vpop.permute.xlu2 %1007 }
0x1b1b   :  { %v1010_v24 = vadd.f32 %v1008_v23, %v1000_v22 }
0x1b1d   :  { %1628 = vtanh.f32 %v1010_v24  ;;  %1018 = vrot.lane.b32.xlu2 %v1010_v24, %s1699_s13 }
0x1b23   :  { %v1629_v25 = vpop.eup %1628 }
0x1b24   :  { %1013 = vrot.lane.b32.xlu0 %v1629_v25, %s1697_s11 }
0x1b77   :  { %v1019_v26 = vpop.permute.xlu2 %1018 }
0x1b78   :  { %1021 = vst.msk [vmem:[#allocation3] sm:$0x3] %vm74_vm0, %v1019_v26 }
0x1b7f   :  { %v1068_v29 = vld [vmem:[#allocation3] sm:$0x3] }
0x1b96   :  { %v1014_v27 = vpop.permute.xlu0 %1013 }
0x1b97   :  { %v1016_v28 = vmul.f32 %v1014_v27, %v992_v19 }
0x1b99   :  { %1023 = vrot.lane.b32.xlu1 %v1016_v28, %s1698_s12 }
0x1ba1   :  { %1070 = vrot.lane.b32.xlu1 %v1068_v29, %s1697_s11 }
0x1c0b   :  { %v1024_v30 = vpop.permute.xlu1 %1023 }
0x1c0c   :  { %1027 = vst.msk [vmem:[#allocation4 + $0x6] sm:$0x3] %vm74_vm0, %v1024_v30 }
0x1c0d   :  { %1026 = vst.msk [vmem:[#allocation2] sm:$0x3] %vm74_vm0, %v1024_v30 }
0x1c13   :  { %v1071_v52 = vpop.permute.xlu1 %1070 }
0x1c14   :  { %v1029_v31 = vld [vmem:[#allocation2] sm:$0x3] }
0x1c15   :  { %v1030_v5 = vpack.c.bf16 %v1029_v31, %v1029_v31 }
0x1c17   :  { %1500 = vmatmul.msk.bf16.vlgmr.msrb.gmra.mxu2 %vm54_vm1, %v1030_v5 }
0x1c9a   :  { %v1043_v33 = vpop.f32.mrf.mxu2 }
0x1c9b   :  { %v1047_v34 = vadd.f32 %v1043_v33, %v1028_v32  ;;  %v1174_v32 = vld [vmem:[#allocation5 + $0xc] sm:$0x3] }
0x1c9d   :  { %1630 = vtanh.f32 %v1047_v34  ;;  %v1501_v37 = vmul.f32 -1.442695, %v1047_v34 }
0x1c9f   :  { %1632 = vpow2.f32 %v1501_v37 }
0x1ca2   :  { %v1045_v35 = vpop.f32.mrf.mxu2 }
0x1ca3   :  { %v1631_v36 = vpop.eup %1630 }
0x1ca4   :  { %1075 = vrot.lane.b32.xlu0 %v1631_v36, %s1697_s11 }
0x1ca5   :  { %v1633_v38 = vpop.eup %1632 }
0x1ca6   :  { %v1051_v39 = vadd.f32 1.0, %v1633_v38 }
0x1ca8   :  { %1634 = vrcp.f32 %v1051_v39  ;;  %v1063_v45 = vand.u32 2147483648, %v1051_v39  ;;  %vm1057_vm9 = vweird.f32 %v1051_v39  ;;  %v1061_v46 = vand.u32 2147483647, %v1051_v39 }
0x1caa   :  { %v1064_v48 = vor.u32 1.1754944e-38, %v1063_v45  ;;  %vm1062_vm11 = vcmp.eq.f32.partialorder %v1061_v46, 8.507059e+37 }
0x1cae   :  { %v1635_v40 = vpop.eup %1634 }
0x1caf   :  { %v1053_v41 = vmul.f32 %v1635_v40, %v1051_v39  ;;  %vm1058_vm8 = vweird.f32 %v1635_v40 }
0x1cb0   :  { %vm1059_vm10 = vmor %vm1057_vm9, %vm1058_vm8 }
0x1cb1   :  { %v1054_v42 = vsub.f32 1.0, %v1053_v41 }
0x1cb3   :  { %v1055_v43 = vmul.f32 %v1635_v40, %v1054_v42 }
0x1cb5   :  { %v1056_v44 = vadd.f32 %v1635_v40, %v1055_v43 }
0x1cb7   :  { %v1060_v47 = vsel %vm1059_vm10, %v1635_v40, %v1056_v44 }
0x1cb8   :  { %v1065_v50 = vsel %vm1062_vm11, %v1064_v48, %v1060_v47 }
0x1cb9   :  { %v1073_v53 = vmul.f32 %v1071_v52, %v1065_v50 }
0x1d16   :  { %v1076_v49 = vpop.permute.xlu0 %1075 }
0x1d17   :  { %v1078_v51 = vmul.f32 %v1076_v49, %v1065_v50 }
0x1d19   :  { %1080 = vrot.lane.b32.xlu2 %v1078_v51, %s1697_s11 }
0x1d73   :  { %v1081_v54 = vpop.permute.xlu2 %1080 }
0x1d74   :  { %v1083_v55 = vadd.f32 %v1081_v54, %v1073_v53 }
0x1d76   :  { %1636 = vtanh.f32 %v1083_v55  ;;  %1091 = vrot.lane.b32.xlu2 %v1083_v55, %s1699_s13 }
0x1d7c   :  { %v1637_v56 = vpop.eup %1636 }
0x1d7d   :  { %1086 = vrot.lane.b32.xlu0 %v1637_v56, %s1697_s11 }
0x1dd0   :  { %v1092_v57 = vpop.permute.xlu2 %1091 }
0x1dd1   :  { %1094 = vst.msk [vmem:[#allocation3] sm:$0x3] %vm74_vm0, %v1092_v57 }
0x1dd8   :  { %v1141_v60 = vld [vmem:[#allocation3] sm:$0x3] }
0x1def   :  { %v1087_v58 = vpop.permute.xlu0 %1086 }
0x1df0   :  { %v1089_v59 = vmul.f32 %v1087_v58, %v1065_v50 }
0x1df2   :  { %1096 = vrot.lane.b32.xlu1 %v1089_v59, %s1698_s12 }
0x1dfa   :  { %1143 = vrot.lane.b32.xlu1 %v1141_v60, %s1697_s11 }
0x1e64   :  { %v1097_v61 = vpop.permute.xlu1 %1096 }
0x1e65   :  { %1100 = vst.msk [vmem:[#allocation4 + $0x8] sm:$0x3] %vm74_vm0, %v1097_v61 }
0x1e66   :  { %1099 = vst.msk [vmem:[#allocation2] sm:$0x3] %vm74_vm0, %v1097_v61 }
0x1e6c   :  { %v1144_v21 = vpop.permute.xlu1 %1143 }
0x1e6d   :  { %v1102_v62 = vld [vmem:[#allocation2] sm:$0x3] }
0x1e6e   :  { %v1103_v63 = vpack.c.bf16 %v1102_v62, %v1102_v62 }
0x1e70   :  { %1502 = vmatmul.msk.bf16.vlgmr.msrb.gmra.mxu3 %vm54_vm1, %v1103_v63 }
0x1ef3   :  { %v1116_v1 = vpop.f32.mrf.mxu3 }
0x1ef4   :  { %v1120_v2 = vadd.f32 %v1116_v1, %v1101_v0  ;;  %v1247_v0 = vld [vmem:[#allocation5 + $0xe] sm:$0x3] }
0x1ef6   :  { %1638 = vtanh.f32 %v1120_v2  ;;  %v1503_v6 = vmul.f32 -1.442695, %v1120_v2 }
0x1ef8   :  { %1640 = vpow2.f32 %v1503_v6 }
0x1efb   :  { %v1118_v3 = vpop.f32.mrf.mxu3 }
0x1efc   :  { %v1639_v4 = vpop.eup %1638 }
0x1efd   :  { %1148 = vrot.lane.b32.xlu0 %v1639_v4, %s1697_s11 }
0x1efe   :  { %v1641_v7 = vpop.eup %1640 }
0x1eff   :  { %v1124_v8 = vadd.f32 1.0, %v1641_v7 }
0x1f01   :  { %1642 = vrcp.f32 %v1124_v8  ;;  %v1136_v14 = vand.u32 2147483648, %v1124_v8  ;;  %vm1130_vm13 = vweird.f32 %v1124_v8  ;;  %v1134_v15 = vand.u32 2147483647, %v1124_v8 }
0x1f03   :  { %v1137_v17 = vor.u32 1.1754944e-38, %v1136_v14  ;;  %vm1135_vm15 = vcmp.eq.f32.partialorder %v1134_v15, 8.507059e+37 }
0x1f07   :  { %v1643_v9 = vpop.eup %1642 }
0x1f08   :  { %v1126_v10 = vmul.f32 %v1643_v9, %v1124_v8  ;;  %vm1131_vm12 = vweird.f32 %v1643_v9 }
0x1f09   :  { %vm1132_vm14 = vmor %vm1130_vm13, %vm1131_vm12  ;;  %vm1378_vm13 = vcmask 1024  }
0x1f0a   :  { %v1127_v11 = vsub.f32 1.0, %v1126_v10 }
0x1f0c   :  { %v1128_v12 = vmul.f32 %v1643_v9, %v1127_v11 }
0x1f0e   :  { %v1129_v13 = vadd.f32 %v1643_v9, %v1128_v12 }
0x1f10   :  { %v1133_v16 = vsel %vm1132_vm14, %v1643_v9, %v1129_v13 }
0x1f11   :  { %v1138_v19 = vsel %vm1135_vm15, %v1137_v17, %v1133_v16  ;;  %vm1384_vm15 = vcmask 11274  }
0x1f12   :  { %v1146_v22 = vmul.f32 %v1144_v21, %v1138_v19  ;;  %v1532_v21 = vld [vmem:[%s1964_s4] ss:$0 sm:$0xff]  ;;  %s1700_s4 = smov 1  }
0x1f6f   :  { %v1149_v18 = vpop.permute.xlu0 %1148 }
0x1f70   :  { %v1151_v20 = vmul.f32 %v1149_v18, %v1138_v19 }
0x1f72   :  { %1153 = vrot.lane.b32.xlu2 %v1151_v20, %s1697_s11 }
0x1fcc   :  { %v1154_v23 = vpop.permute.xlu2 %1153 }
0x1fcd   :  { %v1156_v24 = vadd.f32 %v1154_v23, %v1146_v22  ;;  %v1320_v22 = vld [vmem:[#allocation4] sm:$0xff] }
0x1fce   :  { %v1326_v23 = vmul.f32 %v1532_v21, %v1320_v22 }
0x1fcf   :  { %1644 = vtanh.f32 %v1156_v24  ;;  %1164 = vrot.lane.b32.xlu2 %v1156_v24, %s1699_s13 }
0x1fd0   :  { %v1328_v24 = vsel %vm54_vm1, %v1326_v23, 0.0 }
0x1fd5   :  { %v1645_v25 = vpop.eup %1644 }
0x1fd6   :  { %1159 = vrot.lane.b32.xlu0 %v1645_v25, %s1697_s11 }
0x2029   :  { %v1165_v26 = vpop.permute.xlu2 %1164 }
0x202a   :  { %1167 = vst.msk [vmem:[#allocation3] sm:$0x3] %vm74_vm0, %v1165_v26 }
0x2031   :  { %v1214_v29 = vld [vmem:[#allocation3] sm:$0x3] }
0x2048   :  { %v1160_v27 = vpop.permute.xlu0 %1159 }
0x2049   :  { %v1162_v28 = vmul.f32 %v1160_v27, %v1138_v19 }
0x204b   :  { %1169 = vrot.lane.b32.xlu1 %v1162_v28, %s1698_s12 }
0x2053   :  { %1216 = vrot.lane.b32.xlu1 %v1214_v29, %s1697_s11 }
0x20bd   :  { %v1170_v30 = vpop.permute.xlu1 %1169 }
0x20be   :  { %1173 = vst.msk [vmem:[#allocation4 + $0xa] sm:$0x3] %vm74_vm0, %v1170_v30 }
0x20bf   :  { %1172 = vst.msk [vmem:[#allocation2] sm:$0x3] %vm74_vm0, %v1170_v30  ;;  %v1533_v30 = vld [vmem:[#allocation6] ss:$0 sm:$0xff] }
0x20c5   :  { %v1217_v52 = vpop.permute.xlu1 %1216 }
0x20c6   :  { %v1175_v31 = vld [vmem:[#allocation2] sm:$0x3] }
0x20c7   :  { %v1176_v5 = vpack.c.bf16 %v1175_v31, %v1175_v31 }
0x20c9   :  { %1504 = vmatmul.msk.bf16.vlgmr.msra.gmra.mxu0 %vm54_vm1, %v1176_v5 }
0x2146   :  { %v1189_v33 = vpop.f32.mrf.mxu0 }
0x2147   :  { %v1193_v34 = vadd.f32 %v1189_v33, %v1174_v32 }
0x2149   :  { %1646 = vtanh.f32 %v1193_v34  ;;  %v1505_v37 = vmul.f32 -1.442695, %v1193_v34 }
0x214b   :  { %1648 = vpow2.f32 %v1505_v37 }
0x214e   :  { %v1191_v35 = vpop.f32.mrf.mxu0 }
0x214f   :  { %v1647_v36 = vpop.eup %1646 }
0x2150   :  { %1221 = vrot.lane.b32.xlu0 %v1647_v36, %s1697_s11 }
0x2151   :  { %v1649_v38 = vpop.eup %1648 }
0x2152   :  { %v1197_v39 = vadd.f32 1.0, %v1649_v38 }
0x2154   :  { %1650 = vrcp.f32 %v1197_v39  ;;  %v1209_v45 = vand.u32 2147483648, %v1197_v39  ;;  %vm1203_vm3 = vweird.f32 %v1197_v39  ;;  %v1207_v46 = vand.u32 2147483647, %v1197_v39 }
0x2156   :  { %v1210_v48 = vor.u32 1.1754944e-38, %v1209_v45  ;;  %vm1208_vm5 = vcmp.eq.f32.partialorder %v1207_v46, 8.507059e+37 }
0x215a   :  { %v1651_v40 = vpop.eup %1650 }
0x215b   :  { %v1199_v41 = vmul.f32 %v1651_v40, %v1197_v39  ;;  %vm1204_vm2 = vweird.f32 %v1651_v40 }
0x215c   :  { %vm1205_vm4 = vmor %vm1203_vm3, %vm1204_vm2  ;;  %vm1389_vm2 = vcmask 21524   ;;  %vm1394_vm3 = vcmask 31774  }
0x215d   :  { %v1200_v42 = vsub.f32 1.0, %v1199_v41 }
0x215f   :  { %v1201_v43 = vmul.f32 %v1651_v40, %v1200_v42 }
0x2161   :  { %v1202_v44 = vadd.f32 %v1651_v40, %v1201_v43 }
0x2163   :  { %v1206_v47 = vsel %vm1205_vm4, %v1651_v40, %v1202_v44 }
0x2164   :  { %v1211_v50 = vsel %vm1208_vm5, %v1210_v48, %v1206_v47 }
0x2165   :  { %v1219_v53 = vmul.f32 %v1217_v52, %v1211_v50 }
0x21c2   :  { %v1222_v49 = vpop.permute.xlu0 %1221 }
0x21c3   :  { %v1224_v51 = vmul.f32 %v1222_v49, %v1211_v50 }
0x21c5   :  { %1226 = vrot.lane.b32.xlu2 %v1224_v51, %s1697_s11 }
0x221f   :  { %v1227_v54 = vpop.permute.xlu2 %1226 }
0x2220   :  { %v1229_v55 = vadd.f32 %v1227_v54, %v1219_v53 }
0x2222   :  { %1652 = vtanh.f32 %v1229_v55  ;;  %1237 = vrot.lane.b32.xlu2 %v1229_v55, %s1699_s13 }
0x2228   :  { %v1653_v56 = vpop.eup %1652 }
0x2229   :  { %1232 = vrot.lane.b32.xlu0 %v1653_v56, %s1697_s11 }
0x227c   :  { %v1238_v57 = vpop.permute.xlu2 %1237 }
0x227d   :  { %1240 = vst.msk [vmem:[#allocation3] sm:$0x3] %vm74_vm0, %v1238_v57 }
0x2284   :  { %v1287_v60 = vld [vmem:[#allocation3] sm:$0x3] }
0x229b   :  { %v1233_v58 = vpop.permute.xlu0 %1232 }
0x229c   :  { %v1235_v59 = vmul.f32 %v1233_v58, %v1211_v50 }
0x229e   :  { %1242 = vrot.lane.b32.xlu1 %v1235_v59, %s1698_s12 }
0x22a6   :  { %1289 = vrot.lane.b32.xlu1 %v1287_v60, %s1697_s11 }
0x2310   :  { %v1243_v61 = vpop.permute.xlu1 %1242 }
0x2311   :  { %1246 = vst.msk [vmem:[#allocation4 + $0xc] sm:$0x3] %vm74_vm0, %v1243_v61 }
0x2312   :  { %1245 = vst.msk [vmem:[#allocation2] sm:$0x3] %vm74_vm0, %v1243_v61 }
0x2318   :  { %v1290_v25 = vpop.permute.xlu1 %1289 }
0x2319   :  { %v1248_v62 = vld [vmem:[#allocation2] sm:$0x3] }
0x231a   :  { %v1249_v63 = vpack.c.bf16 %v1248_v62, %v1248_v62 }
0x231c   :  { %1506 = vmatmul.msk.bf16.vlgmr.msra.gmra.mxu1 %vm54_vm1, %v1249_v63 }
0x2399   :  { %v1262_v1 = vpop.f32.mrf.mxu1 }
0x239a   :  { %v1266_v2 = vadd.f32 %v1262_v1, %v1247_v0 }
0x239c   :  { %1654 = vtanh.f32 %v1266_v2  ;;  %v1507_v6 = vmul.f32 -1.442695, %v1266_v2 }
0x239e   :  { %1656 = vpow2.f32 %v1507_v6 }
0x23a1   :  { %v1264_v3 = vpop.f32.mrf.mxu1 }
0x23a2   :  { %v1655_v4 = vpop.eup %1654 }
0x23a3   :  { %1294 = vrot.lane.b32.xlu0 %v1655_v4, %s1697_s11 }
0x23a4   :  { %v1657_v7 = vpop.eup %1656 }
0x23a5   :  { %v1270_v8 = vadd.f32 1.0, %v1657_v7 }
0x23a7   :  { %1658 = vrcp.f32 %v1270_v8  ;;  %v1282_v14 = vand.u32 2147483648, %v1270_v8  ;;  %vm1276_vm7 = vweird.f32 %v1270_v8  ;;  %v1280_v15 = vand.u32 2147483647, %v1270_v8 }
0x23a9   :  { %v1283_v17 = vor.u32 1.1754944e-38, %v1282_v14  ;;  %vm1281_vm9 = vcmp.eq.f32.partialorder %v1280_v15, 8.507059e+37 }
0x23ad   :  { %v1659_v9 = vpop.eup %1658 }
0x23ae   :  { %v1272_v10 = vmul.f32 %v1659_v9, %v1270_v8  ;;  %vm1277_vm6 = vweird.f32 %v1659_v9 }
0x23af   :  { %vm1278_vm8 = vmor %vm1276_vm7, %vm1277_vm6  ;;  %vm1405_vm7 = vcmask 44074  }
0x23b0   :  { %v1273_v11 = vsub.f32 1.0, %v1272_v10 }
0x23b2   :  { %v1274_v12 = vmul.f32 %v1659_v9, %v1273_v11 }
0x23b4   :  { %v1275_v13 = vadd.f32 %v1659_v9, %v1274_v12 }
0x23b6   :  { %v1279_v16 = vsel %vm1278_vm8, %v1659_v9, %v1275_v13  ;;  %vm1410_vm8 = vcmask 54324  }
0x23b7   :  { %v1284_v19 = vsel %vm1281_vm9, %v1283_v17, %v1279_v16  ;;  %vm1415_vm9 = vcmask 64574  }
0x23b8   :  { %v1292_v26 = vmul.f32 %v1290_v25, %v1284_v19 }
0x2415   :  { %v1295_v18 = vpop.permute.xlu0 %1294 }
0x2416   :  { %v1297_v20 = vmul.f32 %v1295_v18, %v1284_v19 }
0x2418   :  { %1299 = vrot.lane.b32.xlu2 %v1297_v20, %s1697_s11 }
0x2441   :  { %1329 = vadd.xlane.f32.xlu2 %v1328_v24 }
0x2472   :  { %v1300_v27 = vpop.permute.xlu2 %1299 }
0x2473   :  { %v1302_v28 = vadd.f32 %v1300_v27, %v1292_v26 }
0x2475   :  { %1660 = vtanh.f32 %v1302_v28 }
0x247b   :  { %v1661_v29 = vpop.eup %1660 }
0x247c   :  { %1305 = vrot.lane.b32.xlu0 %v1661_v29, %s1697_s11 }
0x24b4   :  { %v1330_v31 = vpop.xlane.xlu2 %1329 }
0x24b5   :  { %v1338_v5 = vadd.f32 %v1533_v30, %v1330_v31 }
0x24b7   :  { %v1508_v32 = vmul.f32 -1.442695, %v1338_v5 }
0x24b9   :  { %1662 = vpow2.f32 %v1508_v32 }
0x24bf   :  { %v1663_v33 = vpop.eup %1662 }
0x24c0   :  { %v1346_v34 = vadd.f32 1.0, %v1663_v33 }
0x24c2   :  { %1664 = vrcp.f32 %v1346_v34  ;;  %v1359_v38 = vand.u32 2147483648, %v1346_v34  ;;  %v1357_v40 = vand.u32 2147483647, %v1346_v34  ;;  %vm1353_vm11 = vweird.f32 %v1346_v34 }
0x24c4   :  { %v1360_v42 = vor.u32 1.1754944e-38, %v1359_v38  ;;  %vm1358_vm14 = vcmp.eq.f32.partialorder %v1357_v40, 8.507059e+37 }
0x24c8   :  { %v1665_v35 = vpop.eup %1664 }
0x24c9   :  { %v1349_v36 = vmul.f32 %v1665_v35, %v1346_v34  ;;  %vm1354_vm10 = vweird.f32 %v1665_v35 }
0x24ca   :  { %vm1355_vm12 = vmor %vm1353_vm11, %vm1354_vm10 }
0x24cb   :  { %v1350_v37 = vsub.f32 1.0, %v1349_v36 }
0x24cd   :  { %v1351_v39 = vmul.f32 %v1665_v35, %v1350_v37 }
0x24cf   :  { %v1352_v41 = vadd.f32 %v1665_v35, %v1351_v39 }
0x24d1   :  { %v1356_v43 = vsel %vm1355_vm12, %v1665_v35, %v1352_v41 }
0x24d2   :  { %v1361_v44 = vsel %vm1358_vm14, %v1360_v42, %v1356_v43 }
0x24d3   :  { %1379 = vst.msk [vmem:[#allocation7] sm:$0x3] %vm1378_vm13, %v1361_v44 }
0x24ee   :  { %v1306_v45 = vpop.permute.xlu0 %1305 }
0x24ef   :  { %v1308_v46 = vmul.f32 %v1306_v45, %v1284_v19 }
0x24f1   :  { %1315 = vrot.lane.b32.xlu1 %v1308_v46, %s1698_s12 }
0x24f9   :  { %1381 = vrot.lane.b32.xlu1 %v1361_v44, %s1700_s4 }
0x2501   :  { %1386 = vrot.lane.b32.xlu1 %v1361_v44, %s1701_s23 }
0x2509   :  { %1391 = vrot.lane.b32.xlu1 %v1361_v44, %s1702_s24 }
0x2563   :  { %v1316_v47 = vpop.permute.xlu1 %1315 }
0x2564   :  { %1318 = vst.msk [vmem:[#allocation2] sm:$0x3] %vm74_vm0, %v1316_v47 }
0x2565   :  { %1319 = vst.msk [vmem:[#allocation4 + $0xe] sm:$0x3] %vm74_vm0, %v1316_v47 }
0x256b   :  { %v1382_v48 = vpop.permute.xlu1 %1381 }
0x256c   :  { %1385 = vst.msk [vmem:[#allocation7 - $0x2] sm:$0xc] %vm1384_vm15, %v1382_v48  ;;  %v1321_v49 = vld [vmem:[#allocation4 + $0x8] sm:$0xff] }
0x256d   :  { %v1327_v50 = vmul.f32 %v1532_v21, %v1321_v49 }
0x256f   :  { %v1331_v51 = vsel %vm54_vm1, %v1327_v50, 0.0 }
0x2570   :  { %1332 = vadd.xlane.f32.xlu0 %v1331_v51 }
0x2573   :  { %v1387_v52 = vpop.permute.xlu1 %1386 }
0x2574   :  { %1390 = vst.msk [vmem:[#allocation7 - $0x4] sm:$0x30] %vm1389_vm2, %v1387_v52 }
0x257b   :  { %v1392_v53 = vpop.permute.xlu1 %1391 }
0x257c   :  { %1395 = vst.msk [vmem:[#allocation7 - $0x6] sm:$0xc0] %vm1394_vm3, %v1392_v53 }
0x2584   :  { %1310 = vrot.lane.b32.xlu0 %v1302_v28, %s1699_s13 }
0x25e3   :  { %v1333_v54 = vpop.xlane.xlu0 %1332 }
0x25e4   :  { %v1339_v55 = vadd.f32 %v1533_v30, %v1333_v54 }
0x25e6   :  { %v1509_v56 = vmul.f32 -1.442695, %v1339_v55 }
0x25e8   :  { %1666 = vpow2.f32 %v1509_v56 }
0x25ee   :  { %v1667_v57 = vpop.eup %1666 }
0x25ef   :  { %v1347_v58 = vadd.f32 1.0, %v1667_v57 }
0x25f1   :  { %1668 = vrcp.f32 %v1347_v58  ;;  %v1374_v63 = vand.u32 2147483648, %v1347_v58  ;;  %v1372_v1 = vand.u32 2147483647, %v1347_v58  ;;  %vm1368_vm4 = vweird.f32 %v1347_v58 }
0x25f3   :  { %v1375_v3 = vor.u32 1.1754944e-38, %v1374_v63  ;;  %vm1373_vm6 = vcmp.eq.f32.partialorder %v1372_v1, 8.507059e+37 }
0x25f6   :  { %v1311_v59 = vpop.permute.xlu0 %1310 }
0x25f7   :  { %v1669_v60 = vpop.eup %1668  ;;  %1313 = vst.msk [vmem:[#allocation3] sm:$0x3] %vm74_vm0, %v1311_v59  ;;  %vm1400_vm0 = vcmask 33824  }
0x25f8   :  { %v1364_v61 = vmul.f32 %v1669_v60, %v1347_v58  ;;  %vm1369_vm1 = vweird.f32 %v1669_v60 }
0x25f9   :  { %vm1370_vm5 = vmor %vm1368_vm4, %vm1369_vm1 }
0x25fa   :  { %v1365_v62 = vsub.f32 1.0, %v1364_v61 }
0x25fc   :  { %v1366_v0 = vmul.f32 %v1669_v60, %v1365_v62 }
0x25fe   :  { %v1367_v2 = vadd.f32 %v1669_v60, %v1366_v0 }
0x2600   :  { %v1371_v4 = vsel %vm1370_vm5, %v1669_v60, %v1367_v2 }
0x2601   :  { %v1376_v6 = vsel %vm1373_vm6, %v1375_v3, %v1371_v4 }
0x2602   :  { %1407 = vrot.lane.b32.xlu2 %v1376_v6, %s1703_s25  ;;  %1397 = vrot.lane.b32.xlu1 %v1376_v6, %s1704_s26 }
0x260a   :  { %1402 = vrot.lane.b32.xlu1 %v1376_v6, %s1705_s27 }
0x2612   :  { %1412 = vrot.lane.b32.xlu1 %v1376_v6, %s1706_s28 }
0x265c   :  { %v1408_v9 = vpop.permute.xlu2 %1407 }
0x2674   :  { %v1398_v7 = vpop.permute.xlu1 %1397 }
0x2675   :  { %1401 = vst.msk [vmem:[#allocation7] sm:$0x3] %vm1400_vm0, %v1398_v7 }
0x267c   :  { %v1403_v8 = vpop.permute.xlu1 %1402 }
0x267d   :  { %1406 = vst.msk [vmem:[#allocation7 - $0x2] sm:$0xc] %vm1405_vm7, %v1403_v8 }
0x267e   :  { %1411 = vst.msk [vmem:[#allocation7 - $0x4] sm:$0x30] %vm1410_vm8, %v1408_v9 }
0x2684   :  { %v1413_v10 = vpop.permute.xlu1 %1412 }
0x2685   :  { %1416 = vst.msk [vmem:[#allocation7 - $0x6] sm:$0xc0] %vm1415_vm9, %v1413_v10 }
0x2686   :  { %1427 = dma.vmem_to_hbm [thread:$0]  %s1423_s30, 32, %s1425_s8, [#allocation8]  }
0x2687   :  { %1694 = dma.done.wait [#allocation8], 32  }
0x2688   :  { %1695 = vsyncadd [#allocation8], 4294967264 }
0x2689   :  { %1432 = vsyncpa [#allocation8], 1 }

</bundles_post_ra>
